<compile_context>
chip_gen: v7x
topology: tpu7x:2x2x1
jax: 0.10.0
libtpu: 0.0.40
codegen_flags: <defaults>
</compile_context>

<pallas_src>
import functools
import math

import jax
import jax.numpy as jnp
from jax.experimental import pallas as pl
from jax.experimental.pallas import tpu as pltpu


# ----------------------------------------------------------------------------
# Pallas kernel
# ----------------------------------------------------------------------------
def _conv_deriv_kernel(w_ref, x_ref, o_ref, *, kh, kw, inv_resol):
    """w_ref: SMEM (kh*kw,) filter taps; x_ref: (BN, H, W); o_ref: (BN, OH, OW)."""
    oh = o_ref.shape[-2]
    ow = o_ref.shape[-1]
    x = x_ref[...]  # load the whole (BN, H, W) tile once

    # valid cross-correlation = sum over taps of shifted windows * scalar tap
    acc = x[:, 0:oh, 0:ow] * w_ref[0]
    for di in range(kh):
        for dj in range(kw):
            if di == 0 and dj == 0:
                continue
            acc = acc + x[:, di:di + oh, dj:dj + ow] * w_ref[di * kw + dj]

    o_ref[...] = acc * inv_resol


# ----------------------------------------------------------------------------
# Wrapper
# ----------------------------------------------------------------------------
def conv2d_derivative(x, der_filter, resol, *, block_n=None):
    """x: (N, 1, H, W) float32; der_filter: (1, 1, kh, kw) (or (kh, kw)); resol: float.

    Returns (N, 1, H-kh+1, W-kw+1) float32 = conv2d_valid(x, filter) / resol.
    """
    x = jnp.asarray(x, jnp.float32)
    w = jnp.asarray(der_filter, jnp.float32)
    kh, kw = int(w.shape[-2]), int(w.shape[-1])
    w_flat = w.reshape(kh * kw)

    N, C, H, W = x.shape
    assert C == 1, "Conv2dDerivative is single-channel"
    OH, OW = H - kh + 1, W - kw + 1
    assert OH > 0 and OW > 0, "image smaller than the derivative filter"

    # Largest batch block that fits a conservative VMEM budget (double-buffered).
    if block_n is None:
        per_img_bytes = (H * W + OH * OW) * 4
        budget = 8 * 1024 * 1024  # conservative; leaves headroom on v7x's 64 MiB VMEM
        block_n = max(1, min(N, budget // (2 * per_img_bytes)))

    # Pad N up to a multiple of block_n (no silent tail drop), slice afterwards.
    n_pad = (-N) % block_n
    x3 = x.reshape(N, H, W)
    if n_pad:
        x3 = jnp.concatenate([x3, jnp.zeros((n_pad, H, W), x3.dtype)], axis=0)
    n_total = N + n_pad

    kern = functools.partial(
        _conv_deriv_kernel, kh=kh, kw=kw, inv_resol=1.0 / float(resol)
    )

    out = pl.pallas_call(
        kern,
        out_shape=jax.ShapeDtypeStruct((n_total, OH, OW), jnp.float32),
        grid=(n_total // block_n,),
        in_specs=[
            pl.BlockSpec(memory_space=pltpu.MemorySpace.SMEM),      # filter taps
            pl.BlockSpec((block_n, H, W), lambda i: (i, 0, 0)),     # image tile
        ],
        out_specs=pl.BlockSpec((block_n, OH, OW), lambda i: (i, 0, 0)),
        compiler_params=pltpu.CompilerParams(
            dimension_semantics=("parallel",),
        ),
    )(w_flat, x3)

    return out[:N].reshape(N, 1, OH, OW)


# ----------------------------------------------------------------------------
# Pure-JAX reference (lax.conv) for a correctness check
# ----------------------------------------------------------------------------
def _ref_conv2d_derivative(x, der_filter, resol):
    w = jnp.asarray(der_filter, jnp.float32)
    kh, kw = int(w.shape[-2]), int(w.shape[-1])
    w = w.reshape(1, 1, kh, kw)
    y = jax.lax.conv(jnp.asarray(x, jnp.float32), w, (1, 1), "VALID")  # NCHW / OIHW
    return y / float(resol)


# ----------------------------------------------------------------------------
if __name__ == "__main__":
    key = jax.random.PRNGKey(0)

    # Small, deterministic example. H = W = 130 so the output spatial dims are
    # 128 x 128 (lane-dense stores on the 128-lane axis).
    N, C, H, W = 2, 1, 130, 130
    x = jax.random.normal(key, (N, C, H, W), dtype=jnp.float32)

    # Classic central-difference Laplace filter, as typically passed to
    # Conv2dDerivative(DerFilter, resol=dx**2, kernel_size=3).
    der_filter = [[[[0.0, 1.0, 0.0],
                    [1.0, -4.0, 1.0],
                    [0.0, 1.0, 0.0]]]]
    dx = 0.1
    resol = dx ** 2

    out = conv2d_derivative(x, der_filter, resol)
    out = jax.block_until_ready(out)

    ref = _ref_conv2d_derivative(x, der_filter, resol)
    assert out.shape == (N, 1, H - 3 + 1, W - 3 + 1)
    assert jnp.allclose(out, ref, rtol=1e-5, atol=1e-3), "mismatch vs JAX reference"

    print("KERNEL_OK")
</pallas_src>

<mosaic_0001>
module attributes {stable_mosaic.version = 11 : i64} {
  func.func @_conv_deriv_kernel(%arg0: i32, %arg1: memref<9xf32, #tpu.memory_space<smem>>, %arg2: memref<2x130x130xf32, #tpu.memory_space<vmem>>, %arg3: memref<2x128x128xf32, #tpu.memory_space<vmem>>) attributes {dimension_semantics = [#tpu.dimension_semantics<parallel>], iteration_bounds = array<i64: 1>, scalar_prefetch = 0 : i64, scratch_operands = 0 : i64, tpu.core_type = #tpu.core_type<tc>, window_params = [{transform_indices = @transform_0, window_bounds = array<i64: 9>}, {transform_indices = @transform_1, window_bounds = array<i64: 2, 130, 130>}, {transform_indices = @transform_2, window_bounds = array<i64: 2, 128, 128>}]} {
    %c0 = arith.constant 0 : index
    %c0_0 = arith.constant 0 : index
    %c0_1 = arith.constant 0 : index
    %0 = vector.load %arg2[%c0, %c0_0, %c0_1] : memref<2x130x130xf32, #tpu.memory_space<vmem>>, vector<2x130x130xf32>
    %1 = vector.extract_strided_slice %0 {offsets = [0, 0, 0], sizes = [2, 128, 128], strides = [1, 1, 1]} : vector<2x130x130xf32> to vector<2x128x128xf32>
    %c0_2 = arith.constant 0 : index
    %2 = memref.load %arg1[%c0_2] : memref<9xf32, #tpu.memory_space<smem>>
    %3 = vector.broadcast %2 : f32 to vector<2x128x128xf32>
    %4 = arith.mulf %1, %3 : vector<2x128x128xf32>
    %5 = vector.extract_strided_slice %0 {offsets = [0, 0, 1], sizes = [2, 128, 128], strides = [1, 1, 1]} : vector<2x130x130xf32> to vector<2x128x128xf32>
    %c1 = arith.constant 1 : index
    %6 = memref.load %arg1[%c1] : memref<9xf32, #tpu.memory_space<smem>>
    %7 = vector.broadcast %6 : f32 to vector<2x128x128xf32>
    %8 = arith.mulf %5, %7 : vector<2x128x128xf32>
    %9 = arith.addf %4, %8 : vector<2x128x128xf32>
    %10 = vector.extract_strided_slice %0 {offsets = [0, 0, 2], sizes = [2, 128, 128], strides = [1, 1, 1]} : vector<2x130x130xf32> to vector<2x128x128xf32>
    %c2 = arith.constant 2 : index
    %11 = memref.load %arg1[%c2] : memref<9xf32, #tpu.memory_space<smem>>
    %12 = vector.broadcast %11 : f32 to vector<2x128x128xf32>
    %13 = arith.mulf %10, %12 : vector<2x128x128xf32>
    %14 = arith.addf %9, %13 : vector<2x128x128xf32>
    %15 = vector.extract_strided_slice %0 {offsets = [0, 1, 0], sizes = [2, 128, 128], strides = [1, 1, 1]} : vector<2x130x130xf32> to vector<2x128x128xf32>
    %c3 = arith.constant 3 : index
    %16 = memref.load %arg1[%c3] : memref<9xf32, #tpu.memory_space<smem>>
    %17 = vector.broadcast %16 : f32 to vector<2x128x128xf32>
    %18 = arith.mulf %15, %17 : vector<2x128x128xf32>
    %19 = arith.addf %14, %18 : vector<2x128x128xf32>
    %20 = vector.extract_strided_slice %0 {offsets = [0, 1, 1], sizes = [2, 128, 128], strides = [1, 1, 1]} : vector<2x130x130xf32> to vector<2x128x128xf32>
    %c4 = arith.constant 4 : index
    %21 = memref.load %arg1[%c4] : memref<9xf32, #tpu.memory_space<smem>>
    %22 = vector.broadcast %21 : f32 to vector<2x128x128xf32>
    %23 = arith.mulf %20, %22 : vector<2x128x128xf32>
    %24 = arith.addf %19, %23 : vector<2x128x128xf32>
    %25 = vector.extract_strided_slice %0 {offsets = [0, 1, 2], sizes = [2, 128, 128], strides = [1, 1, 1]} : vector<2x130x130xf32> to vector<2x128x128xf32>
    %c5 = arith.constant 5 : index
    %26 = memref.load %arg1[%c5] : memref<9xf32, #tpu.memory_space<smem>>
    %27 = vector.broadcast %26 : f32 to vector<2x128x128xf32>
    %28 = arith.mulf %25, %27 : vector<2x128x128xf32>
    %29 = arith.addf %24, %28 : vector<2x128x128xf32>
    %30 = vector.extract_strided_slice %0 {offsets = [0, 2, 0], sizes = [2, 128, 128], strides = [1, 1, 1]} : vector<2x130x130xf32> to vector<2x128x128xf32>
    %c6 = arith.constant 6 : index
    %31 = memref.load %arg1[%c6] : memref<9xf32, #tpu.memory_space<smem>>
    %32 = vector.broadcast %31 : f32 to vector<2x128x128xf32>
    %33 = arith.mulf %30, %32 : vector<2x128x128xf32>
    %34 = arith.addf %29, %33 : vector<2x128x128xf32>
    %35 = vector.extract_strided_slice %0 {offsets = [0, 2, 1], sizes = [2, 128, 128], strides = [1, 1, 1]} : vector<2x130x130xf32> to vector<2x128x128xf32>
    %c7 = arith.constant 7 : index
    %36 = memref.load %arg1[%c7] : memref<9xf32, #tpu.memory_space<smem>>
    %37 = vector.broadcast %36 : f32 to vector<2x128x128xf32>
    %38 = arith.mulf %35, %37 : vector<2x128x128xf32>
    %39 = arith.addf %34, %38 : vector<2x128x128xf32>
    %40 = vector.extract_strided_slice %0 {offsets = [0, 2, 2], sizes = [2, 128, 128], strides = [1, 1, 1]} : vector<2x130x130xf32> to vector<2x128x128xf32>
    %c8 = arith.constant 8 : index
    %41 = memref.load %arg1[%c8] : memref<9xf32, #tpu.memory_space<smem>>
    %42 = vector.broadcast %41 : f32 to vector<2x128x128xf32>
    %43 = arith.mulf %40, %42 : vector<2x128x128xf32>
    %44 = arith.addf %39, %43 : vector<2x128x128xf32>
    %cst = arith.constant 1.000000e+02 : f32
    %45 = vector.broadcast %cst : f32 to vector<2x128x128xf32>
    %46 = arith.mulf %44, %45 : vector<2x128x128xf32>
    %c0_3 = arith.constant 0 : index
    %c0_4 = arith.constant 0 : index
    %c0_5 = arith.constant 0 : index
    %47 = vector.load %arg3[%c0_3, %c0_4, %c0_5] : memref<2x128x128xf32, #tpu.memory_space<vmem>>, vector<2x128x128xf32>
    tpu.vector_store %arg3[%c0_3, %c0_4, %c0_5], %46 {strides = array<i32>} : memref<2x128x128xf32, #tpu.memory_space<vmem>>, vector<2x128x128xf32>,
    return
  }
  func.func @transform_0(%arg0: i32) -> i32 {
    %c0_i32 = arith.constant 0 : i32
    %c0_i32_0 = arith.constant 0 : i32
    return %c0_i32 : i32
  }
  func.func @transform_1(%arg0: i32) -> (i32, i32, i32) {
    %c0_i32 = arith.constant 0 : i32
    %c0_i32_0 = arith.constant 0 : i32
    %c0_i32_1 = arith.constant 0 : i32
    return %arg0, %c0_i32, %c0_i32_0 : i32, i32, i32
  }
  func.func @transform_2(%arg0: i32) -> (i32, i32, i32) {
    %c0_i32 = arith.constant 0 : i32
    %c0_i32_0 = arith.constant 0 : i32
    %c0_i32_1 = arith.constant 0 : i32
    return %arg0, %c0_i32, %c0_i32_0 : i32, i32, i32
  }
}

</mosaic_0001>

<bundles_post_ra>
// kernel: tpu_custom_call.1
= control target key start
LH: loop header
LB: loop body
LE: loop exit
PB: predicated region body
PF: predicated region fallthrough
CT: control target
= control target key end

     0   :  { %7 = vsyncpa [#allocation4], 0  ;;  %s7778_s0 = inlined_call_operand.vmem [shape: f32[9], index: 0, kind: input, shape index: {}]   ;;  %s7779_s1 = inlined_call_operand.vmem [shape: f32[2,130,130], index: 1, kind: input, shape index: {}]   ;;  %s7780_s2 = inlined_call_operand.hbm [shape: f32[2,128,128], index: 2, kind: output, shape index: {}]  }
   0x1   :  { %8 = vsyncpa [#allocation3], 0  ;;  %s15_s11 = sshll.u32 %s7778_s0, 4  ;;  %s16_s11 = int_to_ptr.vmem [resolvable:$true] %s15_s11 }
   0x2   :  { %s3475_s12 = scalar_lea.vmem %s16_s11, 16  ;;  %p3480_p1 = scmp.lt.s32.totalorder %s16_s11, %s16_s11 }
   0x3   :  { %p3476_p0 = scmp.ne.s32.totalorder %s16_s11, %s3475_s12  ;;  %p3481_p2 = scmp.lt.s32.totalorder %s3475_s12, %s3475_s12 }
   0x5   :  { %p3482_p3 = por %p3481_p2, %p3480_p1 }
   0x7   :  { %p3483_p4 = pnand %p3482_p3, %p3476_p0 }
   0x9   :  { %3486 = shalt.err (!%p3483_p4)
}
   0xa   :  { %s3513_s13 = smov [#allocation2]  }
   0xb   :  { %18 = dma.vmem_to_smem %s16_s11, 16, %s3513_s13, [#allocation4]  }
   0xc   :  { %3509 = dma.done.wait [#allocation4], 16  }
   0xd   :  { %3510 = vsyncadd [#allocation4], 4294967280 }
   0xe   :  { %24 = sfence }
   0xf   :  { %s3296_s14 = sld [smem:[#allocation2 + $0x1]]  ;;  %v3540_v0 = vld [vmem:[%s7779_s1 + $0x10] sm:$0xff]  ;;  %v3545_v1 = vld [vmem:[%s7779_s1] sm:$0xff]  ;;  %v3552_v3 = vld [vmem:[%s7779_s1 + $0x18] sm:$0xff]  ;;  %s3514_s22 = smov 127   ;;  %vm907_vm0 = vcmask 1046528  }
  0x10   :  { %v3557_v4 = vld [vmem:[%s7779_s1 + $0x8] sm:$0xff]  ;;  %v3577_v10 = vld [vmem:[%s7779_s1 + $0x20] sm:$0xff]  ;;  %v3588_v13 = vld [vmem:[%s7779_s1 + $0x38] sm:$0xff]  ;;  %s3297_s27 = sld [smem:[#allocation2 + $0x2]]  ;;  %s3515_s4 = smov 126   ;;  %vm2096_vm1 = vcmask 1045504  }
  0x11   :  { %v3572_v9 = vld [vmem:[%s7779_s1 + $0x28] sm:$0xff]  ;;  %v3593_v14 = vld [vmem:[%s7779_s1 + $0x30] sm:$0xff]  ;;  %v3609_v18 = vld [vmem:[%s7779_s1 + $0x40] sm:$0xff]  ;;  %s3299_s5 = sld [smem:[#allocation2 + $0x4]]  ;;  %s3300_s10 = sld [smem:[#allocation2 + $0x5]]  ;;  %vm385_vm2 = vcmask 1039360  }
  0x12   :  { %v3604_v17 = vld [vmem:[%s7779_s1 + $0x48] sm:$0xff]  ;;  %v3620_v21 = vld [vmem:[%s7779_s1 + $0x58] sm:$0xff]  ;;  %v3625_v22 = vld [vmem:[%s7779_s1 + $0x50] sm:$0xff]  ;;  %s3302_s3 = sld [smem:[#allocation2 + $0x7]]  ;;  %s3303_s13 = sld [smem:[#allocation2 + $0x8]]  ;;  %vm740_vm3 = vcmask 1031168  }
  0x13   :  { %v3636_v25 = vld [vmem:[%s7779_s1 + $0x68] sm:$0xff]  ;;  %v3641_v26 = vld [vmem:[%s7779_s1 + $0x60] sm:$0xff]  ;;  %v3652_v29 = vld [vmem:[%s7779_s1 + $0x78] sm:$0xff]  ;;  %s6017_s15 = sld [smem:[#allocation2 + $0x3]]  ;;  %s6927_s17 = sld [smem:[#allocation2 + $0x6]] }
  0x14   :  { %v3657_v30 = vld [vmem:[%s7779_s1 + $0x70] sm:$0xff]  ;;  %v3668_v33 = vld [vmem:[%s7779_s1 + $0x88] sm:$0xff]  ;;  %v3673_v34 = vld [vmem:[%s7779_s1 + $0x80] sm:$0xff] }
  0x15   :  { %v3547_v2 = vstv %s3296_s14  ;;  %v3684_v37 = vld [vmem:[%s7779_s1 + $0x98] sm:$0xff]  ;;  %v3689_v38 = vld [vmem:[%s7779_s1 + $0x90] sm:$0xff]  ;;  %v3700_v41 = vld [vmem:[%s7779_s1 + $0xa8] sm:$0xff] }
  0x16   :  { %v131_v5 = vmul.f32 %v3547_v2, %v3540_v0  ;;  %v129_v6 = vmul.f32 %v3547_v2, %v3545_v1  ;;  %v132_v7 = vmul.f32 %v3547_v2, %v3552_v3  ;;  %v130_v8 = vmul.f32 %v3547_v2, %v3557_v4  ;;  %v3705_v42 = vld [vmem:[%s7779_s1 + $0xa0] sm:$0xff]  ;;  %v3716_v45 = vld [vmem:[%s7779_s1 + $0xb8] sm:$0xff]  ;;  %v3721_v46 = vld [vmem:[%s7779_s1 + $0xb0] sm:$0xff] }
  0x17   :  { %v134_v11 = vmul.f32 %v3547_v2, %v3572_v9  ;;  %v133_v12 = vmul.f32 %v3547_v2, %v3577_v10  ;;  %v136_v15 = vmul.f32 %v3547_v2, %v3588_v13  ;;  %v135_v16 = vmul.f32 %v3547_v2, %v3593_v14  ;;  %v3732_v49 = vld [vmem:[%s7779_s1 + $0xc8] sm:$0xff]  ;;  %v3737_v50 = vld [vmem:[%s7779_s1 + $0xc0] sm:$0xff]  ;;  %v3748_v53 = vld [vmem:[%s7779_s1 + $0xd8] sm:$0xff] }
  0x18   :  { %261 = vrot.lane.b32.xlu1 %v131_v5, %s3514_s22  ;;  %257 = vrot.lane.b32.xlu0 %v129_v6, %s3514_s22  ;;  %v138_v19 = vmul.f32 %v3547_v2, %v3604_v17  ;;  %v137_v20 = vmul.f32 %v3547_v2, %v3609_v18  ;;  %v140_v23 = vmul.f32 %v3547_v2, %v3620_v21  ;;  %v3753_v54 = vld [vmem:[%s7779_s1 + $0xd0] sm:$0xff]  ;;  %v3764_v57 = vld [vmem:[%s7779_s1 + $0xe8] sm:$0xff] }
  0x19   :  { %v139_v24 = vmul.f32 %v3547_v2, %v3625_v22  ;;  %v142_v27 = vmul.f32 %v3547_v2, %v3636_v25  ;;  %v141_v28 = vmul.f32 %v3547_v2, %v3641_v26  ;;  %v144_v31 = vmul.f32 %v3547_v2, %v3652_v29  ;;  %v3769_v58 = vld [vmem:[%s7779_s1 + $0xe0] sm:$0xff]  ;;  %v3780_v61 = vld [vmem:[%s7779_s1 + $0xf8] sm:$0xff]  ;;  %v3785_v62 = vld [vmem:[%s7779_s1 + $0xf0] sm:$0xff] }
  0x1a   :  { %v143_v32 = vmul.f32 %v3547_v2, %v3657_v30  ;;  %v146_v35 = vmul.f32 %v3547_v2, %v3668_v33  ;;  %v145_v36 = vmul.f32 %v3547_v2, %v3673_v34  ;;  %v148_v39 = vmul.f32 %v3547_v2, %v3684_v37  ;;  %v3796_v6 = vld [vmem:[%s7779_s1 + $0x118] sm:$0xff] }
  0x1b   :  { %v147_v40 = vmul.f32 %v3547_v2, %v3689_v38  ;;  %v150_v43 = vmul.f32 %v3547_v2, %v3700_v41  ;;  %v149_v44 = vmul.f32 %v3547_v2, %v3705_v42  ;;  %v152_v47 = vmul.f32 %v3547_v2, %v3716_v45 }
  0x1c   :  { %263 = vrot.lane.b32.xlu1 %v132_v7, %s3514_s22  ;;  %259 = vrot.lane.b32.xlu0 %v130_v8, %s3514_s22  ;;  %v151_v48 = vmul.f32 %v3547_v2, %v3721_v46  ;;  %v154_v51 = vmul.f32 %v3547_v2, %v3732_v49  ;;  %v153_v52 = vmul.f32 %v3547_v2, %v3737_v50  ;;  %v3801_v7 = vld [vmem:[%s7779_s1 + $0x110] sm:$0xff] }
  0x1d   :  { %v156_v55 = vmul.f32 %v3547_v2, %v3748_v53  ;;  %v155_v56 = vmul.f32 %v3547_v2, %v3753_v54  ;;  %v158_v59 = vmul.f32 %v3547_v2, %v3764_v57  ;;  %v157_v60 = vmul.f32 %v3547_v2, %v3769_v58 }
  0x1e   :  { %v160_v63 = vmul.f32 %v3547_v2, %v3780_v61  ;;  %v159_v5 = vmul.f32 %v3547_v2, %v3785_v62  ;;  %v162_v8 = vmul.f32 %v3547_v2, %v3796_v6 }
  0x20   :  { %267 = vrot.lane.b32.xlu1 %v134_v11, %s3514_s22  ;;  %265 = vrot.lane.b32.xlu0 %v133_v12, %s3514_s22  ;;  %v161_v11 = vmul.f32 %v3547_v2, %v3801_v7  ;;  %v3812_v12 = vld [vmem:[%s7779_s1 + $0x128] sm:$0xff] }
  0x24   :  { %271 = vrot.lane.b32.xlu1 %v136_v15, %s3514_s22  ;;  %269 = vrot.lane.b32.xlu0 %v135_v16, %s3514_s22  ;;  %v3817_v15 = vld [vmem:[%s7779_s1 + $0x120] sm:$0xff]  ;;  %v164_v16 = vmul.f32 %v3547_v2, %v3812_v12 }
  0x28   :  { %275 = vrot.lane.b32.xlu1 %v138_v19, %s3514_s22  ;;  %273 = vrot.lane.b32.xlu0 %v137_v20, %s3514_s22  ;;  %v163_v19 = vmul.f32 %v3547_v2, %v3817_v15  ;;  %v3828_v20 = vld [vmem:[%s7779_s1 + $0x138] sm:$0xff] }
  0x2c   :  { %279 = vrot.lane.b32.xlu1 %v140_v23, %s3514_s22  ;;  %277 = vrot.lane.b32.xlu0 %v139_v24, %s3514_s22  ;;  %v3833_v23 = vld [vmem:[%s7779_s1 + $0x130] sm:$0xff]  ;;  %v166_v24 = vmul.f32 %v3547_v2, %v3828_v20 }
  0x30   :  { %283 = vrot.lane.b32.xlu1 %v142_v27, %s3514_s22  ;;  %281 = vrot.lane.b32.xlu0 %v141_v28, %s3514_s22  ;;  %v165_v27 = vmul.f32 %v3547_v2, %v3833_v23  ;;  %v3844_v28 = vld [vmem:[%s7779_s1 + $0x148] sm:$0xff] }
  0x34   :  { %287 = vrot.lane.b32.xlu1 %v144_v31, %s3514_s22  ;;  %285 = vrot.lane.b32.xlu0 %v143_v32, %s3514_s22  ;;  %v3849_v31 = vld [vmem:[%s7779_s1 + $0x140] sm:$0xff]  ;;  %v168_v32 = vmul.f32 %v3547_v2, %v3844_v28 }
  0x38   :  { %291 = vrot.lane.b32.xlu1 %v146_v35, %s3514_s22  ;;  %289 = vrot.lane.b32.xlu0 %v145_v36, %s3514_s22  ;;  %v167_v35 = vmul.f32 %v3547_v2, %v3849_v31  ;;  %v3860_v36 = vld [vmem:[%s7779_s1 + $0x158] sm:$0xff] }
  0x3c   :  { %295 = vrot.lane.b32.xlu1 %v148_v39, %s3514_s22  ;;  %293 = vrot.lane.b32.xlu0 %v147_v40, %s3514_s22  ;;  %v3865_v39 = vld [vmem:[%s7779_s1 + $0x150] sm:$0xff]  ;;  %v170_v40 = vmul.f32 %v3547_v2, %v3860_v36 }
  0x40   :  { %299 = vrot.lane.b32.xlu1 %v150_v43, %s3514_s22  ;;  %297 = vrot.lane.b32.xlu0 %v149_v44, %s3514_s22  ;;  %v169_v43 = vmul.f32 %v3547_v2, %v3865_v39  ;;  %v3876_v44 = vld [vmem:[%s7779_s1 + $0x168] sm:$0xff] }
  0x44   :  { %303 = vrot.lane.b32.xlu1 %v152_v47, %s3514_s22  ;;  %301 = vrot.lane.b32.xlu0 %v151_v48, %s3514_s22  ;;  %v3881_v47 = vld [vmem:[%s7779_s1 + $0x160] sm:$0xff]  ;;  %v172_v48 = vmul.f32 %v3547_v2, %v3876_v44 }
  0x48   :  { %307 = vrot.lane.b32.xlu1 %v154_v51, %s3514_s22  ;;  %305 = vrot.lane.b32.xlu0 %v153_v52, %s3514_s22  ;;  %v171_v51 = vmul.f32 %v3547_v2, %v3881_v47  ;;  %v3892_v52 = vld [vmem:[%s7779_s1 + $0x178] sm:$0xff] }
  0x4c   :  { %311 = vrot.lane.b32.xlu1 %v156_v55, %s3514_s22  ;;  %309 = vrot.lane.b32.xlu0 %v155_v56, %s3514_s22  ;;  %v3897_v55 = vld [vmem:[%s7779_s1 + $0x170] sm:$0xff]  ;;  %v174_v56 = vmul.f32 %v3547_v2, %v3892_v52 }
  0x50   :  { %315 = vrot.lane.b32.xlu1 %v158_v59, %s3514_s22  ;;  %313 = vrot.lane.b32.xlu0 %v157_v60, %s3514_s22  ;;  %v173_v59 = vmul.f32 %v3547_v2, %v3897_v55  ;;  %v3908_v60 = vld [vmem:[%s7779_s1 + $0x188] sm:$0xff] }
  0x54   :  { %319 = vrot.lane.b32.xlu1 %v160_v63, %s3514_s22  ;;  %317 = vrot.lane.b32.xlu0 %v159_v5, %s3514_s22  ;;  %v3913_v63 = vld [vmem:[%s7779_s1 + $0x180] sm:$0xff]  ;;  %v176_v5 = vmul.f32 %v3547_v2, %v3908_v60 }
  0x58   :  { %323 = vrot.lane.b32.xlu1 %v162_v8, %s3514_s22  ;;  %321 = vrot.lane.b32.xlu0 %v161_v11, %s3514_s22  ;;  %v175_v8 = vmul.f32 %v3547_v2, %v3913_v63  ;;  %v3924_v11 = vld [vmem:[%s7779_s1 + $0x198] sm:$0xff] }
  0x5c   :  { %327 = vrot.lane.b32.xlu1 %v164_v16, %s3514_s22  ;;  %325 = vrot.lane.b32.xlu0 %v163_v19, %s3514_s22  ;;  %v3929_v16 = vld [vmem:[%s7779_s1 + $0x190] sm:$0xff]  ;;  %v178_v19 = vmul.f32 %v3547_v2, %v3924_v11 }
  0x5d   :  { %7843 = vst [vmem:[#allocation8_spill] sm:$0xff] %v3929_v16 }
  0x60   :  { %331 = vrot.lane.b32.xlu1 %v166_v24, %s3514_s22  ;;  %329 = vrot.lane.b32.xlu0 %v165_v27, %s3514_s22  ;;  %v177_v24 = vmul.f32 %v3547_v2, %v3929_v16  ;;  %v3940_v27 = vld [vmem:[%s7779_s1 + $0x1a8] sm:$0xff] }
  0x61   :  { %7844 = vst [vmem:[#allocation9_spill] sm:$0xff] %v3940_v27 }
  0x64   :  { %335 = vrot.lane.b32.xlu1 %v168_v32, %s3514_s22  ;;  %333 = vrot.lane.b32.xlu0 %v167_v35, %s3514_s22  ;;  %v3945_v32 = vld [vmem:[%s7779_s1 + $0x1a0] sm:$0xff]  ;;  %v180_v35 = vmul.f32 %v3547_v2, %v3940_v27 }
  0x65   :  { %7845 = vst [vmem:[#allocation10_spill] sm:$0xff] %v3945_v32 }
  0x68   :  { %339 = vrot.lane.b32.xlu1 %v170_v40, %s3514_s22  ;;  %337 = vrot.lane.b32.xlu0 %v169_v43, %s3514_s22  ;;  %v179_v40 = vmul.f32 %v3547_v2, %v3945_v32  ;;  %v3956_v43 = vld [vmem:[%s7779_s1 + $0x1b8] sm:$0xff] }
  0x69   :  { %7846 = vst [vmem:[#allocation11_spill] sm:$0xff] %v3956_v43 }
  0x6c   :  { %343 = vrot.lane.b32.xlu1 %v172_v48, %s3514_s22  ;;  %341 = vrot.lane.b32.xlu0 %v171_v51, %s3514_s22  ;;  %v3961_v48 = vld [vmem:[%s7779_s1 + $0x1b0] sm:$0xff]  ;;  %v182_v51 = vmul.f32 %v3547_v2, %v3956_v43 }
  0x6d   :  { %7847 = vst [vmem:[#allocation12_spill] sm:$0xff] %v3961_v48 }
  0x70   :  { %347 = vrot.lane.b32.xlu1 %v174_v56, %s3514_s22  ;;  %345 = vrot.lane.b32.xlu0 %v173_v59, %s3514_s22  ;;  %v181_v56 = vmul.f32 %v3547_v2, %v3961_v48  ;;  %v3972_v59 = vld [vmem:[%s7779_s1 + $0x1c8] sm:$0xff] }
  0x71   :  { %7848 = vst [vmem:[#allocation13_spill] sm:$0xff] %v3972_v59 }
  0x74   :  { %351 = vrot.lane.b32.xlu1 %v176_v5, %s3514_s22  ;;  %349 = vrot.lane.b32.xlu0 %v175_v8, %s3514_s22  ;;  %v3977_v5 = vld [vmem:[%s7779_s1 + $0x1c0] sm:$0xff]  ;;  %v184_v8 = vmul.f32 %v3547_v2, %v3972_v59  ;;  %v4040_v59 = vld [vmem:[%s7779_s1 + $0x208] sm:$0xff] }
  0x75   :  { %7849 = vst [vmem:[#allocation14_spill] sm:$0xff] %v3977_v5 }
  0x78   :  { %355 = vrot.lane.b32.xlu1 %v178_v19, %s3514_s22  ;;  %353 = vrot.lane.b32.xlu0 %v177_v24, %s3514_s22  ;;  %v183_v19 = vmul.f32 %v3547_v2, %v3977_v5  ;;  %v3988_v24 = vld [vmem:[%s7779_s1 + $0x1d8] sm:$0xff]  ;;  %v4009_v5 = vld [vmem:[%s7779_s1 + $0x1e0] sm:$0xff] }
  0x79   :  { %7850 = vst [vmem:[#allocation15_spill] sm:$0xff] %v3988_v24  ;;  %7853 = vst [vmem:[#allocation18_spill] sm:$0xff] %v4009_v5 }
  0x7c   :  { %359 = vrot.lane.b32.xlu1 %v180_v35, %s3514_s22  ;;  %357 = vrot.lane.b32.xlu0 %v179_v40, %s3514_s22  ;;  %v3993_v35 = vld [vmem:[%s7779_s1 + $0x1d0] sm:$0xff]  ;;  %v186_v40 = vmul.f32 %v3547_v2, %v3988_v24 }
  0x7d   :  { %7851 = vst [vmem:[#allocation16_spill] sm:$0xff] %v3993_v35  ;;  %v4025_v24 = vld [vmem:[%s7779_s1 + $0x1f0] sm:$0xff] }
  0x7e   :  { %7855 = vst [vmem:[#allocation20_spill] sm:$0xff] %v4025_v24 }
  0x80   :  { %363 = vrot.lane.b32.xlu1 %v182_v51, %s3514_s22  ;;  %361 = vrot.lane.b32.xlu0 %v181_v56, %s3514_s22  ;;  %v185_v51 = vmul.f32 %v3547_v2, %v3993_v35  ;;  %v4004_v56 = vld [vmem:[%s7779_s1 + $0x1e8] sm:$0xff]  ;;  %v4020_v35 = vld [vmem:[%s7779_s1 + $0x1f8] sm:$0xff] }
  0x81   :  { %7852 = vst [vmem:[#allocation17_spill] sm:$0xff] %v4004_v56  ;;  %7854 = vst [vmem:[#allocation19_spill] sm:$0xff] %v4020_v35 }
  0x84   :  { %367 = vrot.lane.b32.xlu1 %v184_v8, %s3514_s22  ;;  %365 = vrot.lane.b32.xlu0 %v183_v19, %s3514_s22  ;;  %v188_v8 = vmul.f32 %v3547_v2, %v4004_v56  ;;  %v187_v19 = vmul.f32 %v3547_v2, %v4009_v5  ;;  %v190_v5 = vmul.f32 %v3547_v2, %v4020_v35  ;;  %v4057_v35 = vstv %s3297_s27 }
  0x85   :  { %v189_v56 = vmul.f32 %v3547_v2, %v4025_v24 }
  0x88   :  { %371 = vrot.lane.b32.xlu1 %v186_v40, %s3514_s22  ;;  %369 = vrot.lane.b32.xlu0 %v185_v51, %s3514_s22 }
  0x8a   :  { %v4027_v40 = vpop.permute.xlu1 %261  ;;  %v4029_v51 = vpop.permute.xlu0 %257 }
  0x8b   :  { %7856 = vst [vmem:[#allocation21_spill] sm:$0xff] %v4027_v40  ;;  %7857 = vst [vmem:[#allocation22_spill] sm:$0xff] %v4029_v51  ;;  %v4045_v40 = vld [vmem:[%s7779_s1 + $0x200] sm:$0xff] }
  0x8c   :  { %375 = vrot.lane.b32.xlu1 %v188_v8, %s3514_s22  ;;  %373 = vrot.lane.b32.xlu0 %v187_v19, %s3514_s22  ;;  %v192_v19 = vmul.f32 %v3547_v2, %v4040_v59  ;;  %v191_v24 = vmul.f32 %v3547_v2, %v4045_v40  ;;  %v487_v2 = vmul.f32 %v4057_v35, %v3552_v3 }
  0x8e   :  { %v4047_v51 = vpop.permute.xlu1 %263  ;;  %v4049_v8 = vpop.permute.xlu0 %259 }
  0x8f   :  { %7858 = vst [vmem:[#allocation23_spill] sm:$0xff] %v4047_v51  ;;  %7859 = vst [vmem:[#allocation24_spill] sm:$0xff] %v4049_v8 }
  0x90   :  { %379 = vrot.lane.b32.xlu1 %v190_v5, %s3514_s22  ;;  %377 = vrot.lane.b32.xlu0 %v189_v56, %s3514_s22  ;;  %v485_v5 = vmul.f32 %v4057_v35, %v3557_v4  ;;  %v484_v56 = vmul.f32 %v4057_v35, %v3545_v1 }
  0x92   :  { %v4059_v48 = vpop.permute.xlu1 %267  ;;  %v4061_v43 = vpop.permute.xlu0 %265 }
  0x93   :  { %7860 = vst [vmem:[#allocation25_spill] sm:$0xff] %v4059_v48  ;;  %7861 = vst [vmem:[#allocation26_spill] sm:$0xff] %v4061_v43 }
  0x94   :  { %383 = vrot.lane.b32.xlu1 %v192_v19, %s3514_s22  ;;  %381 = vrot.lane.b32.xlu0 %v191_v24, %s3514_s22  ;;  %v486_v24 = vmul.f32 %v4057_v35, %v3540_v0 }
  0x96   :  { %v4069_v8 = vpop.permute.xlu1 %271  ;;  %v4071_v51 = vpop.permute.xlu0 %269 }
  0x97   :  { %7862 = vst [vmem:[#allocation27_spill] sm:$0xff] %v4069_v8  ;;  %7863 = vst [vmem:[#allocation28_spill] sm:$0xff] %v4071_v51  ;;  %v489_v51 = vmul.f32 %v4057_v35, %v3572_v9 }
  0x98   :  { %614 = vrot.lane.b32.xlu1 %v485_v5, %s3515_s4  ;;  %612 = vrot.lane.b32.xlu0 %v484_v56, %s3515_s4  ;;  %v488_v5 = vmul.f32 %v4057_v35, %v3577_v10 }
  0x9a   :  { %v4079_v19 = vpop.permute.xlu1 %275  ;;  %v4081_v43 = vpop.permute.xlu0 %273 }
  0x9b   :  { %7864 = vst [vmem:[#allocation29_spill] sm:$0xff] %v4079_v19  ;;  %7865 = vst [vmem:[#allocation30_spill] sm:$0xff] %v4081_v43  ;;  %v491_v43 = vmul.f32 %v4057_v35, %v3588_v13 }
  0x9c   :  { %618 = vrot.lane.b32.xlu1 %v487_v2, %s3515_s4  ;;  %616 = vrot.lane.b32.xlu0 %v486_v24, %s3515_s4  ;;  %v490_v2 = vmul.f32 %v4057_v35, %v3593_v14 }
  0x9e   :  { %v4089_v56 = vpop.permute.xlu1 %279  ;;  %v4091_v8 = vpop.permute.xlu0 %277 }
  0x9f   :  { %7866 = vst [vmem:[#allocation31_spill] sm:$0xff] %v4089_v56  ;;  %7867 = vst [vmem:[#allocation32_spill] sm:$0xff] %v4091_v8  ;;  %v493_v8 = vmul.f32 %v4057_v35, %v3604_v17 }
  0xa0   :  { %622 = vrot.lane.b32.xlu1 %v489_v51, %s3515_s4  ;;  %620 = vrot.lane.b32.xlu0 %v488_v5, %s3515_s4  ;;  %v492_v51 = vmul.f32 %v4057_v35, %v3609_v18 }
  0xa2   :  { %v4099_v24 = vpop.permute.xlu1 %283  ;;  %v4101_v19 = vpop.permute.xlu0 %281 }
  0xa3   :  { %7868 = vst [vmem:[#allocation33_spill] sm:$0xff] %v4099_v24  ;;  %7869 = vst [vmem:[#allocation34_spill] sm:$0xff] %v4101_v19  ;;  %v495_v19 = vmul.f32 %v4057_v35, %v3620_v21 }
  0xa4   :  { %626 = vrot.lane.b32.xlu1 %v491_v43, %s3515_s4  ;;  %624 = vrot.lane.b32.xlu0 %v490_v2, %s3515_s4  ;;  %v494_v43 = vmul.f32 %v4057_v35, %v3625_v22 }
  0xa6   :  { %v4109_v5 = vpop.permute.xlu1 %287  ;;  %v4111_v56 = vpop.permute.xlu0 %285 }
  0xa7   :  { %7870 = vst [vmem:[#allocation35_spill] sm:$0xff] %v4109_v5  ;;  %7871 = vst [vmem:[#allocation36_spill] sm:$0xff] %v4111_v56  ;;  %v497_v56 = vmul.f32 %v4057_v35, %v3636_v25 }
  0xa8   :  { %630 = vrot.lane.b32.xlu1 %v493_v8, %s3515_s4  ;;  %628 = vrot.lane.b32.xlu0 %v492_v51, %s3515_s4  ;;  %v496_v8 = vmul.f32 %v4057_v35, %v3641_v26 }
  0xaa   :  { %v4119_v2 = vpop.permute.xlu1 %291  ;;  %v4121_v24 = vpop.permute.xlu0 %289 }
  0xab   :  { %7872 = vst [vmem:[#allocation37_spill] sm:$0xff] %v4119_v2  ;;  %7873 = vst [vmem:[#allocation38_spill] sm:$0xff] %v4121_v24  ;;  %v499_v24 = vmul.f32 %v4057_v35, %v3652_v29 }
  0xac   :  { %634 = vrot.lane.b32.xlu1 %v495_v19, %s3515_s4  ;;  %632 = vrot.lane.b32.xlu0 %v494_v43, %s3515_s4  ;;  %v498_v19 = vmul.f32 %v4057_v35, %v3657_v30 }
  0xae   :  { %v4129_v51 = vpop.permute.xlu1 %295  ;;  %v4131_v5 = vpop.permute.xlu0 %293 }
  0xaf   :  { %7874 = vst [vmem:[#allocation39_spill] sm:$0xff] %v4129_v51  ;;  %7875 = vst [vmem:[#allocation40_spill] sm:$0xff] %v4131_v5  ;;  %v501_v5 = vmul.f32 %v4057_v35, %v3668_v33 }
  0xb0   :  { %638 = vrot.lane.b32.xlu1 %v497_v56, %s3515_s4  ;;  %636 = vrot.lane.b32.xlu0 %v496_v8, %s3515_s4  ;;  %v500_v56 = vmul.f32 %v4057_v35, %v3673_v34 }
  0xb2   :  { %v4139_v43 = vpop.permute.xlu1 %299  ;;  %v4141_v2 = vpop.permute.xlu0 %297 }
  0xb3   :  { %7876 = vst [vmem:[#allocation41_spill] sm:$0xff] %v4139_v43  ;;  %7877 = vst [vmem:[#allocation42_spill] sm:$0xff] %v4141_v2  ;;  %v503_v2 = vmul.f32 %v4057_v35, %v3684_v37 }
  0xb4   :  { %642 = vrot.lane.b32.xlu1 %v499_v24, %s3515_s4  ;;  %640 = vrot.lane.b32.xlu0 %v498_v19, %s3515_s4  ;;  %v502_v24 = vmul.f32 %v4057_v35, %v3689_v38 }
  0xb6   :  { %v4149_v8 = vpop.permute.xlu1 %303  ;;  %v4151_v51 = vpop.permute.xlu0 %301 }
  0xb7   :  { %7878 = vst [vmem:[#allocation43_spill] sm:$0xff] %v4149_v8  ;;  %7879 = vst [vmem:[#allocation44_spill] sm:$0xff] %v4151_v51  ;;  %v505_v51 = vmul.f32 %v4057_v35, %v3700_v41 }
  0xb8   :  { %646 = vrot.lane.b32.xlu1 %v501_v5, %s3515_s4  ;;  %644 = vrot.lane.b32.xlu0 %v500_v56, %s3515_s4  ;;  %v504_v5 = vmul.f32 %v4057_v35, %v3705_v42 }
  0xba   :  { %v4159_v19 = vpop.permute.xlu1 %307  ;;  %v4161_v43 = vpop.permute.xlu0 %305 }
  0xbb   :  { %7880 = vst [vmem:[#allocation45_spill] sm:$0xff] %v4159_v19  ;;  %7881 = vst [vmem:[#allocation46_spill] sm:$0xff] %v4161_v43  ;;  %v507_v43 = vmul.f32 %v4057_v35, %v3716_v45 }
  0xbc   :  { %650 = vrot.lane.b32.xlu1 %v503_v2, %s3515_s4  ;;  %648 = vrot.lane.b32.xlu0 %v502_v24, %s3515_s4  ;;  %v506_v2 = vmul.f32 %v4057_v35, %v3721_v46 }
  0xbe   :  { %v4169_v56 = vpop.permute.xlu1 %311  ;;  %v4171_v8 = vpop.permute.xlu0 %309 }
  0xbf   :  { %7882 = vst [vmem:[#allocation47_spill] sm:$0xff] %v4169_v56  ;;  %7883 = vst [vmem:[#allocation48_spill] sm:$0xff] %v4171_v8  ;;  %v509_v8 = vmul.f32 %v4057_v35, %v3732_v49 }
  0xc0   :  { %654 = vrot.lane.b32.xlu1 %v505_v51, %s3515_s4  ;;  %652 = vrot.lane.b32.xlu0 %v504_v5, %s3515_s4  ;;  %v508_v51 = vmul.f32 %v4057_v35, %v3737_v50 }
  0xc2   :  { %v4179_v24 = vpop.permute.xlu1 %315  ;;  %v4181_v19 = vpop.permute.xlu0 %313 }
  0xc3   :  { %7884 = vst [vmem:[#allocation49_spill] sm:$0xff] %v4179_v24  ;;  %7885 = vst [vmem:[#allocation50_spill] sm:$0xff] %v4181_v19  ;;  %v511_v19 = vmul.f32 %v4057_v35, %v3748_v53 }
  0xc4   :  { %658 = vrot.lane.b32.xlu1 %v507_v43, %s3515_s4  ;;  %656 = vrot.lane.b32.xlu0 %v506_v2, %s3515_s4  ;;  %v510_v43 = vmul.f32 %v4057_v35, %v3753_v54 }
  0xc6   :  { %v4189_v5 = vpop.permute.xlu1 %319  ;;  %v4191_v56 = vpop.permute.xlu0 %317 }
  0xc7   :  { %7886 = vst [vmem:[#allocation51_spill] sm:$0xff] %v4189_v5  ;;  %7887 = vst [vmem:[#allocation52_spill] sm:$0xff] %v4191_v56  ;;  %v513_v56 = vmul.f32 %v4057_v35, %v3764_v57 }
  0xc8   :  { %662 = vrot.lane.b32.xlu1 %v509_v8, %s3515_s4  ;;  %660 = vrot.lane.b32.xlu0 %v508_v51, %s3515_s4  ;;  %v512_v8 = vmul.f32 %v4057_v35, %v3769_v58 }
  0xca   :  { %v4199_v2 = vpop.permute.xlu1 %323  ;;  %v4201_v24 = vpop.permute.xlu0 %321 }
  0xcb   :  { %7888 = vst [vmem:[#allocation53_spill] sm:$0xff] %v4199_v2  ;;  %7889 = vst [vmem:[#allocation54_spill] sm:$0xff] %v4201_v24  ;;  %v515_v24 = vmul.f32 %v4057_v35, %v3780_v61 }
  0xcc   :  { %666 = vrot.lane.b32.xlu1 %v511_v19, %s3515_s4  ;;  %664 = vrot.lane.b32.xlu0 %v510_v43, %s3515_s4  ;;  %v514_v19 = vmul.f32 %v4057_v35, %v3785_v62 }
  0xce   :  { %v4209_v51 = vpop.permute.xlu1 %327  ;;  %v4211_v5 = vpop.permute.xlu0 %325 }
  0xcf   :  { %7890 = vst [vmem:[#allocation55_spill] sm:$0xff] %v4209_v51  ;;  %7891 = vst [vmem:[#allocation56_spill] sm:$0xff] %v4211_v5  ;;  %v517_v5 = vmul.f32 %v4057_v35, %v3796_v6 }
  0xd0   :  { %670 = vrot.lane.b32.xlu1 %v513_v56, %s3515_s4  ;;  %668 = vrot.lane.b32.xlu0 %v512_v8, %s3515_s4  ;;  %v516_v56 = vmul.f32 %v4057_v35, %v3801_v7 }
  0xd2   :  { %v4219_v43 = vpop.permute.xlu1 %331  ;;  %v4221_v2 = vpop.permute.xlu0 %329 }
  0xd3   :  { %7892 = vst [vmem:[#allocation57_spill] sm:$0xff] %v4219_v43  ;;  %7893 = vst [vmem:[#allocation58_spill] sm:$0xff] %v4221_v2  ;;  %v519_v2 = vmul.f32 %v4057_v35, %v3812_v12 }
  0xd4   :  { %674 = vrot.lane.b32.xlu1 %v515_v24, %s3515_s4  ;;  %672 = vrot.lane.b32.xlu0 %v514_v19, %s3515_s4  ;;  %v518_v24 = vmul.f32 %v4057_v35, %v3817_v15 }
  0xd6   :  { %v4229_v8 = vpop.permute.xlu1 %335  ;;  %v4231_v51 = vpop.permute.xlu0 %333 }
  0xd7   :  { %7894 = vst [vmem:[#allocation59_spill] sm:$0xff] %v4229_v8  ;;  %7895 = vst [vmem:[#allocation60_spill] sm:$0xff] %v4231_v51  ;;  %v521_v51 = vmul.f32 %v4057_v35, %v3828_v20 }
  0xd8   :  { %678 = vrot.lane.b32.xlu1 %v517_v5, %s3515_s4  ;;  %676 = vrot.lane.b32.xlu0 %v516_v56, %s3515_s4  ;;  %v520_v5 = vmul.f32 %v4057_v35, %v3833_v23 }
  0xda   :  { %v4239_v19 = vpop.permute.xlu1 %339  ;;  %v4241_v43 = vpop.permute.xlu0 %337 }
  0xdb   :  { %7896 = vst [vmem:[#allocation61_spill] sm:$0xff] %v4239_v19  ;;  %7897 = vst [vmem:[#allocation62_spill] sm:$0xff] %v4241_v43  ;;  %v523_v43 = vmul.f32 %v4057_v35, %v3844_v28 }
  0xdc   :  { %682 = vrot.lane.b32.xlu1 %v519_v2, %s3515_s4  ;;  %680 = vrot.lane.b32.xlu0 %v518_v24, %s3515_s4  ;;  %v522_v2 = vmul.f32 %v4057_v35, %v3849_v31 }
  0xde   :  { %v4249_v56 = vpop.permute.xlu1 %343  ;;  %v4251_v8 = vpop.permute.xlu0 %341 }
  0xdf   :  { %7898 = vst [vmem:[#allocation63_spill] sm:$0xff] %v4249_v56  ;;  %7899 = vst [vmem:[#allocation64_spill] sm:$0xff] %v4251_v8  ;;  %v525_v8 = vmul.f32 %v4057_v35, %v3860_v36 }
  0xe0   :  { %686 = vrot.lane.b32.xlu1 %v521_v51, %s3515_s4  ;;  %684 = vrot.lane.b32.xlu0 %v520_v5, %s3515_s4  ;;  %v524_v51 = vmul.f32 %v4057_v35, %v3865_v39 }
  0xe2   :  { %v4259_v24 = vpop.permute.xlu1 %347  ;;  %v4261_v19 = vpop.permute.xlu0 %345 }
  0xe3   :  { %7900 = vst [vmem:[#allocation65_spill] sm:$0xff] %v4259_v24  ;;  %7901 = vst [vmem:[#allocation66_spill] sm:$0xff] %v4261_v19  ;;  %v527_v19 = vmul.f32 %v4057_v35, %v3876_v44 }
  0xe4   :  { %690 = vrot.lane.b32.xlu1 %v523_v43, %s3515_s4  ;;  %688 = vrot.lane.b32.xlu0 %v522_v2, %s3515_s4  ;;  %v526_v43 = vmul.f32 %v4057_v35, %v3881_v47 }
  0xe6   :  { %v4269_v5 = vpop.permute.xlu1 %351  ;;  %v4271_v56 = vpop.permute.xlu0 %349 }
  0xe7   :  { %7902 = vst [vmem:[#allocation67_spill] sm:$0xff] %v4269_v5  ;;  %7903 = vst [vmem:[#allocation68_spill] sm:$0xff] %v4271_v56  ;;  %v529_v56 = vmul.f32 %v4057_v35, %v3892_v52 }
  0xe8   :  { %694 = vrot.lane.b32.xlu1 %v525_v8, %s3515_s4  ;;  %692 = vrot.lane.b32.xlu0 %v524_v51, %s3515_s4  ;;  %v528_v8 = vmul.f32 %v4057_v35, %v3897_v55 }
  0xea   :  { %v4279_v2 = vpop.permute.xlu1 %355  ;;  %v4281_v24 = vpop.permute.xlu0 %353 }
  0xeb   :  { %7904 = vst [vmem:[#allocation69_spill] sm:$0xff] %v4279_v2  ;;  %7905 = vst [vmem:[#allocation70_spill] sm:$0xff] %v4281_v24  ;;  %v531_v24 = vmul.f32 %v4057_v35, %v3908_v60 }
  0xec   :  { %698 = vrot.lane.b32.xlu1 %v527_v19, %s3515_s4  ;;  %696 = vrot.lane.b32.xlu0 %v526_v43, %s3515_s4  ;;  %v530_v19 = vmul.f32 %v4057_v35, %v3913_v63 }
  0xee   :  { %v4289_v51 = vpop.permute.xlu1 %359  ;;  %v4291_v5 = vpop.permute.xlu0 %357 }
  0xef   :  { %7906 = vst [vmem:[#allocation71_spill] sm:$0xff] %v4289_v51  ;;  %7907 = vst [vmem:[#allocation72_spill] sm:$0xff] %v4291_v5  ;;  %v533_v5 = vmul.f32 %v4057_v35, %v3924_v11 }
  0xf0   :  { %702 = vrot.lane.b32.xlu1 %v529_v56, %s3515_s4  ;;  %700 = vrot.lane.b32.xlu0 %v528_v8, %s3515_s4  ;;  %v532_v56 = vmul.f32 %v4057_v35, %v3929_v16 }
  0xf2   :  { %v4299_v43 = vpop.permute.xlu1 %363  ;;  %v4301_v2 = vpop.permute.xlu0 %361 }
  0xf3   :  { %7908 = vst [vmem:[#allocation73_spill] sm:$0xff] %v4299_v43  ;;  %7909 = vst [vmem:[#allocation74_spill] sm:$0xff] %v4301_v2  ;;  %v535_v2 = vmul.f32 %v4057_v35, %v3940_v27 }
  0xf4   :  { %706 = vrot.lane.b32.xlu1 %v531_v24, %s3515_s4  ;;  %704 = vrot.lane.b32.xlu0 %v530_v19, %s3515_s4  ;;  %v534_v24 = vmul.f32 %v4057_v35, %v3945_v32 }
  0xf6   :  { %v4309_v8 = vpop.permute.xlu1 %367  ;;  %v4311_v51 = vpop.permute.xlu0 %365 }
  0xf7   :  { %7910 = vst [vmem:[#allocation75_spill] sm:$0xff] %v4309_v8  ;;  %7911 = vst [vmem:[#allocation76_spill] sm:$0xff] %v4311_v51  ;;  %v7914_v8 = vld [vmem:[#allocation11_spill] sm:$0xff] }
  0xf8   :  { %710 = vrot.lane.b32.xlu1 %v533_v5, %s3515_s4  ;;  %708 = vrot.lane.b32.xlu0 %v532_v56, %s3515_s4  ;;  %v537_v51 = vmul.f32 %v4057_v35, %v7914_v8  ;;  %v7915_v5 = vld [vmem:[#allocation12_spill] sm:$0xff] }
  0xf9   :  { %v536_v56 = vmul.f32 %v4057_v35, %v7915_v5 }
  0xfa   :  { %v4319_v19 = vpop.permute.xlu1 %371  ;;  %v4321_v43 = vpop.permute.xlu0 %369 }
  0xfb   :  { %7912 = vst [vmem:[#allocation77_spill] sm:$0xff] %v4319_v19  ;;  %7913 = vst [vmem:[#allocation78_spill] sm:$0xff] %v4321_v43  ;;  %v7918_v19 = vld [vmem:[#allocation13_spill] sm:$0xff] }
  0xfc   :  { %714 = vrot.lane.b32.xlu1 %v535_v2, %s3515_s4  ;;  %712 = vrot.lane.b32.xlu0 %v534_v24, %s3515_s4  ;;  %v539_v43 = vmul.f32 %v4057_v35, %v7918_v19  ;;  %v7919_v2 = vld [vmem:[#allocation14_spill] sm:$0xff] }
  0xfd   :  { %v538_v24 = vmul.f32 %v4057_v35, %v7919_v2  ;;  %v4359_v2 = vstv %s3299_s5 }
  0xfe   :  { %v4329_v48 = vpop.permute.xlu1 %375  ;;  %v4331_v27 = vpop.permute.xlu0 %373 }
  0xff   :  { %7916 = vst [vmem:[#allocation79_spill] sm:$0xff] %v4329_v48  ;;  %7917 = vst [vmem:[#allocation80_spill] sm:$0xff] %v4331_v27  ;;  %v7922_v27 = vld [vmem:[#allocation15_spill] sm:$0xff]  ;;  %v7923_v48 = vld [vmem:[#allocation16_spill] sm:$0xff] }
 0x100   :  { %718 = vrot.lane.b32.xlu1 %v537_v51, %s3515_s4  ;;  %716 = vrot.lane.b32.xlu0 %v536_v56, %s3515_s4  ;;  %v541_v51 = vmul.f32 %v4057_v35, %v7922_v27  ;;  %v540_v56 = vmul.f32 %v4057_v35, %v7923_v48  ;;  %v7930_v48 = vld [vmem:[#allocation19_spill] sm:$0xff] }
 0x102   :  { %v4339_v32 = vpop.permute.xlu1 %379  ;;  %v4341_v8 = vpop.permute.xlu0 %377 }
 0x103   :  { %7920 = vst [vmem:[#allocation81_spill] sm:$0xff] %v4339_v32  ;;  %7921 = vst [vmem:[#allocation82_spill] sm:$0xff] %v4341_v8  ;;  %v7926_v32 = vld [vmem:[#allocation17_spill] sm:$0xff] }
 0x104   :  { %722 = vrot.lane.b32.xlu1 %v539_v43, %s3515_s4  ;;  %720 = vrot.lane.b32.xlu0 %v538_v24, %s3515_s4  ;;  %v543_v8 = vmul.f32 %v4057_v35, %v7926_v32  ;;  %v7927_v43 = vld [vmem:[#allocation18_spill] sm:$0xff] }
 0x105   :  { %v542_v24 = vmul.f32 %v4057_v35, %v7927_v43  ;;  %v1043_v43 = vmul.f32 %v4359_v2, %v3552_v3  ;;  %v546_v3 = vmul.f32 %v4057_v35, %v4045_v40 }
 0x106   :  { %v4349_v5 = vpop.permute.xlu1 %383  ;;  %v4351_v19 = vpop.permute.xlu0 %381 }
 0x107   :  { %7924 = vst [vmem:[#allocation83_spill] sm:$0xff] %v4349_v5  ;;  %7925 = vst [vmem:[#allocation84_spill] sm:$0xff] %v4351_v19  ;;  %v545_v5 = vmul.f32 %v4057_v35, %v7930_v48  ;;  %v1041_v19 = vmul.f32 %v4359_v2, %v3557_v4  ;;  %v547_v4 = vmul.f32 %v4057_v35, %v4040_v59 }
 0x108   :  { %726 = vrot.lane.b32.xlu1 %v541_v51, %s3515_s4  ;;  %724 = vrot.lane.b32.xlu0 %v540_v56, %s3515_s4  ;;  %v7931_v51 = vld [vmem:[#allocation20_spill] sm:$0xff] }
 0x109   :  { %v544_v56 = vmul.f32 %v4057_v35, %v7931_v51  ;;  %v1180_v51 = vrot.slane %v1043_v43, 1 }
 0x10a   :  { %v4361_v27 = vpop.permute.xlu1 %614  ;;  %v4363_v16 = vpop.permute.xlu0 %612 }
 0x10b   :  { %7928 = vst [vmem:[#allocation85_spill] sm:$0xff] %v4361_v27  ;;  %7929 = vst [vmem:[#allocation86_spill] sm:$0xff] %v4363_v16  ;;  %v1040_v27 = vmul.f32 %v4359_v2, %v3545_v1  ;;  %v1042_v16 = vmul.f32 %v4359_v2, %v3540_v0  ;;  %v1045_v0 = vmul.f32 %v4359_v2, %v3572_v9 }
 0x10c   :  { %730 = vrot.lane.b32.xlu1 %v543_v8, %s3515_s4  ;;  %728 = vrot.lane.b32.xlu0 %v542_v24, %s3515_s4  ;;  %v1179_v24 = vrot.slane %v1041_v19, 1 }
 0x10d   :  { %v1176_v1 = vrot.slane %v1040_v27, 1  ;;  %v1177_v32 = vrot.slane %v1042_v16, 1  ;;  %v1047_v16 = vmul.f32 %v4359_v2, %v3588_v13  ;;  %v1184_v9 = vrot.slane %v1045_v0, 1 }
 0x10e   :  { %v4379_v48 = vpop.permute.xlu1 %618  ;;  %v4381_v8 = vpop.permute.xlu0 %616  ;;  %v1181_v35 = vsel %vm907_vm0, %v1179_v24, %v1180_v51 }
 0x10f   :  { %7932 = vst [vmem:[#allocation87_spill] sm:$0xff] %v4379_v48  ;;  %7933 = vst [vmem:[#allocation88_spill] sm:$0xff] %v4381_v8  ;;  %v1044_v8 = vmul.f32 %v4359_v2, %v3577_v10  ;;  %v1178_v27 = vsel %vm907_vm0, %v1176_v1, %v1177_v32  ;;  %v1046_v10 = vmul.f32 %v4359_v2, %v3593_v14 }
 0x110   :  { %734 = vrot.lane.b32.xlu1 %v545_v5, %s3515_s4  ;;  %732 = vrot.lane.b32.xlu0 %v544_v56, %s3515_s4  ;;  %v1185_v13 = vsel %vm907_vm0, %v1180_v51, %v1184_v9  ;;  %v1048_v14 = vmul.f32 %v4359_v2, %v3609_v18  ;;  %v1050_v18 = vmul.f32 %v4359_v2, %v3625_v22 }
 0x111   :  { %v1182_v19 = vrot.slane %v1044_v8, 1  ;;  %v1186_v8 = vrot.slane %v1046_v10, 1  ;;  %v1052_v22 = vmul.f32 %v4359_v2, %v3641_v26  ;;  %v1054_v26 = vmul.f32 %v4359_v2, %v3657_v30 }
 0x112   :  { %v4393_v48 = vpop.permute.xlu1 %622  ;;  %v4395_v5 = vpop.permute.xlu0 %620  ;;  %v1190_v51 = vrot.slane %v1048_v14, 1  ;;  %v1056_v30 = vmul.f32 %v4359_v2, %v3673_v34  ;;  %v1058_v34 = vmul.f32 %v4359_v2, %v3689_v38  ;;  %v1060_v38 = vmul.f32 %v4359_v2, %v3705_v42 }
 0x113   :  { %7934 = vst [vmem:[#allocation89_spill] sm:$0xff] %v4393_v48  ;;  %7935 = vst [vmem:[#allocation90_spill] sm:$0xff] %v4395_v5  ;;  %v1183_v24 = vsel %vm907_vm0, %v1177_v32, %v1182_v19  ;;  %v1051_v32 = vmul.f32 %v4359_v2, %v3620_v21  ;;  %v1194_v21 = vrot.slane %v1050_v18, 1  ;;  %v1062_v42 = vmul.f32 %v4359_v2, %v3721_v46 }
 0x114   :  { %738 = vrot.lane.b32.xlu1 %v547_v4, %s3515_s4  ;;  %736 = vrot.lane.b32.xlu0 %v546_v3, %s3515_s4  ;;  %v1188_v4 = vrot.slane %v1047_v16, 1  ;;  %v1049_v3 = vmul.f32 %v4359_v2, %v3604_v17  ;;  %v1187_v17 = vsel %vm907_vm0, %v1182_v19, %v1186_v8  ;;  %v1053_v19 = vmul.f32 %v4359_v2, %v3636_v25 }
 0x115   :  { %v1064_v46 = vmul.f32 %v4359_v2, %v3737_v50  ;;  %v1066_v50 = vmul.f32 %v4359_v2, %v3753_v54  ;;  %v1068_v54 = vmul.f32 %v4359_v2, %v3769_v58  ;;  %v1070_v58 = vmul.f32 %v4359_v2, %v3785_v62  ;;  %v4565_v62 = vld [vmem:[%s7779_s1 + $0x100] sm:$0x3] }
 0x116   :  { %v4405_v43 = vpop.permute.xlu1 %626  ;;  %v4407_v56 = vpop.permute.xlu0 %624  ;;  %v1192_v16 = vrot.slane %v1049_v3, 1  ;;  %v1191_v3 = vsel %vm907_vm0, %v1186_v8, %v1190_v51  ;;  %v1195_v8 = vsel %vm907_vm0, %v1190_v51, %v1194_v21  ;;  %v1057_v51 = vmul.f32 %v4359_v2, %v3668_v33 }
 0x117   :  { %7936 = vst [vmem:[#allocation91_spill] sm:$0xff] %v4405_v43  ;;  %7937 = vst [vmem:[#allocation92_spill] sm:$0xff] %v4407_v56  ;;  %v1206_v33 = vrot.slane %v1056_v30, 1  ;;  %v5270_v43 = vld [vmem:[%s7779_s1 + $0x178] sm:$0xff] }
 0x118   :  { %1310 = vrot.lane.b32.xlu1 %v1181_v35, %s3514_s22  ;;  %1308 = vrot.lane.b32.xlu0 %v1178_v27, %s3514_s22  ;;  %v1189_v35 = vsel %vm907_vm0, %v1184_v9, %v1188_v4  ;;  %v1193_v9 = vsel %vm907_vm0, %v1188_v4, %v1192_v16  ;;  %v1055_v4 = vmul.f32 %v4359_v2, %v3652_v29 }
 0x119   :  { %8051 = vst [vmem:[#allocation180_spill] sm:$0xff] %v5270_v43 }
 0x11a   :  { %v4417_v1 = vpop.permute.xlu1 %630  ;;  %v4419_v0 = vpop.permute.xlu0 %628 }
 0x11b   :  { %7938 = vst [vmem:[#allocation93_spill] sm:$0xff] %v4417_v1  ;;  %7939 = vst [vmem:[#allocation94_spill] sm:$0xff] %v4419_v0 }
 0x11c   :  { %1314 = vrot.lane.b32.xlu1 %v1185_v13, %s3514_s22  ;;  %1312 = vrot.lane.b32.xlu0 %v1183_v24, %s3514_s22  ;;  %v1196_v13 = vrot.slane %v1051_v32, 1 }
 0x11e   :  { %v4429_v27 = vpop.permute.xlu1 %634  ;;  %v4431_v10 = vpop.permute.xlu0 %632  ;;  %v1197_v25 = vsel %vm907_vm0, %v1192_v16, %v1196_v13  ;;  %v1202_v16 = vrot.slane %v1054_v26, 1 }
 0x11f   :  { %7940 = vst [vmem:[#allocation95_spill] sm:$0xff] %v4429_v27  ;;  %7941 = vst [vmem:[#allocation96_spill] sm:$0xff] %v4431_v10 }
 0x120   :  { %1318 = vrot.lane.b32.xlu1 %v1189_v35, %s3514_s22  ;;  %1316 = vrot.lane.b32.xlu0 %v1187_v17, %s3514_s22  ;;  %v1200_v35 = vrot.slane %v1053_v19, 1  ;;  %v1198_v17 = vrot.slane %v1052_v22, 1  ;;  %v1204_v19 = vrot.slane %v1055_v4, 1 }
 0x122   :  { %v4441_v24 = vpop.permute.xlu1 %638  ;;  %v4443_v14 = vpop.permute.xlu0 %636  ;;  %v1199_v29 = vsel %vm907_vm0, %v1194_v21, %v1198_v17  ;;  %v1059_v21 = vmul.f32 %v4359_v2, %v3684_v37  ;;  %v1203_v4 = vsel %vm907_vm0, %v1198_v17, %v1202_v16  ;;  %v1207_v17 = vsel %vm907_vm0, %v1202_v16, %v1206_v33 }
 0x123   :  { %7942 = vst [vmem:[#allocation97_spill] sm:$0xff] %v4441_v24  ;;  %7943 = vst [vmem:[#allocation98_spill] sm:$0xff] %v4443_v14  ;;  %v1063_v16 = vmul.f32 %v4359_v2, %v3716_v45  ;;  %v1218_v45 = vrot.slane %v1062_v42, 1 }
 0x124   :  { %1322 = vrot.lane.b32.xlu1 %v1193_v9, %s3514_s22  ;;  %1320 = vrot.lane.b32.xlu0 %v1191_v3, %s3514_s22  ;;  %v1201_v9 = vsel %vm907_vm0, %v1196_v13, %v1200_v35  ;;  %v1205_v13 = vsel %vm907_vm0, %v1200_v35, %v1204_v19  ;;  %v1061_v35 = vmul.f32 %v4359_v2, %v3700_v41 }
 0x126   :  { %v4453_v32 = vpop.permute.xlu1 %642  ;;  %v4455_v18 = vpop.permute.xlu0 %640 }
 0x127   :  { %7944 = vst [vmem:[#allocation99_spill] sm:$0xff] %v4453_v32  ;;  %7945 = vst [vmem:[#allocation100_spill] sm:$0xff] %v4455_v18 }
 0x128   :  { %1326 = vrot.lane.b32.xlu1 %v1197_v25, %s3514_s22  ;;  %1324 = vrot.lane.b32.xlu0 %v1195_v8, %s3514_s22  ;;  %v1208_v25 = vrot.slane %v1057_v51, 1 }
 0x12a   :  { %v4465_v3 = vpop.permute.xlu1 %646  ;;  %v4467_v22 = vpop.permute.xlu0 %644  ;;  %v1209_v37 = vsel %vm907_vm0, %v1204_v19, %v1208_v25  ;;  %v1214_v19 = vrot.slane %v1060_v38, 1 }
 0x12b   :  { %7946 = vst [vmem:[#allocation101_spill] sm:$0xff] %v4465_v3  ;;  %7947 = vst [vmem:[#allocation102_spill] sm:$0xff] %v4467_v22 }
 0x12c   :  { %1330 = vrot.lane.b32.xlu1 %v1201_v9, %s3514_s22  ;;  %1328 = vrot.lane.b32.xlu0 %v1199_v29, %s3514_s22  ;;  %v1212_v9 = vrot.slane %v1059_v21, 1  ;;  %v1210_v29 = vrot.slane %v1058_v34, 1  ;;  %v1216_v21 = vrot.slane %v1061_v35, 1 }
 0x12e   :  { %v4477_v8 = vpop.permute.xlu1 %650  ;;  %v4479_v26 = vpop.permute.xlu0 %648  ;;  %v1211_v41 = vsel %vm907_vm0, %v1206_v33, %v1210_v29  ;;  %v1065_v33 = vmul.f32 %v4359_v2, %v3732_v49  ;;  %v1215_v35 = vsel %vm907_vm0, %v1210_v29, %v1214_v19  ;;  %v1219_v29 = vsel %vm907_vm0, %v1214_v19, %v1218_v45 }
 0x12f   :  { %7948 = vst [vmem:[#allocation103_spill] sm:$0xff] %v4477_v8  ;;  %7949 = vst [vmem:[#allocation104_spill] sm:$0xff] %v4479_v26  ;;  %v1069_v19 = vmul.f32 %v4359_v2, %v3764_v57  ;;  %v1230_v57 = vrot.slane %v1068_v54, 1  ;;  %v1072_v54 = vmul.f32 %v4359_v2, %v4565_v62  ;;  %v4958_v8 = vld [vmem:[%s7779_s1 + $0x88] sm:$0xff] }
 0x130   :  { %1334 = vrot.lane.b32.xlu1 %v1205_v13, %s3514_s22  ;;  %1332 = vrot.lane.b32.xlu0 %v1203_v4, %s3514_s22  ;;  %v1213_v13 = vsel %vm907_vm0, %v1208_v25, %v1212_v9  ;;  %v1217_v25 = vsel %vm907_vm0, %v1212_v9, %v1216_v21  ;;  %v1067_v9 = vmul.f32 %v4359_v2, %v3748_v53 }
 0x132   :  { %v4489_v51 = vpop.permute.xlu1 %654  ;;  %v4491_v30 = vpop.permute.xlu0 %652 }
 0x133   :  { %7950 = vst [vmem:[#allocation105_spill] sm:$0xff] %v4489_v51  ;;  %7951 = vst [vmem:[#allocation106_spill] sm:$0xff] %v4491_v30 }
 0x134   :  { %1338 = vrot.lane.b32.xlu1 %v1209_v37, %s3514_s22  ;;  %1336 = vrot.lane.b32.xlu0 %v1207_v17, %s3514_s22  ;;  %v1220_v37 = vrot.slane %v1063_v16, 1 }
 0x136   :  { %v4501_v4 = vpop.permute.xlu1 %658  ;;  %v4503_v34 = vpop.permute.xlu0 %656  ;;  %v1221_v49 = vsel %vm907_vm0, %v1216_v21, %v1220_v37  ;;  %v1226_v21 = vrot.slane %v1066_v50, 1 }
 0x137   :  { %7952 = vst [vmem:[#allocation107_spill] sm:$0xff] %v4501_v4  ;;  %7953 = vst [vmem:[#allocation108_spill] sm:$0xff] %v4503_v34 }
 0x138   :  { %1342 = vrot.lane.b32.xlu1 %v1213_v13, %s3514_s22  ;;  %1340 = vrot.lane.b32.xlu0 %v1211_v41, %s3514_s22  ;;  %v1224_v13 = vrot.slane %v1065_v33, 1  ;;  %v1222_v41 = vrot.slane %v1064_v46, 1  ;;  %v1228_v33 = vrot.slane %v1067_v9, 1 }
 0x13a   :  { %v4513_v17 = vpop.permute.xlu1 %662  ;;  %v4515_v38 = vpop.permute.xlu0 %660  ;;  %v1223_v53 = vsel %vm907_vm0, %v1218_v45, %v1222_v41  ;;  %v1071_v45 = vmul.f32 %v4359_v2, %v3780_v61  ;;  %v1227_v9 = vsel %vm907_vm0, %v1222_v41, %v1226_v21 }
 0x13b   :  { %7954 = vst [vmem:[#allocation109_spill] sm:$0xff] %v4513_v17  ;;  %7955 = vst [vmem:[#allocation110_spill] sm:$0xff] %v4515_v38 }
 0x13c   :  { %1346 = vrot.lane.b32.xlu1 %v1217_v25, %s3514_s22  ;;  %1344 = vrot.lane.b32.xlu0 %v1215_v35, %s3514_s22  ;;  %v1225_v25 = vsel %vm907_vm0, %v1220_v37, %v1224_v13  ;;  %v1229_v37 = vsel %vm907_vm0, %v1224_v13, %v1228_v33  ;;  %v1236_v61 = vrot.slane %v1071_v45, 1 }
 0x13e   :  { %v4525_v16 = vpop.permute.xlu1 %666  ;;  %v4527_v42 = vpop.permute.xlu0 %664 }
 0x13f   :  { %7956 = vst [vmem:[#allocation111_spill] sm:$0xff] %v4525_v16  ;;  %7957 = vst [vmem:[#allocation112_spill] sm:$0xff] %v4527_v42 }
 0x140   :  { %1350 = vrot.lane.b32.xlu1 %v1221_v49, %s3514_s22  ;;  %1348 = vrot.lane.b32.xlu0 %v1219_v29, %s3514_s22  ;;  %v1232_v49 = vrot.slane %v1069_v19, 1  ;;  %v4552_v29 = vld [vmem:[%s7779_s1 + $0x108] sm:$0x3]  ;;  %v1234_v19 = vrot.slane %v1070_v58, 1 }
 0x141   :  { %v1073_v13 = vmul.f32 %v4359_v2, %v4552_v29 }
 0x142   :  { %v4537_v35 = vpop.permute.xlu1 %670  ;;  %v4539_v46 = vpop.permute.xlu0 %668  ;;  %v1233_v41 = vsel %vm907_vm0, %v1228_v33, %v1232_v49  ;;  %v1237_v45 = vsel %vm907_vm0, %v1232_v49, %v1236_v61  ;;  %v1075_v33 = vmul.f32 %v4359_v2, %v3796_v6  ;;  %v1235_v58 = vsel %vm907_vm0, %v1230_v57, %v1234_v19 }
 0x143   :  { %7958 = vst [vmem:[#allocation113_spill] sm:$0xff] %v4537_v35  ;;  %7959 = vst [vmem:[#allocation114_spill] sm:$0xff] %v4539_v46 }
 0x144   :  { %1354 = vrot.lane.b32.xlu1 %v1225_v25, %s3514_s22  ;;  %1352 = vrot.lane.b32.xlu0 %v1223_v53, %s3514_s22  ;;  %v1231_v53 = vsel %vm907_vm0, %v1226_v21, %v1230_v57  ;;  %v1077_v21 = vmul.f32 %v4359_v2, %v3812_v12  ;;  %v1245_v12 = vrot.slane %v1075_v33, 1  ;;  %v1079_v57 = vmul.f32 %v4359_v2, %v3828_v20 }
 0x146   :  { %v4554_v50 = vpop.permute.xlu1 %674  ;;  %v4556_v25 = vpop.permute.xlu0 %672  ;;  %v1246_v49 = vrot.slane %v1077_v21, 1  ;;  %v1083_v21 = vmul.f32 %v4359_v2, %v3860_v36 }
 0x147   :  { %7960 = vst [vmem:[#allocation115_spill] sm:$0xff] %v4554_v50  ;;  %7961 = vst [vmem:[#allocation116_spill] sm:$0xff] %v4556_v25  ;;  %v1240_v25 = vrot.slane %v1073_v13, 1  ;;  %v1238_v50 = vrot.slane %v1072_v54, 1 }
 0x148   :  { %1358 = vrot.lane.b32.xlu1 %v1229_v37, %s3514_s22  ;;  %1356 = vrot.lane.b32.xlu0 %v1227_v9, %s3514_s22 }
 0x149   :  { %v1241_v6 = vsel %vm907_vm0, %v1236_v61, %v1240_v25  ;;  %v1247_v25 = vsel %vm907_vm0, %v1245_v12, %v1246_v49  ;;  %v1250_v61 = vrot.slane %v1079_v57, 1  ;;  %v1258_v57 = vrot.slane %v1083_v21, 1 }
 0x14a   :  { %v4571_v37 = vpop.permute.xlu1 %678  ;;  %v4573_v9 = vpop.permute.xlu0 %676  ;;  %v1089_v21 = vmul.f32 %v4359_v2, %v3908_v60 }
 0x14b   :  { %7962 = vst [vmem:[#allocation117_spill] sm:$0xff] %v4571_v37  ;;  %7963 = vst [vmem:[#allocation118_spill] sm:$0xff] %v4573_v9  ;;  %v1074_v37 = vmul.f32 %v4359_v2, %v3801_v7  ;;  %v1239_v7 = vsel %vm907_vm0, %v1234_v19, %v1238_v50  ;;  %v1081_v50 = vmul.f32 %v4359_v2, %v3844_v28 }
 0x14c   :  { %1362 = vrot.lane.b32.xlu1 %v1233_v41, %s3514_s22  ;;  %1360 = vrot.lane.b32.xlu0 %v1231_v53, %s3514_s22  ;;  %v1076_v41 = vmul.f32 %v4359_v2, %v3817_v15  ;;  %v1078_v15 = vmul.f32 %v4359_v2, %v3833_v23  ;;  %v1080_v23 = vmul.f32 %v4359_v2, %v3849_v31 }
 0x14d   :  { %v1242_v13 = vrot.slane %v1074_v37, 1  ;;  %v1251_v33 = vsel %vm907_vm0, %v1246_v49, %v1250_v61  ;;  %v1082_v31 = vmul.f32 %v4359_v2, %v3865_v39  ;;  %v1085_v49 = vmul.f32 %v4359_v2, %v3876_v44 }
 0x14e   :  { %v4587_v9 = vpop.permute.xlu1 %682  ;;  %v4589_v53 = vpop.permute.xlu0 %680  ;;  %v1243_v54 = vrot.slane %v1076_v41, 1  ;;  %v1254_v41 = vrot.slane %v1081_v50, 1  ;;  %v1252_v28 = vrot.slane %v1080_v23, 1  ;;  %v1084_v39 = vmul.f32 %v4359_v2, %v3881_v47 }
 0x14f   :  { %7964 = vst [vmem:[#allocation119_spill] sm:$0xff] %v4587_v9  ;;  %7965 = vst [vmem:[#allocation120_spill] sm:$0xff] %v4589_v53  ;;  %v1086_v47 = vmul.f32 %v4359_v2, %v3897_v55  ;;  %v1088_v55 = vmul.f32 %v4359_v2, %v3913_v63 }
 0x150   :  { %1366 = vrot.lane.b32.xlu1 %v1237_v45, %s3514_s22  ;;  %1364 = vrot.lane.b32.xlu0 %v1235_v58, %s3514_s22  ;;  %v1244_v20 = vsel %vm907_vm0, %v1242_v13, %v1243_v54  ;;  %v1248_v45 = vrot.slane %v1078_v15, 1  ;;  %v1255_v36 = vsel %vm907_vm0, %v1250_v61, %v1254_v41  ;;  %v1256_v13 = vrot.slane %v1082_v31, 1 }
 0x151   :  { %v1260_v61 = vrot.slane %v1084_v39, 1 }
 0x152   :  { %v4599_v9 = vpop.permute.xlu1 %686  ;;  %v4601_v53 = vpop.permute.xlu0 %684  ;;  %v1249_v58 = vsel %vm907_vm0, %v1243_v54, %v1248_v45  ;;  %v1257_v44 = vsel %vm907_vm0, %v1252_v28, %v1256_v13 }
 0x153   :  { %7966 = vst [vmem:[#allocation121_spill] sm:$0xff] %v4599_v9  ;;  %7967 = vst [vmem:[#allocation122_spill] sm:$0xff] %v4601_v53  ;;  %v4892_v9 = vld [vmem:[%s7779_s1 + $0x58] sm:$0xff] }
 0x154   :  { %1370 = vrot.lane.b32.xlu1 %v1241_v6, %s3514_s22  ;;  %1368 = vrot.lane.b32.xlu0 %v1239_v7, %s3514_s22  ;;  %v1253_v7 = vsel %vm907_vm0, %v1248_v45, %v1252_v28  ;;  %v1087_v45 = vmul.f32 %v4359_v2, %v3892_v52  ;;  %v1264_v52 = vrot.slane %v1086_v47, 1  ;;  %v7981_v47 = vld [vmem:[#allocation9_spill] sm:$0xff] }
 0x156   :  { %v4611_v19 = vpop.permute.xlu1 %690  ;;  %v4613_v37 = vpop.permute.xlu0 %688 }
 0x157   :  { %7968 = vst [vmem:[#allocation123_spill] sm:$0xff] %v4611_v19  ;;  %7969 = vst [vmem:[#allocation124_spill] sm:$0xff] %v4613_v37 }
 0x158   :  { %1374 = vrot.lane.b32.xlu1 %v1247_v25, %s3514_s22  ;;  %1372 = vrot.lane.b32.xlu0 %v1244_v20, %s3514_s22  ;;  %v1259_v25 = vsel %vm907_vm0, %v1254_v41, %v1258_v57  ;;  %v1262_v20 = vrot.slane %v1085_v49, 1  ;;  %v1266_v41 = vrot.slane %v1087_v45, 1  ;;  %v1270_v49 = vrot.slane %v1089_v21, 1 }
 0x15a   :  { %v4623_v6 = vpop.permute.xlu1 %694  ;;  %v4625_v12 = vpop.permute.xlu0 %692  ;;  %v1267_v60 = vsel %vm907_vm0, %v1262_v20, %v1266_v41 }
 0x15b   :  { %7970 = vst [vmem:[#allocation125_spill] sm:$0xff] %v4623_v6  ;;  %7971 = vst [vmem:[#allocation126_spill] sm:$0xff] %v4625_v12 }
 0x15c   :  { %1378 = vrot.lane.b32.xlu1 %v1251_v33, %s3514_s22  ;;  %1376 = vrot.lane.b32.xlu0 %v1249_v58, %s3514_s22  ;;  %v1263_v33 = vsel %vm907_vm0, %v1258_v57, %v1262_v20  ;;  %v1261_v58 = vsel %vm907_vm0, %v1256_v13, %v1260_v61  ;;  %v1091_v57 = vmul.f32 %v4359_v2, %v3924_v11  ;;  %v7978_v13 = vld [vmem:[#allocation8_spill] sm:$0xff] }
 0x15d   :  { %v1090_v63 = vmul.f32 %v4359_v2, %v7978_v13 }
 0x15e   :  { %v4635_v54 = vpop.permute.xlu1 %698  ;;  %v4637_v15 = vpop.permute.xlu0 %696  ;;  %v1274_v45 = vrot.slane %v1091_v57, 1  ;;  %v7985_v57 = vld [vmem:[#allocation11_spill] sm:$0xff] }
 0x15f   :  { %7972 = vst [vmem:[#allocation127_spill] sm:$0xff] %v4635_v54  ;;  %7973 = vst [vmem:[#allocation128_spill] sm:$0xff] %v4637_v15  ;;  %v1272_v20 = vrot.slane %v1090_v63, 1  ;;  %v7986_v63 = vld [vmem:[#allocation12_spill] sm:$0xff] }
 0x160   :  { %1382 = vrot.lane.b32.xlu1 %v1255_v36, %s3514_s22  ;;  %1380 = vrot.lane.b32.xlu0 %v1253_v7, %s3514_s22  ;;  %v1265_v36 = vsel %vm907_vm0, %v1260_v61, %v1264_v52  ;;  %v1268_v7 = vrot.slane %v1088_v55, 1  ;;  %v1093_v61 = vmul.f32 %v4359_v2, %v7981_v47  ;;  %v1094_v47 = vmul.f32 %v4359_v2, %v7986_v63 }
 0x162   :  { %v4647_v50 = vpop.permute.xlu1 %702  ;;  %v4649_v23 = vpop.permute.xlu0 %700  ;;  %v1269_v11 = vsel %vm907_vm0, %v1264_v52, %v1268_v7  ;;  %v1095_v52 = vmul.f32 %v4359_v2, %v7985_v57 }
 0x163   :  { %7974 = vst [vmem:[#allocation129_spill] sm:$0xff] %v4647_v50  ;;  %7975 = vst [vmem:[#allocation130_spill] sm:$0xff] %v4649_v23  ;;  %v4826_v50 = vld [vmem:[%s7779_s1 + $0x28] sm:$0xff] }
 0x164   :  { %1386 = vrot.lane.b32.xlu1 %v1259_v25, %s3514_s22  ;;  %1384 = vrot.lane.b32.xlu0 %v1257_v44, %s3514_s22  ;;  %v1271_v44 = vsel %vm907_vm0, %v1266_v41, %v1270_v49  ;;  %v1275_v41 = vsel %vm907_vm0, %v1270_v49, %v1274_v45  ;;  %v7989_v49 = vld [vmem:[#allocation13_spill] sm:$0xff] }
 0x166   :  { %v4659_v28 = vpop.permute.xlu1 %706  ;;  %v4661_v31 = vpop.permute.xlu0 %704 }
 0x167   :  { %7976 = vst [vmem:[#allocation131_spill] sm:$0xff] %v4659_v28  ;;  %7977 = vst [vmem:[#allocation132_spill] sm:$0xff] %v4661_v31 }
 0x168   :  { %1390 = vrot.lane.b32.xlu1 %v1263_v33, %s3514_s22  ;;  %1388 = vrot.lane.b32.xlu0 %v1261_v58, %s3514_s22  ;;  %v7982_v33 = vld [vmem:[#allocation10_spill] sm:$0xff] }
 0x169   :  { %v1092_v21 = vmul.f32 %v4359_v2, %v7982_v33 }
 0x16a   :  { %v4671_v39 = vpop.permute.xlu1 %710  ;;  %v4673_v25 = vpop.permute.xlu0 %708 }
 0x16b   :  { %7979 = vst [vmem:[#allocation8_spill] sm:$0xff] %v4671_v39  ;;  %7980 = vst [vmem:[#allocation133_spill] sm:$0xff] %v4673_v25  ;;  %v1276_v13 = vrot.slane %v1092_v21, 1  ;;  %v7990_v21 = vld [vmem:[#allocation14_spill] sm:$0xff] }
 0x16c   :  { %1394 = vrot.lane.b32.xlu1 %v1267_v60, %s3514_s22  ;;  %1392 = vrot.lane.b32.xlu0 %v1265_v36, %s3514_s22  ;;  %v1273_v60 = vsel %vm907_vm0, %v1268_v7, %v1272_v20  ;;  %v1278_v36 = vrot.slane %v1093_v61, 1  ;;  %v1280_v61 = vrot.slane %v1094_v47, 1  ;;  %v1096_v63 = vmul.f32 %v4359_v2, %v7990_v21  ;;  %v7994_v47 = vld [vmem:[#allocation16_spill] sm:$0xff] }
 0x16d   :  { %v1277_v7 = vsel %vm907_vm0, %v1272_v20, %v1276_v13  ;;  %v1098_v21 = vmul.f32 %v4359_v2, %v7994_v47 }
 0x16e   :  { %v4683_v58 = vpop.permute.xlu1 %714  ;;  %v4685_v55 = vpop.permute.xlu0 %712  ;;  %v1279_v57 = vsel %vm907_vm0, %v1274_v45, %v1278_v36  ;;  %v1284_v45 = vrot.slane %v1096_v63, 1 }
 0x16f   :  { %7983 = vst [vmem:[#allocation9_spill] sm:$0xff] %v4683_v58  ;;  %7984 = vst [vmem:[#allocation10_spill] sm:$0xff] %v4685_v55  ;;  %v1288_v63 = vrot.slane %v1098_v21, 1  ;;  %v8002_v21 = vld [vmem:[#allocation20_spill] sm:$0xff] }
 0x170   :  { %1398 = vrot.lane.b32.xlu1 %v1271_v44, %s3514_s22  ;;  %1396 = vrot.lane.b32.xlu0 %v1269_v11, %s3514_s22  ;;  %v1282_v44 = vrot.slane %v1095_v52, 1  ;;  %v1097_v11 = vmul.f32 %v4359_v2, %v7989_v49  ;;  %v7993_v49 = vld [vmem:[#allocation15_spill] sm:$0xff] }
 0x171   :  { %v1099_v20 = vmul.f32 %v4359_v2, %v7993_v49  ;;  %v7998_v49 = vld [vmem:[#allocation18_spill] sm:$0xff] }
 0x172   :  { %v4695_v33 = vpop.permute.xlu1 %718  ;;  %v4697_v58 = vpop.permute.xlu0 %716  ;;  %v1286_v52 = vrot.slane %v1097_v11, 1  ;;  %v7997_v11 = vld [vmem:[#allocation17_spill] sm:$0xff]  ;;  %v1100_v47 = vmul.f32 %v4359_v2, %v7998_v49  ;;  %v1102_v49 = vmul.f32 %v4359_v2, %v8002_v21 }
 0x173   :  { %7987 = vst [vmem:[#allocation11_spill] sm:$0xff] %v4695_v33  ;;  %7988 = vst [vmem:[#allocation12_spill] sm:$0xff] %v4697_v58 }
 0x174   :  { %1402 = vrot.lane.b32.xlu1 %v1275_v41, %s3514_s22  ;;  %1400 = vrot.lane.b32.xlu0 %v1273_v60, %s3514_s22  ;;  %v1283_v41 = vsel %vm907_vm0, %v1278_v36, %v1282_v44  ;;  %v1281_v60 = vsel %vm907_vm0, %v1276_v13, %v1280_v61  ;;  %v1287_v36 = vsel %vm907_vm0, %v1282_v44, %v1286_v52  ;;  %v8001_v44 = vld [vmem:[#allocation19_spill] sm:$0xff] }
 0x175   :  { %v1101_v13 = vmul.f32 %v4359_v2, %v7997_v11 }
 0x176   :  { %v4707_v55 = vpop.permute.xlu1 %722  ;;  %v4709_v33 = vpop.permute.xlu0 %720 }
 0x177   :  { %7991 = vst [vmem:[#allocation13_spill] sm:$0xff] %v4707_v55  ;;  %7992 = vst [vmem:[#allocation14_spill] sm:$0xff] %v4709_v33 }
 0x178   :  { %1406 = vrot.lane.b32.xlu1 %v1279_v57, %s3514_s22  ;;  %1404 = vrot.lane.b32.xlu0 %v1277_v7, %s3514_s22  ;;  %v1285_v57 = vsel %vm907_vm0, %v1280_v61, %v1284_v45  ;;  %v1290_v7 = vrot.slane %v1099_v20, 1  ;;  %v1289_v61 = vsel %vm907_vm0, %v1284_v45, %v1288_v63  ;;  %v1292_v20 = vrot.slane %v1100_v47, 1 }
 0x179   :  { %v1105_v45 = vmul.f32 %v4359_v2, %v4040_v59  ;;  %v1104_v47 = vmul.f32 %v4359_v2, %v4045_v40 }
 0x17a   :  { %v4719_v58 = vpop.permute.xlu1 %726  ;;  %v4721_v55 = vpop.permute.xlu0 %724  ;;  %v1291_v11 = vsel %vm907_vm0, %v1286_v52, %v1290_v7  ;;  %v1293_v52 = vsel %vm907_vm0, %v1288_v63, %v1292_v20 }
 0x17b   :  { %7995 = vst [vmem:[#allocation15_spill] sm:$0xff] %v4719_v58  ;;  %7996 = vst [vmem:[#allocation16_spill] sm:$0xff] %v4721_v55  ;;  %v1302_v21 = vrot.slane %v1105_v45, 1 }
 0x17c   :  { %1410 = vrot.lane.b32.xlu1 %v1283_v41, %s3514_s22  ;;  %1408 = vrot.lane.b32.xlu0 %v1281_v60, %s3514_s22  ;;  %v1294_v41 = vrot.slane %v1101_v13, 1  ;;  %v1103_v60 = vmul.f32 %v4359_v2, %v8001_v44  ;;  %v4758_v44 = vld [vmem:[%s7779_s1 + $0x218] sm:$0x3] }
 0x17d   :  { %v1107_v40 = vmul.f32 %v4359_v2, %v4758_v44 }
 0x17e   :  { %v4731_v33 = vpop.permute.xlu1 %730  ;;  %v4733_v58 = vpop.permute.xlu0 %728  ;;  %v1298_v13 = vrot.slane %v1103_v60, 1 }
 0x17f   :  { %7999 = vst [vmem:[#allocation17_spill] sm:$0xff] %v4731_v33  ;;  %8000 = vst [vmem:[#allocation18_spill] sm:$0xff] %v4733_v58 }
 0x180   :  { %1414 = vrot.lane.b32.xlu1 %v1287_v36, %s3514_s22  ;;  %1412 = vrot.lane.b32.xlu0 %v1285_v57, %s3514_s22  ;;  %v1295_v36 = vsel %vm907_vm0, %v1290_v7, %v1294_v41  ;;  %v1296_v57 = vrot.slane %v1102_v49, 1  ;;  %v4767_v7 = vld [vmem:[%s7779_s1 + $0x210] sm:$0x3]  ;;  %v1299_v59 = vsel %vm907_vm0, %v1294_v41, %v1298_v13  ;;  %v1300_v49 = vrot.slane %v1104_v47, 1 }
 0x181   :  { %v1106_v63 = vmul.f32 %v4359_v2, %v4767_v7  ;;  %v1306_v41 = vrot.slane %v1107_v40, 1  ;;  %v4788_v2 = vld [vmem:[%s7779_s1 + $0x8] sm:$0xff]  ;;  %v1303_v47 = vsel %vm907_vm0, %v1298_v13, %v1302_v21  ;;  %v4804_v40 = vld [vmem:[%s7779_s1] sm:$0xff] }
 0x182   :  { %v4743_v33 = vpop.permute.xlu1 %734  ;;  %v4745_v58 = vpop.permute.xlu0 %732  ;;  %v1297_v60 = vsel %vm907_vm0, %v1292_v20, %v1296_v57 }
 0x183   :  { %8003 = vst [vmem:[#allocation19_spill] sm:$0xff] %v4743_v33  ;;  %8004 = vst [vmem:[#allocation20_spill] sm:$0xff] %v4745_v58 }
 0x184   :  { %1418 = vrot.lane.b32.xlu1 %v1291_v11, %s3514_s22  ;;  %1416 = vrot.lane.b32.xlu0 %v1289_v61, %s3514_s22 }
 0x186   :  { %v4760_v11 = vpop.permute.xlu1 %738  ;;  %v4762_v61 = vpop.permute.xlu0 %736 }
 0x187   :  { %8005 = vst [vmem:[#allocation134_spill] sm:$0xff] %v4760_v11  ;;  %8006 = vst [vmem:[#allocation135_spill] sm:$0xff] %v4762_v61  ;;  %v4777_v61 = vstv %s3300_s10 }
 0x188   :  { %1422 = vrot.lane.b32.xlu1 %v1295_v36, %s3514_s22  ;;  %1420 = vrot.lane.b32.xlu0 %v1293_v52, %s3514_s22  ;;  %v1304_v36 = vrot.slane %v1106_v63, 1  ;;  %v1535_v20 = vmul.f32 %v4788_v2, %v4777_v61  ;;  %v4795_v52 = vld [vmem:[%s7779_s1 + $0x18] sm:$0xff]  ;;  %v1534_v63 = vmul.f32 %v4804_v40, %v4777_v61  ;;  %v1539_v15 = vmul.f32 %v4826_v50, %v4777_v61 }
 0x189   :  { %v1537_v45 = vmul.f32 %v4795_v52, %v4777_v61  ;;  %v1545_v46 = vmul.f32 %v4892_v9, %v4777_v61  ;;  %v1566_v14 = vmul.f32 %v4777_v61, %v4565_v62  ;;  %v5152_v62 = vld [vmem:[%s7779_s1 + $0x128] sm:$0xff] }
 0x18a   :  { %v4779_v11 = vpop.permute.xlu1 %1310  ;;  %v4781_v58 = vpop.permute.xlu0 %1308  ;;  %v1305_v25 = vsel %vm907_vm0, %v1300_v49, %v1304_v36  ;;  %v1673_v39 = vrot.slane %v1535_v20, 1  ;;  %v1670_v28 = vrot.slane %v1534_v63, 1  ;;  %v4847_v36 = vld [vmem:[%s7779_s1 + $0x38] sm:$0xff] }
 0x18b   :  { %8007 = vst [vmem:[#allocation136_spill] sm:$0xff] %v4779_v11  ;;  %8008 = vst [vmem:[#allocation137_spill] sm:$0xff] %v4781_v58  ;;  %v1674_v31 = vrot.slane %v1537_v45, 1  ;;  %v1541_v20 = vmul.f32 %v4847_v36, %v4777_v61  ;;  %v1690_v16 = vrot.slane %v1545_v46, 1  ;;  %v4934_v46 = vld [vmem:[%s7779_s1 + $0x78] sm:$0xff] }
 0x18c   :  { %1426 = vrot.lane.b32.xlu1 %v1299_v59, %s3514_s22  ;;  %1424 = vrot.lane.b32.xlu0 %v1297_v60, %s3514_s22  ;;  %v1301_v59 = vsel %vm907_vm0, %v1296_v57, %v1300_v49  ;;  %v4811_v60 = vld [vmem:[%s7779_s1 + $0x10] sm:$0xff]  ;;  %v1307_v57 = vsel %vm907_vm0, %v1302_v21, %v1306_v41  ;;  %v5181_v58 = vld [vmem:[%s7779_s1 + $0x138] sm:$0xff] }
 0x18d   :  { %v1536_v33 = vmul.f32 %v4811_v60, %v4777_v61  ;;  %v1682_v12 = vrot.slane %v1541_v20, 1  ;;  %v1573_v11 = vmul.f32 %v5181_v58, %v4777_v61 }
 0x18e   :  { %v4815_v55 = vpop.permute.xlu1 %1314  ;;  %v4817_v13 = vpop.permute.xlu0 %1312 }
 0x18f   :  { %8009 = vst [vmem:[#allocation138_spill] sm:$0xff] %v4815_v55  ;;  %8010 = vst [vmem:[#allocation139_spill] sm:$0xff] %v4817_v13  ;;  %v1671_v23 = vrot.slane %v1536_v33, 1  ;;  %v1675_v33 = vsel %vm907_vm0, %v1673_v39, %v1674_v31 }
 0x190   :  { %1430 = vrot.lane.b32.xlu1 %v1303_v47, %s3514_s22  ;;  %1428 = vrot.lane.b32.xlu0 %v1301_v59, %s3514_s22  ;;  %v4833_v47 = vld [vmem:[%s7779_s1 + $0x20] sm:$0xff]  ;;  %v1678_v59 = vrot.slane %v1539_v15, 1  ;;  %v4868_v15 = vld [vmem:[%s7779_s1 + $0x48] sm:$0xff] }
 0x191   :  { %v1538_v21 = vmul.f32 %v4833_v47, %v4777_v61  ;;  %v1672_v45 = vsel %vm907_vm0, %v1670_v28, %v1671_v23  ;;  %v1543_v28 = vmul.f32 %v4868_v15, %v4777_v61 }
 0x192   :  { %v4837_v49 = vpop.permute.xlu1 %1318  ;;  %v4839_v41 = vpop.permute.xlu0 %1316 }
 0x193   :  { %8011 = vst [vmem:[#allocation140_spill] sm:$0xff] %v4837_v49  ;;  %8012 = vst [vmem:[#allocation141_spill] sm:$0xff] %v4839_v41  ;;  %v1676_v63 = vrot.slane %v1538_v21, 1  ;;  %v1679_v21 = vsel %vm907_vm0, %v1674_v31, %v1678_v59  ;;  %v1683_v31 = vsel %vm907_vm0, %v1678_v59, %v1682_v12 }
 0x194   :  { %1434 = vrot.lane.b32.xlu1 %v1307_v57, %s3514_s22  ;;  %1432 = vrot.lane.b32.xlu0 %v1305_v25, %s3514_s22  ;;  %v4855_v57 = vld [vmem:[%s7779_s1 + $0x30] sm:$0xff] }
 0x195   :  { %v1540_v39 = vmul.f32 %v4855_v57, %v4777_v61  ;;  %v1677_v6 = vsel %vm907_vm0, %v1671_v23, %v1676_v63  ;;  %v1686_v23 = vrot.slane %v1543_v28, 1 }
 0x196   :  { %v4859_v25 = vpop.permute.xlu1 %1322  ;;  %v4861_v54 = vpop.permute.xlu0 %1320 }
 0x197   :  { %8013 = vst [vmem:[#allocation142_spill] sm:$0xff] %v4859_v25  ;;  %8014 = vst [vmem:[#allocation143_spill] sm:$0xff] %v4861_v54  ;;  %v1680_v37 = vrot.slane %v1540_v39, 1  ;;  %v1687_v28 = vsel %vm907_vm0, %v1682_v12, %v1686_v23  ;;  %v5090_v25 = vld [vmem:[%s7779_s1 + $0xe8] sm:$0xff] }
 0x198   :  { %1804 = vrot.lane.b32.xlu1 %v1675_v33, %s3515_s4  ;;  %1802 = vrot.lane.b32.xlu0 %v1672_v45, %s3515_s4  ;;  %v4877_v33 = vld [vmem:[%s7779_s1 + $0x40] sm:$0xff] }
 0x199   :  { %v1542_v20 = vmul.f32 %v4877_v33, %v4777_v61  ;;  %v1681_v39 = vsel %vm907_vm0, %v1676_v63, %v1680_v37 }
 0x19a   :  { %v4881_v45 = vpop.permute.xlu1 %1326  ;;  %v4883_v19 = vpop.permute.xlu0 %1324 }
 0x19b   :  { %8015 = vst [vmem:[#allocation144_spill] sm:$0xff] %v4881_v45  ;;  %8016 = vst [vmem:[#allocation145_spill] sm:$0xff] %v4883_v19  ;;  %v1684_v53 = vrot.slane %v1542_v20, 1  ;;  %v4913_v20 = vld [vmem:[%s7779_s1 + $0x68] sm:$0xff] }
 0x19c   :  { %1808 = vrot.lane.b32.xlu1 %v1679_v21, %s3515_s4  ;;  %1806 = vrot.lane.b32.xlu0 %v1677_v6, %s3515_s4  ;;  %v4899_v21 = vld [vmem:[%s7779_s1 + $0x50] sm:$0xff]  ;;  %v1547_v35 = vmul.f32 %v4913_v20, %v4777_v61 }
 0x19d   :  { %v1544_v6 = vmul.f32 %v4899_v21, %v4777_v61  ;;  %v1685_v42 = vsel %vm907_vm0, %v1680_v37, %v1684_v53  ;;  %v1549_v37 = vmul.f32 %v4934_v46, %v4777_v61 }
 0x19e   :  { %v4903_v59 = vpop.permute.xlu1 %1330  ;;  %v4905_v63 = vpop.permute.xlu0 %1328  ;;  %v1694_v34 = vrot.slane %v1547_v35, 1 }
 0x19f   :  { %8017 = vst [vmem:[#allocation146_spill] sm:$0xff] %v4903_v59  ;;  %8018 = vst [vmem:[#allocation147_spill] sm:$0xff] %v4905_v63  ;;  %v1688_v38 = vrot.slane %v1544_v6, 1  ;;  %v1691_v6 = vsel %vm907_vm0, %v1686_v23, %v1690_v16  ;;  %v5024_v59 = vld [vmem:[%s7779_s1 + $0xb8] sm:$0xff] }
 0x1a0   :  { %1812 = vrot.lane.b32.xlu1 %v1683_v31, %s3515_s4  ;;  %1810 = vrot.lane.b32.xlu0 %v1681_v39, %s3515_s4  ;;  %v4921_v31 = vld [vmem:[%s7779_s1 + $0x60] sm:$0xff]  ;;  %v1695_v23 = vsel %vm907_vm0, %v1690_v16, %v1694_v34 }
 0x1a1   :  { %v1546_v12 = vmul.f32 %v4921_v31, %v4777_v61  ;;  %v1689_v4 = vsel %vm907_vm0, %v1684_v53, %v1688_v38  ;;  %v1698_v53 = vrot.slane %v1549_v37, 1 }
 0x1a2   :  { %v4925_v39 = vpop.permute.xlu1 %1334  ;;  %v4927_v17 = vpop.permute.xlu0 %1332 }
 0x1a3   :  { %8019 = vst [vmem:[#allocation148_spill] sm:$0xff] %v4925_v39  ;;  %8020 = vst [vmem:[#allocation149_spill] sm:$0xff] %v4927_v17  ;;  %v1692_v30 = vrot.slane %v1546_v12, 1  ;;  %v1699_v37 = vsel %vm907_vm0, %v1694_v34, %v1698_v53 }
 0x1a4   :  { %1816 = vrot.lane.b32.xlu1 %v1687_v28, %s3515_s4  ;;  %1814 = vrot.lane.b32.xlu0 %v1685_v42, %s3515_s4  ;;  %v4943_v28 = vld [vmem:[%s7779_s1 + $0x70] sm:$0xff] }
 0x1a5   :  { %v1548_v42 = vmul.f32 %v4943_v28, %v4777_v61  ;;  %v1693_v12 = vsel %vm907_vm0, %v1688_v38, %v1692_v30 }
 0x1a6   :  { %v4947_v35 = vpop.permute.xlu1 %1338  ;;  %v4949_v51 = vpop.permute.xlu0 %1336 }
 0x1a7   :  { %8021 = vst [vmem:[#allocation150_spill] sm:$0xff] %v4947_v35  ;;  %8022 = vst [vmem:[#allocation151_spill] sm:$0xff] %v4949_v51  ;;  %v1696_v26 = vrot.slane %v1548_v42, 1  ;;  %v1551_v35 = vmul.f32 %v4958_v8, %v4777_v61  ;;  %v4979_v42 = vld [vmem:[%s7779_s1 + $0x98] sm:$0xff] }
 0x1a8   :  { %1820 = vrot.lane.b32.xlu1 %v1691_v6, %s3515_s4  ;;  %1818 = vrot.lane.b32.xlu0 %v1689_v4, %s3515_s4  ;;  %v4965_v6 = vld [vmem:[%s7779_s1 + $0x80] sm:$0xff]  ;;  %v1553_v51 = vmul.f32 %v4979_v42, %v4777_v61 }
 0x1a9   :  { %v1550_v4 = vmul.f32 %v4965_v6, %v4777_v61  ;;  %v1697_v17 = vsel %vm907_vm0, %v1692_v30, %v1696_v26  ;;  %v1702_v39 = vrot.slane %v1551_v35, 1  ;;  %v5000_v30 = vld [vmem:[%s7779_s1 + $0xa8] sm:$0xff] }
 0x1aa   :  { %v4969_v16 = vpop.permute.xlu1 %1342  ;;  %v4971_v38 = vpop.permute.xlu0 %1340  ;;  %v1706_v22 = vrot.slane %v1553_v51, 1  ;;  %v1555_v35 = vmul.f32 %v5000_v30, %v4777_v61 }
 0x1ab   :  { %8023 = vst [vmem:[#allocation152_spill] sm:$0xff] %v4969_v16  ;;  %8024 = vst [vmem:[#allocation153_spill] sm:$0xff] %v4971_v38  ;;  %v1700_v16 = vrot.slane %v1550_v4, 1  ;;  %v1703_v4 = vsel %vm907_vm0, %v1698_v53, %v1702_v39 }
 0x1ac   :  { %1824 = vrot.lane.b32.xlu1 %v1695_v23, %s3515_s4  ;;  %1822 = vrot.lane.b32.xlu0 %v1693_v12, %s3515_s4  ;;  %v4987_v23 = vld [vmem:[%s7779_s1 + $0x90] sm:$0xff]  ;;  %v1707_v53 = vsel %vm907_vm0, %v1702_v39, %v1706_v22 }
 0x1ad   :  { %v1552_v34 = vmul.f32 %v4987_v23, %v4777_v61  ;;  %v1701_v3 = vsel %vm907_vm0, %v1696_v26, %v1700_v16  ;;  %v1710_v26 = vrot.slane %v1555_v35, 1 }
 0x1ae   :  { %v4991_v12 = vpop.permute.xlu1 %1346  ;;  %v4993_v38 = vpop.permute.xlu0 %1344 }
 0x1af   :  { %8025 = vst [vmem:[#allocation154_spill] sm:$0xff] %v4991_v12  ;;  %8026 = vst [vmem:[#allocation155_spill] sm:$0xff] %v4993_v38  ;;  %v1704_v12 = vrot.slane %v1552_v34, 1  ;;  %v1711_v35 = vsel %vm907_vm0, %v1706_v22, %v1710_v26 }
 0x1b0   :  { %1828 = vrot.lane.b32.xlu1 %v1699_v37, %s3515_s4  ;;  %1826 = vrot.lane.b32.xlu0 %v1697_v17, %s3515_s4  ;;  %v5009_v37 = vld [vmem:[%s7779_s1 + $0xa0] sm:$0xff] }
 0x1b1   :  { %v1554_v51 = vmul.f32 %v5009_v37, %v4777_v61  ;;  %v1705_v34 = vsel %vm907_vm0, %v1700_v16, %v1704_v12 }
 0x1b2   :  { %v5013_v17 = vpop.permute.xlu1 %1350  ;;  %v5015_v38 = vpop.permute.xlu0 %1348 }
 0x1b3   :  { %8027 = vst [vmem:[#allocation156_spill] sm:$0xff] %v5013_v17  ;;  %8028 = vst [vmem:[#allocation157_spill] sm:$0xff] %v5015_v38  ;;  %v1708_v63 = vrot.slane %v1554_v51, 1  ;;  %v1557_v17 = vmul.f32 %v5024_v59, %v4777_v61  ;;  %v5045_v51 = vld [vmem:[%s7779_s1 + $0xc8] sm:$0xff] }
 0x1b4   :  { %1832 = vrot.lane.b32.xlu1 %v1703_v4, %s3515_s4  ;;  %1830 = vrot.lane.b32.xlu0 %v1701_v3, %s3515_s4  ;;  %v5031_v4 = vld [vmem:[%s7779_s1 + $0xb0] sm:$0xff]  ;;  %v1559_v38 = vmul.f32 %v5045_v51, %v4777_v61 }
 0x1b5   :  { %v1556_v3 = vmul.f32 %v5031_v4, %v4777_v61  ;;  %v1709_v19 = vsel %vm907_vm0, %v1704_v12, %v1708_v63  ;;  %v1714_v45 = vrot.slane %v1557_v17, 1  ;;  %v5066_v12 = vld [vmem:[%s7779_s1 + $0xd8] sm:$0xff] }
 0x1b6   :  { %v5035_v39 = vpop.permute.xlu1 %1354  ;;  %v5037_v16 = vpop.permute.xlu0 %1352  ;;  %v1718_v18 = vrot.slane %v1559_v38, 1  ;;  %v1561_v17 = vmul.f32 %v5066_v12, %v4777_v61 }
 0x1b7   :  { %8029 = vst [vmem:[#allocation158_spill] sm:$0xff] %v5035_v39  ;;  %8030 = vst [vmem:[#allocation159_spill] sm:$0xff] %v5037_v16  ;;  %v1712_v39 = vrot.slane %v1556_v3, 1  ;;  %v1715_v3 = vsel %vm907_vm0, %v1710_v26, %v1714_v45 }
 0x1b8   :  { %1836 = vrot.lane.b32.xlu1 %v1707_v53, %s3515_s4  ;;  %1834 = vrot.lane.b32.xlu0 %v1705_v34, %s3515_s4  ;;  %v5053_v53 = vld [vmem:[%s7779_s1 + $0xc0] sm:$0xff]  ;;  %v1719_v26 = vsel %vm907_vm0, %v1714_v45, %v1718_v18 }
 0x1b9   :  { %v1558_v22 = vmul.f32 %v5053_v53, %v4777_v61  ;;  %v1713_v32 = vsel %vm907_vm0, %v1708_v63, %v1712_v39  ;;  %v1722_v63 = vrot.slane %v1561_v17, 1 }
 0x1ba   :  { %v5057_v34 = vpop.permute.xlu1 %1358  ;;  %v5059_v16 = vpop.permute.xlu0 %1356 }
 0x1bb   :  { %8031 = vst [vmem:[#allocation160_spill] sm:$0xff] %v5057_v34  ;;  %8032 = vst [vmem:[#allocation161_spill] sm:$0xff] %v5059_v16  ;;  %v1716_v34 = vrot.slane %v1558_v22, 1  ;;  %v1723_v17 = vsel %vm907_vm0, %v1718_v18, %v1722_v63 }
 0x1bc   :  { %1840 = vrot.lane.b32.xlu1 %v1711_v35, %s3515_s4  ;;  %1838 = vrot.lane.b32.xlu0 %v1709_v19, %s3515_s4  ;;  %v5075_v35 = vld [vmem:[%s7779_s1 + $0xd0] sm:$0xff] }
 0x1bd   :  { %v1560_v19 = vmul.f32 %v5075_v35, %v4777_v61  ;;  %v1717_v22 = vsel %vm907_vm0, %v1712_v39, %v1716_v34 }
 0x1be   :  { %v5079_v38 = vpop.permute.xlu1 %1362  ;;  %v5081_v16 = vpop.permute.xlu0 %1360 }
 0x1bf   :  { %8033 = vst [vmem:[#allocation162_spill] sm:$0xff] %v5079_v38  ;;  %8034 = vst [vmem:[#allocation163_spill] sm:$0xff] %v5081_v16  ;;  %v1720_v54 = vrot.slane %v1560_v19, 1  ;;  %v1563_v38 = vmul.f32 %v5090_v25, %v4777_v61  ;;  %v5111_v19 = vld [vmem:[%s7779_s1 + $0xf8] sm:$0xff] }
 0x1c0   :  { %1844 = vrot.lane.b32.xlu1 %v1715_v3, %s3515_s4  ;;  %1842 = vrot.lane.b32.xlu0 %v1713_v32, %s3515_s4  ;;  %v5097_v3 = vld [vmem:[%s7779_s1 + $0xe0] sm:$0xff]  ;;  %v1565_v16 = vmul.f32 %v5111_v19, %v4777_v61 }
 0x1c1   :  { %v1562_v32 = vmul.f32 %v5097_v3, %v4777_v61  ;;  %v1721_v41 = vsel %vm907_vm0, %v1716_v34, %v1720_v54  ;;  %v1726_v49 = vrot.slane %v1563_v38, 1  ;;  %v1567_v34 = vmul.f32 %v4777_v61, %v4552_v29  ;;  %v5145_v29 = vld [vmem:[%s7779_s1 + $0x118] sm:$0xff] }
 0x1c2   :  { %v5101_v45 = vpop.permute.xlu1 %1366  ;;  %v5103_v39 = vpop.permute.xlu0 %1364  ;;  %v1730_v13 = vrot.slane %v1565_v16, 1 }
 0x1c3   :  { %8035 = vst [vmem:[#allocation164_spill] sm:$0xff] %v5101_v45  ;;  %8036 = vst [vmem:[#allocation165_spill] sm:$0xff] %v5103_v39  ;;  %v1724_v45 = vrot.slane %v1562_v32, 1  ;;  %v1727_v38 = vsel %vm907_vm0, %v1722_v63, %v1726_v49  ;;  %v1734_v16 = vrot.slane %v1567_v34, 1  ;;  %v1571_v63 = vmul.f32 %v5152_v62, %v4777_v61 }
 0x1c4   :  { %1848 = vrot.lane.b32.xlu1 %v1719_v26, %s3515_s4  ;;  %1846 = vrot.lane.b32.xlu0 %v1717_v22, %s3515_s4  ;;  %v5119_v26 = vld [vmem:[%s7779_s1 + $0xf0] sm:$0xff] }
 0x1c5   :  { %v1564_v18 = vmul.f32 %v5119_v26, %v4777_v61  ;;  %v1725_v32 = vsel %vm907_vm0, %v1720_v54, %v1724_v45  ;;  %v1569_v54 = vmul.f32 %v5145_v29, %v4777_v61 }
 0x1c6   :  { %v5123_v22 = vpop.permute.xlu1 %1370  ;;  %v5125_v39 = vpop.permute.xlu0 %1368 }
 0x1c7   :  { %8037 = vst [vmem:[#allocation166_spill] sm:$0xff] %v5123_v22  ;;  %8038 = vst [vmem:[#allocation167_spill] sm:$0xff] %v5125_v39  ;;  %v1728_v55 = vrot.slane %v1564_v18, 1  ;;  %v5160_v18 = vld [vmem:[%s7779_s1 + $0x110] sm:$0xff]  ;;  %v1740_v39 = vrot.slane %v1571_v63, 1  ;;  %v1744_v63 = vrot.slane %v1573_v11, 1 }
 0x1c8   :  { %1852 = vrot.lane.b32.xlu1 %v1723_v17, %s3515_s4  ;;  %1850 = vrot.lane.b32.xlu0 %v1721_v41, %s3515_s4  ;;  %v1731_v41 = vsel %vm907_vm0, %v1726_v49, %v1730_v13  ;;  %v1732_v49 = vrot.slane %v1566_v14, 1  ;;  %v1568_v34 = vmul.f32 %v5160_v18, %v4777_v61  ;;  %v1735_v14 = vsel %vm907_vm0, %v1730_v13, %v1734_v16 }
 0x1c9   :  { %v1729_v17 = vsel %vm907_vm0, %v1724_v45, %v1728_v55 }
 0x1ca   :  { %v5135_v24 = vpop.permute.xlu1 %1374  ;;  %v5137_v22 = vpop.permute.xlu0 %1372  ;;  %v1736_v10 = vrot.slane %v1568_v34, 1  ;;  %v5204_v34 = vld [vmem:[%s7779_s1 + $0x148] sm:$0xff] }
 0x1cb   :  { %8039 = vst [vmem:[#allocation168_spill] sm:$0xff] %v5135_v24  ;;  %8040 = vst [vmem:[#allocation169_spill] sm:$0xff] %v5137_v22  ;;  %v1739_v24 = vrot.slane %v1569_v54, 1 }
 0x1cc   :  { %1856 = vrot.lane.b32.xlu1 %v1727_v38, %s3515_s4  ;;  %1854 = vrot.lane.b32.xlu0 %v1725_v32, %s3515_s4  ;;  %v5167_v38 = vld [vmem:[%s7779_s1 + $0x120] sm:$0xff] }
 0x1cd   :  { %v1570_v32 = vmul.f32 %v5167_v38, %v4777_v61 }
 0x1ce   :  { %v5171_v22 = vpop.permute.xlu1 %1378  ;;  %v5173_v45 = vpop.permute.xlu0 %1376 }
 0x1cf   :  { %8041 = vst [vmem:[#allocation170_spill] sm:$0xff] %v5171_v22  ;;  %8042 = vst [vmem:[#allocation171_spill] sm:$0xff] %v5173_v45  ;;  %v1733_v22 = vsel %vm907_vm0, %v1728_v55, %v1732_v49  ;;  %v1737_v45 = vrot.slane %v1570_v32, 1  ;;  %v1741_v55 = vsel %vm907_vm0, %v1739_v24, %v1740_v39  ;;  %v1575_v32 = vmul.f32 %v5204_v34, %v4777_v61 }
 0x1d0   :  { %1860 = vrot.lane.b32.xlu1 %v1731_v41, %s3515_s4  ;;  %1858 = vrot.lane.b32.xlu0 %v1729_v17, %s3515_s4  ;;  %v5189_v41 = vld [vmem:[%s7779_s1 + $0x130] sm:$0xff] }
 0x1d1   :  { %v1572_v13 = vmul.f32 %v5189_v41, %v4777_v61  ;;  %v1738_v17 = vsel %vm907_vm0, %v1736_v10, %v1737_v45  ;;  %v1748_v27 = vrot.slane %v1575_v32, 1 }
 0x1d2   :  { %v5193_v16 = vpop.permute.xlu1 %1382  ;;  %v5195_v54 = vpop.permute.xlu0 %1380 }
 0x1d3   :  { %8043 = vst [vmem:[#allocation172_spill] sm:$0xff] %v5193_v16  ;;  %8044 = vst [vmem:[#allocation173_spill] sm:$0xff] %v5195_v54  ;;  %v1742_v49 = vrot.slane %v1572_v13, 1  ;;  %v5225_v13 = vld [vmem:[%s7779_s1 + $0x158] sm:$0xff] }
 0x1d4   :  { %1864 = vrot.lane.b32.xlu1 %v1735_v14, %s3515_s4  ;;  %1862 = vrot.lane.b32.xlu0 %v1733_v22, %s3515_s4  ;;  %v5211_v14 = vld [vmem:[%s7779_s1 + $0x140] sm:$0xff]  ;;  %v1745_v22 = vsel %vm907_vm0, %v1740_v39, %v1744_v63  ;;  %v1577_v54 = vmul.f32 %v5225_v13, %v4777_v61 }
 0x1d5   :  { %v1574_v24 = vmul.f32 %v5211_v14, %v4777_v61  ;;  %v1743_v16 = vsel %vm907_vm0, %v1737_v45, %v1742_v49  ;;  %v5246_v45 = vld [vmem:[%s7779_s1 + $0x168] sm:$0xff] }
 0x1d6   :  { %v5215_v11 = vpop.permute.xlu1 %1386  ;;  %v5217_v10 = vpop.permute.xlu0 %1384  ;;  %v1752_v0 = vrot.slane %v1577_v54, 1  ;;  %v1579_v32 = vmul.f32 %v5246_v45, %v4777_v61 }
 0x1d7   :  { %8045 = vst [vmem:[#allocation174_spill] sm:$0xff] %v5215_v11  ;;  %8046 = vst [vmem:[#allocation175_spill] sm:$0xff] %v5217_v10  ;;  %v1746_v11 = vrot.slane %v1574_v24, 1  ;;  %v1749_v24 = vsel %vm907_vm0, %v1744_v63, %v1748_v27 }
 0x1d8   :  { %1868 = vrot.lane.b32.xlu1 %v1741_v55, %s3515_s4  ;;  %1866 = vrot.lane.b32.xlu0 %v1738_v17, %s3515_s4  ;;  %v5233_v55 = vld [vmem:[%s7779_s1 + $0x150] sm:$0xff]  ;;  %v1753_v63 = vsel %vm907_vm0, %v1748_v27, %v1752_v0 }
 0x1d9   :  { %v1576_v39 = vmul.f32 %v5233_v55, %v4777_v61  ;;  %v1747_v1 = vsel %vm907_vm0, %v1742_v49, %v1746_v11  ;;  %v1756_v49 = vrot.slane %v1579_v32, 1 }
 0x1da   :  { %v5237_v17 = vpop.permute.xlu1 %1390  ;;  %v5239_v10 = vpop.permute.xlu0 %1388 }
 0x1db   :  { %8047 = vst [vmem:[#allocation176_spill] sm:$0xff] %v5237_v17  ;;  %8048 = vst [vmem:[#allocation177_spill] sm:$0xff] %v5239_v10  ;;  %v1750_v17 = vrot.slane %v1576_v39, 1  ;;  %v1757_v32 = vsel %vm907_vm0, %v1752_v0, %v1756_v49 }
 0x1dc   :  { %1872 = vrot.lane.b32.xlu1 %v1745_v22, %s3515_s4  ;;  %1870 = vrot.lane.b32.xlu0 %v1743_v16, %s3515_s4  ;;  %v5255_v22 = vld [vmem:[%s7779_s1 + $0x160] sm:$0xff] }
 0x1dd   :  { %v1578_v16 = vmul.f32 %v5255_v22, %v4777_v61  ;;  %v1751_v39 = vsel %vm907_vm0, %v1746_v11, %v1750_v17 }
 0x1de   :  { %v5259_v54 = vpop.permute.xlu1 %1394  ;;  %v5261_v10 = vpop.permute.xlu0 %1392 }
 0x1df   :  { %8049 = vst [vmem:[#allocation178_spill] sm:$0xff] %v5259_v54  ;;  %8050 = vst [vmem:[#allocation179_spill] sm:$0xff] %v5261_v10  ;;  %v1754_v56 = vrot.slane %v1578_v16, 1  ;;  %v1581_v54 = vmul.f32 %v5270_v43, %v4777_v61  ;;  %v5291_v16 = vld [vmem:[%s7779_s1 + $0x188] sm:$0xff]  ;;  %v5491_v43 = vstv %s3302_s3 }
 0x1e0   :  { %1876 = vrot.lane.b32.xlu1 %v1749_v24, %s3515_s4  ;;  %1874 = vrot.lane.b32.xlu0 %v1747_v1, %s3515_s4  ;;  %v5277_v24 = vld [vmem:[%s7779_s1 + $0x170] sm:$0xff]  ;;  %8055 = vst [vmem:[#allocation184_spill] sm:$0xff] %v5291_v16  ;;  %v1583_v10 = vmul.f32 %v5291_v16, %v4777_v61 }
 0x1e1   :  { %8052 = vst [vmem:[#allocation181_spill] sm:$0xff] %v5277_v24  ;;  %v1580_v1 = vmul.f32 %v5277_v24, %v4777_v61  ;;  %v1755_v5 = vsel %vm907_vm0, %v1750_v17, %v1754_v56  ;;  %v1760_v48 = vrot.slane %v1581_v54, 1  ;;  %v5312_v17 = vld [vmem:[%s7779_s1 + $0x198] sm:$0xff]  ;;  %v5336_v24 = vld [vmem:[%s7779_s1 + $0x1a8] sm:$0xff] }
 0x1e2   :  { %v5281_v27 = vpop.permute.xlu1 %1398  ;;  %v5283_v11 = vpop.permute.xlu0 %1396  ;;  %v1764_v16 = vrot.slane %v1583_v10, 1  ;;  %8059 = vst [vmem:[#allocation188_spill] sm:$0xff] %v5312_v17  ;;  %v1585_v54 = vmul.f32 %v5312_v17, %v4777_v61  ;;  %8063 = vst [vmem:[#allocation192_spill] sm:$0xff] %v5336_v24 }
 0x1e3   :  { %8053 = vst [vmem:[#allocation182_spill] sm:$0xff] %v5281_v27  ;;  %8054 = vst [vmem:[#allocation183_spill] sm:$0xff] %v5283_v11  ;;  %v1758_v27 = vrot.slane %v1580_v1, 1  ;;  %v1761_v1 = vsel %vm907_vm0, %v1756_v49, %v1760_v48 }
 0x1e4   :  { %1880 = vrot.lane.b32.xlu1 %v1753_v63, %s3515_s4  ;;  %1878 = vrot.lane.b32.xlu0 %v1751_v39, %s3515_s4  ;;  %v5299_v63 = vld [vmem:[%s7779_s1 + $0x180] sm:$0xff]  ;;  %v1765_v49 = vsel %vm907_vm0, %v1760_v48, %v1764_v16 }
 0x1e5   :  { %8056 = vst [vmem:[#allocation185_spill] sm:$0xff] %v5299_v63  ;;  %v1582_v0 = vmul.f32 %v5299_v63, %v4777_v61  ;;  %v1759_v63 = vsel %vm907_vm0, %v1754_v56, %v1758_v27  ;;  %v1768_v56 = vrot.slane %v1585_v54, 1 }
 0x1e6   :  { %v5303_v39 = vpop.permute.xlu1 %1402  ;;  %v5305_v11 = vpop.permute.xlu0 %1400 }
 0x1e7   :  { %8057 = vst [vmem:[#allocation186_spill] sm:$0xff] %v5303_v39  ;;  %8058 = vst [vmem:[#allocation187_spill] sm:$0xff] %v5305_v11  ;;  %v1762_v39 = vrot.slane %v1582_v0, 1  ;;  %v1769_v54 = vsel %vm907_vm0, %v1764_v16, %v1768_v56 }
 0x1e8   :  { %1884 = vrot.lane.b32.xlu1 %v1757_v32, %s3515_s4  ;;  %1882 = vrot.lane.b32.xlu0 %v1755_v5, %s3515_s4  ;;  %v5321_v32 = vld [vmem:[%s7779_s1 + $0x190] sm:$0xff] }
 0x1e9   :  { %8060 = vst [vmem:[#allocation189_spill] sm:$0xff] %v5321_v32  ;;  %v1584_v5 = vmul.f32 %v5321_v32, %v4777_v61  ;;  %v1763_v0 = vsel %vm907_vm0, %v1758_v27, %v1762_v39  ;;  %v5402_v32 = vld [vmem:[%s7779_s1 + $0x1d8] sm:$0xff] }
 0x1ea   :  { %v5325_v10 = vpop.permute.xlu1 %1406  ;;  %v5327_v11 = vpop.permute.xlu0 %1404  ;;  %8075 = vst [vmem:[#allocation204_spill] sm:$0xff] %v5402_v32 }
 0x1eb   :  { %8061 = vst [vmem:[#allocation190_spill] sm:$0xff] %v5325_v10  ;;  %8062 = vst [vmem:[#allocation191_spill] sm:$0xff] %v5327_v11  ;;  %v1766_v17 = vrot.slane %v1584_v5, 1  ;;  %v1587_v10 = vmul.f32 %v5336_v24, %v4777_v61  ;;  %v5357_v5 = vld [vmem:[%s7779_s1 + $0x1b8] sm:$0xff] }
 0x1ec   :  { %1888 = vrot.lane.b32.xlu1 %v1761_v1, %s3515_s4  ;;  %1886 = vrot.lane.b32.xlu0 %v1759_v63, %s3515_s4  ;;  %v5343_v1 = vld [vmem:[%s7779_s1 + $0x1a0] sm:$0xff]  ;;  %8067 = vst [vmem:[#allocation196_spill] sm:$0xff] %v5357_v5  ;;  %v1589_v11 = vmul.f32 %v5357_v5, %v4777_v61 }
 0x1ed   :  { %8064 = vst [vmem:[#allocation193_spill] sm:$0xff] %v5343_v1  ;;  %v1586_v48 = vmul.f32 %v5343_v1, %v4777_v61  ;;  %v1767_v1 = vsel %vm907_vm0, %v1762_v39, %v1766_v17  ;;  %v1772_v24 = vrot.slane %v1587_v10, 1  ;;  %v5378_v39 = vld [vmem:[%s7779_s1 + $0x1c8] sm:$0xff] }
 0x1ee   :  { %v5347_v63 = vpop.permute.xlu1 %1410  ;;  %v5349_v27 = vpop.permute.xlu0 %1408  ;;  %v1776_v5 = vrot.slane %v1589_v11, 1  ;;  %8071 = vst [vmem:[#allocation200_spill] sm:$0xff] %v5378_v39  ;;  %v1591_v10 = vmul.f32 %v5378_v39, %v4777_v61 }
 0x1ef   :  { %8065 = vst [vmem:[#allocation194_spill] sm:$0xff] %v5347_v63  ;;  %8066 = vst [vmem:[#allocation195_spill] sm:$0xff] %v5349_v27  ;;  %v1770_v63 = vrot.slane %v1586_v48, 1  ;;  %v1773_v48 = vsel %vm907_vm0, %v1768_v56, %v1772_v24 }
 0x1f0   :  { %1892 = vrot.lane.b32.xlu1 %v1765_v49, %s3515_s4  ;;  %1890 = vrot.lane.b32.xlu0 %v1763_v0, %s3515_s4  ;;  %v5365_v49 = vld [vmem:[%s7779_s1 + $0x1b0] sm:$0xff]  ;;  %v1777_v56 = vsel %vm907_vm0, %v1772_v24, %v1776_v5 }
 0x1f1   :  { %8068 = vst [vmem:[#allocation197_spill] sm:$0xff] %v5365_v49  ;;  %v1588_v16 = vmul.f32 %v5365_v49, %v4777_v61  ;;  %v1771_v49 = vsel %vm907_vm0, %v1766_v17, %v1770_v63  ;;  %v1780_v17 = vrot.slane %v1591_v10, 1 }
 0x1f2   :  { %v5369_v0 = vpop.permute.xlu1 %1414  ;;  %v5371_v27 = vpop.permute.xlu0 %1412 }
 0x1f3   :  { %8069 = vst [vmem:[#allocation198_spill] sm:$0xff] %v5369_v0  ;;  %8070 = vst [vmem:[#allocation199_spill] sm:$0xff] %v5371_v27  ;;  %v1774_v0 = vrot.slane %v1588_v16, 1  ;;  %v1781_v10 = vsel %vm907_vm0, %v1776_v5, %v1780_v17 }
 0x1f4   :  { %1896 = vrot.lane.b32.xlu1 %v1769_v54, %s3515_s4  ;;  %1894 = vrot.lane.b32.xlu0 %v1767_v1, %s3515_s4  ;;  %v5387_v54 = vld [vmem:[%s7779_s1 + $0x1c0] sm:$0xff] }
 0x1f5   :  { %8072 = vst [vmem:[#allocation201_spill] sm:$0xff] %v5387_v54  ;;  %v1590_v11 = vmul.f32 %v5387_v54, %v4777_v61  ;;  %v1775_v16 = vsel %vm907_vm0, %v1770_v63, %v1774_v0  ;;  %v5468_v54 = vld [vmem:[%s7779_s1 + $0x208] sm:$0xff] }
 0x1f6   :  { %v5391_v1 = vpop.permute.xlu1 %1418  ;;  %v5393_v27 = vpop.permute.xlu0 %1416  ;;  %8087 = vst [vmem:[#allocation216_spill] sm:$0xff] %v5468_v54 }
 0x1f7   :  { %8073 = vst [vmem:[#allocation202_spill] sm:$0xff] %v5391_v1  ;;  %8074 = vst [vmem:[#allocation203_spill] sm:$0xff] %v5393_v27  ;;  %v1778_v39 = vrot.slane %v1590_v11, 1  ;;  %v1593_v1 = vmul.f32 %v5402_v32, %v4777_v61  ;;  %v5423_v11 = vld [vmem:[%s7779_s1 + $0x1e8] sm:$0xff] }
 0x1f8   :  { %1900 = vrot.lane.b32.xlu1 %v1773_v48, %s3515_s4  ;;  %1898 = vrot.lane.b32.xlu0 %v1771_v49, %s3515_s4  ;;  %v5409_v48 = vld [vmem:[%s7779_s1 + $0x1d0] sm:$0xff]  ;;  %8079 = vst [vmem:[#allocation208_spill] sm:$0xff] %v5423_v11  ;;  %v1595_v27 = vmul.f32 %v5423_v11, %v4777_v61 }
 0x1f9   :  { %8076 = vst [vmem:[#allocation205_spill] sm:$0xff] %v5409_v48  ;;  %v1592_v24 = vmul.f32 %v5409_v48, %v4777_v61  ;;  %v1779_v48 = vsel %vm907_vm0, %v1774_v0, %v1778_v39  ;;  %v1784_v32 = vrot.slane %v1593_v1, 1  ;;  %v5444_v0 = vld [vmem:[%s7779_s1 + $0x1f8] sm:$0xff] }
 0x1fa   :  { %v5413_v49 = vpop.permute.xlu1 %1422  ;;  %v5415_v63 = vpop.permute.xlu0 %1420  ;;  %v1788_v11 = vrot.slane %v1595_v27, 1  ;;  %8083 = vst [vmem:[#allocation212_spill] sm:$0xff] %v5444_v0  ;;  %v1597_v1 = vmul.f32 %v5444_v0, %v4777_v61 }
 0x1fb   :  { %8077 = vst [vmem:[#allocation206_spill] sm:$0xff] %v5413_v49  ;;  %8078 = vst [vmem:[#allocation207_spill] sm:$0xff] %v5415_v63  ;;  %v1782_v49 = vrot.slane %v1592_v24, 1  ;;  %v1785_v24 = vsel %vm907_vm0, %v1780_v17, %v1784_v32 }
 0x1fc   :  { %1904 = vrot.lane.b32.xlu1 %v1777_v56, %s3515_s4  ;;  %1902 = vrot.lane.b32.xlu0 %v1775_v16, %s3515_s4  ;;  %v5431_v56 = vld [vmem:[%s7779_s1 + $0x1e0] sm:$0xff]  ;;  %v1792_v17 = vrot.slane %v1597_v1, 1 }
 0x1fd   :  { %8080 = vst [vmem:[#allocation209_spill] sm:$0xff] %v5431_v56  ;;  %v1594_v5 = vmul.f32 %v5431_v56, %v4777_v61  ;;  %v1783_v56 = vsel %vm907_vm0, %v1778_v39, %v1782_v49  ;;  %v1789_v39 = vsel %vm907_vm0, %v1784_v32, %v1788_v11 }
 0x1fe   :  { %v5435_v16 = vpop.permute.xlu1 %1426  ;;  %v5437_v63 = vpop.permute.xlu0 %1424  ;;  %v1793_v1 = vsel %vm907_vm0, %v1788_v11, %v1792_v17 }
 0x1ff   :  { %8081 = vst [vmem:[#allocation210_spill] sm:$0xff] %v5435_v16  ;;  %8082 = vst [vmem:[#allocation211_spill] sm:$0xff] %v5437_v63  ;;  %v1786_v16 = vrot.slane %v1594_v5, 1 }
 0x200   :  { %1908 = vrot.lane.b32.xlu1 %v1781_v10, %s3515_s4  ;;  %1906 = vrot.lane.b32.xlu0 %v1779_v48, %s3515_s4  ;;  %v5453_v10 = vld [vmem:[%s7779_s1 + $0x1f0] sm:$0xff] }
 0x201   :  { %8084 = vst [vmem:[#allocation213_spill] sm:$0xff] %v5453_v10  ;;  %v1596_v27 = vmul.f32 %v5453_v10, %v4777_v61  ;;  %v1787_v5 = vsel %vm907_vm0, %v1782_v49, %v1786_v16 }
 0x202   :  { %v5457_v48 = vpop.permute.xlu1 %1430  ;;  %v5459_v63 = vpop.permute.xlu0 %1428 }
 0x203   :  { %8085 = vst [vmem:[#allocation214_spill] sm:$0xff] %v5457_v48  ;;  %8086 = vst [vmem:[#allocation215_spill] sm:$0xff] %v5459_v63  ;;  %v1790_v0 = vrot.slane %v1596_v27, 1  ;;  %v1599_v48 = vmul.f32 %v5468_v54, %v4777_v61  ;;  %v1601_v27 = vmul.f32 %v4777_v61, %v4758_v44  ;;  %v1600_v63 = vmul.f32 %v4777_v61, %v4767_v7 }
 0x204   :  { %1912 = vrot.lane.b32.xlu1 %v1785_v24, %s3515_s4  ;;  %1910 = vrot.lane.b32.xlu0 %v1783_v56, %s3515_s4  ;;  %v5475_v24 = vld [vmem:[%s7779_s1 + $0x200] sm:$0xff]  ;;  %v2230_v44 = vmul.f32 %v4788_v2, %v5491_v43 }
 0x205   :  { %8088 = vst [vmem:[#allocation217_spill] sm:$0xff] %v5475_v24  ;;  %v1598_v32 = vmul.f32 %v5475_v24, %v4777_v61  ;;  %v1791_v54 = vsel %vm907_vm0, %v1786_v16, %v1790_v0  ;;  %v1796_v10 = vrot.slane %v1599_v48, 1  ;;  %v1800_v11 = vrot.slane %v1601_v27, 1 }
 0x206   :  { %v5479_v56 = vpop.permute.xlu1 %1434  ;;  %v5481_v49 = vpop.permute.xlu0 %1432  ;;  %v2232_v61 = vmul.f32 %v4795_v52, %v5491_v43  ;;  %v2229_v48 = vmul.f32 %v4804_v40, %v5491_v43  ;;  %v2234_v40 = vmul.f32 %v4826_v50, %v5491_v43 }
 0x207   :  { %8089 = vst [vmem:[#allocation218_spill] sm:$0xff] %v5479_v56  ;;  %8090 = vst [vmem:[#allocation219_spill] sm:$0xff] %v5481_v49  ;;  %v1794_v24 = vrot.slane %v1598_v32, 1  ;;  %v1797_v7 = vsel %vm907_vm0, %v1792_v17, %v1796_v10  ;;  %v1801_v2 = vsel %vm907_vm0, %v1796_v10, %v1800_v11 }
 0x208   :  { %1916 = vrot.lane.b32.xlu1 %v1789_v39, %s3515_s4  ;;  %1914 = vrot.lane.b32.xlu0 %v1787_v5, %s3515_s4  ;;  %v1798_v39 = vrot.slane %v1600_v63, 1  ;;  %v2231_v5 = vmul.f32 %v4811_v60, %v5491_v43  ;;  %v2368_v63 = vrot.slane %v2230_v44, 2  ;;  %v2365_v17 = vrot.slane %v2229_v48, 2 }
 0x209   :  { %v1795_v16 = vsel %vm907_vm0, %v1790_v0, %v1794_v24  ;;  %v2369_v0 = vrot.slane %v2232_v61, 2  ;;  %v2233_v60 = vmul.f32 %v4833_v47, %v5491_v43  ;;  %v2373_v50 = vrot.slane %v2234_v40, 2 }
 0x20a   :  { %v5493_v56 = vpop.permute.xlu1 %1804  ;;  %v5495_v49 = vpop.permute.xlu0 %1802  ;;  %v1799_v52 = vsel %vm907_vm0, %v1794_v24, %v1798_v39  ;;  %v2236_v24 = vmul.f32 %v4847_v36, %v5491_v43  ;;  %v2235_v47 = vmul.f32 %v4855_v57, %v5491_v43  ;;  %v2237_v57 = vmul.f32 %v4877_v33, %v5491_v43 }
 0x20b   :  { %8091 = vst [vmem:[#allocation220_spill] sm:$0xff] %v5493_v56  ;;  %8092 = vst [vmem:[#allocation221_spill] sm:$0xff] %v5495_v49  ;;  %v2370_v10 = vsel %vm2096_vm1, %v2368_v63, %v2369_v0  ;;  %v2371_v39 = vrot.slane %v2233_v60, 2  ;;  %v2374_v36 = vsel %vm2096_vm1, %v2369_v0, %v2373_v50  ;;  %v2239_v33 = vmul.f32 %v4899_v21, %v5491_v43  ;;  %v6250_v56 = vld [vmem:[%s7779_s1 + $0x160] sm:$0xff] }
 0x20c   :  { %1920 = vrot.lane.b32.xlu1 %v1793_v1, %s3515_s4  ;;  %1918 = vrot.lane.b32.xlu0 %v1791_v54, %s3515_s4  ;;  %v2366_v1 = vrot.slane %v2231_v5, 2  ;;  %v2375_v5 = vrot.slane %v2235_v47, 2  ;;  %v2379_v0 = vrot.slane %v2237_v57, 2  ;;  %v2241_v21 = vmul.f32 %v4921_v31, %v5491_v43  ;;  %8200 = vst [vmem:[#allocation289_spill] sm:$0xff] %v6250_v56 }
 0x20d   :  { %v2243_v31 = vmul.f32 %v4943_v28, %v5491_v43  ;;  %v2245_v28 = vmul.f32 %v4965_v6, %v5491_v43  ;;  %v2247_v6 = vmul.f32 %v4987_v23, %v5491_v43  ;;  %v2249_v23 = vmul.f32 %v5009_v37, %v5491_v43 }
 0x20e   :  { %v5509_v32 = vpop.permute.xlu1 %1808  ;;  %v5511_v54 = vpop.permute.xlu0 %1806  ;;  %v2367_v11 = vsel %vm2096_vm1, %v2365_v17, %v2366_v1  ;;  %v2372_v48 = vsel %vm2096_vm1, %v2366_v1, %v2371_v39  ;;  %v2240_v1 = vmul.f32 %v4892_v9, %v5491_v43  ;;  %v2383_v9 = vrot.slane %v2239_v33, 2 }
 0x20f   :  { %8093 = vst [vmem:[#allocation222_spill] sm:$0xff] %v5509_v32  ;;  %8094 = vst [vmem:[#allocation223_spill] sm:$0xff] %v5511_v54  ;;  %v2251_v37 = vmul.f32 %v5031_v4, %v5491_v43  ;;  %v2253_v4 = vmul.f32 %v5053_v53, %v5491_v43  ;;  %v2255_v53 = vmul.f32 %v5075_v35, %v5491_v43  ;;  %v6241_v32 = vld [vmem:[%s7779_s1 + $0x150] sm:$0xff] }
 0x210   :  { %1924 = vrot.lane.b32.xlu1 %v1797_v7, %s3515_s4  ;;  %1922 = vrot.lane.b32.xlu0 %v1795_v16, %s3515_s4  ;;  %v2377_v7 = vrot.slane %v2236_v24, 2  ;;  %v2238_v16 = vmul.f32 %v4868_v15, %v5491_v43  ;;  %v2376_v15 = vsel %vm2096_vm1, %v2371_v39, %v2375_v5  ;;  %v2242_v24 = vmul.f32 %v4913_v20, %v5491_v43 }
 0x211   :  { %v2257_v35 = vmul.f32 %v5097_v3, %v5491_v43  ;;  %v2259_v3 = vmul.f32 %v5119_v26, %v5491_v43 }
 0x212   :  { %v5521_v27 = vpop.permute.xlu1 %1812  ;;  %v5523_v54 = vpop.permute.xlu0 %1810  ;;  %v2378_v63 = vsel %vm2096_vm1, %v2373_v50, %v2377_v7  ;;  %v2381_v17 = vrot.slane %v2238_v16, 2  ;;  %v2385_v50 = vrot.slane %v2240_v1, 2  ;;  %v2389_v16 = vrot.slane %v2242_v24, 2 }
 0x213   :  { %8095 = vst [vmem:[#allocation224_spill] sm:$0xff] %v5521_v27  ;;  %8096 = vst [vmem:[#allocation225_spill] sm:$0xff] %v5523_v54  ;;  %v2248_v24 = vmul.f32 %v4979_v42, %v5491_v43  ;;  %v3404_v54 = vld [vmem:[%s7779_s1 + $0x88] sm:$0xff] }
 0x214   :  { %1928 = vrot.lane.b32.xlu1 %v1801_v2, %s3515_s4  ;;  %1926 = vrot.lane.b32.xlu0 %v1799_v52, %s3515_s4  ;;  %v2386_v20 = vsel %vm2096_vm1, %v2381_v17, %v2385_v50 }
 0x216   :  { %v5533_v44 = vpop.permute.xlu1 %1816  ;;  %v5535_v61 = vpop.permute.xlu0 %1814 }
 0x217   :  { %8097 = vst [vmem:[#allocation226_spill] sm:$0xff] %v5533_v44  ;;  %8098 = vst [vmem:[#allocation227_spill] sm:$0xff] %v5535_v61 }
 0x218   :  { %2499 = vrot.lane.b32.xlu1 %v2370_v10, %s3514_s22  ;;  %2497 = vrot.lane.b32.xlu0 %v2367_v11, %s3514_s22  ;;  %v2382_v10 = vsel %vm2096_vm1, %v2377_v7, %v2381_v17  ;;  %v2380_v11 = vsel %vm2096_vm1, %v2375_v5, %v2379_v0  ;;  %v2244_v7 = vmul.f32 %v4934_v46, %v5491_v43  ;;  %v2391_v17 = vrot.slane %v2243_v31, 2 }
 0x21a   :  { %v5545_v2 = vpop.permute.xlu1 %1820  ;;  %v5547_v52 = vpop.permute.xlu0 %1818 }
 0x21b   :  { %8099 = vst [vmem:[#allocation228_spill] sm:$0xff] %v5545_v2  ;;  %8100 = vst [vmem:[#allocation229_spill] sm:$0xff] %v5547_v52  ;;  %v6183_v2 = vstv %s6017_s15 }
 0x21c   :  { %2503 = vrot.lane.b32.xlu1 %v2374_v36, %s3514_s22  ;;  %2501 = vrot.lane.b32.xlu0 %v2372_v48, %s3514_s22  ;;  %v2384_v36 = vsel %vm2096_vm1, %v2379_v0, %v2383_v9  ;;  %v2387_v48 = vrot.slane %v2241_v21, 2  ;;  %v2246_v0 = vmul.f32 %v4958_v8, %v5491_v43  ;;  %v2395_v8 = vrot.slane %v2245_v28, 2 }
 0x21e   :  { %v5557_v40 = vpop.permute.xlu1 %1824  ;;  %v5559_v60 = vpop.permute.xlu0 %1822  ;;  %v2388_v46 = vsel %vm2096_vm1, %v2383_v9, %v2387_v48 }
 0x21f   :  { %8101 = vst [vmem:[#allocation230_spill] sm:$0xff] %v5557_v40  ;;  %8102 = vst [vmem:[#allocation231_spill] sm:$0xff] %v5559_v60  ;;  %v6158_v40 = vld [vmem:[%s7779_s1 + $0xe0] sm:$0xff] }
 0x220   :  { %2507 = vrot.lane.b32.xlu1 %v2378_v63, %s3514_s22  ;;  %2505 = vrot.lane.b32.xlu0 %v2376_v15, %s3514_s22  ;;  %v2390_v63 = vsel %vm2096_vm1, %v2385_v50, %v2389_v16  ;;  %v2393_v15 = vrot.slane %v2244_v7, 2  ;;  %v2397_v50 = vrot.slane %v2246_v0, 2  ;;  %v2401_v7 = vrot.slane %v2248_v24, 2 }
 0x221   :  { %v2254_v24 = vmul.f32 %v5045_v51, %v5491_v43 }
 0x222   :  { %v5569_v39 = vpop.permute.xlu1 %1828  ;;  %v5571_v47 = vpop.permute.xlu0 %1826  ;;  %v2398_v42 = vsel %vm2096_vm1, %v2393_v15, %v2397_v50 }
 0x223   :  { %8103 = vst [vmem:[#allocation232_spill] sm:$0xff] %v5569_v39  ;;  %8104 = vst [vmem:[#allocation233_spill] sm:$0xff] %v5571_v47  ;;  %v6145_v39 = vld [vmem:[%s7779_s1 + $0xd0] sm:$0xff] }
 0x224   :  { %2511 = vrot.lane.b32.xlu1 %v2382_v10, %s3514_s22  ;;  %2509 = vrot.lane.b32.xlu0 %v2380_v11, %s3514_s22  ;;  %v2394_v10 = vsel %vm2096_vm1, %v2389_v16, %v2393_v15  ;;  %v2392_v11 = vsel %vm2096_vm1, %v2387_v48, %v2391_v17  ;;  %v2250_v16 = vmul.f32 %v5000_v30, %v5491_v43  ;;  %v2403_v15 = vrot.slane %v2249_v23, 2 }
 0x226   :  { %v5581_v5 = vpop.permute.xlu1 %1832  ;;  %v5583_v57 = vpop.permute.xlu0 %1830 }
 0x227   :  { %8105 = vst [vmem:[#allocation234_spill] sm:$0xff] %v5581_v5  ;;  %8106 = vst [vmem:[#allocation235_spill] sm:$0xff] %v5583_v57 }
 0x228   :  { %2515 = vrot.lane.b32.xlu1 %v2386_v20, %s3514_s22  ;;  %2513 = vrot.lane.b32.xlu0 %v2384_v36, %s3514_s22  ;;  %v2396_v20 = vsel %vm2096_vm1, %v2391_v17, %v2395_v8  ;;  %v2399_v36 = vrot.slane %v2247_v6, 2  ;;  %v2252_v17 = vmul.f32 %v5024_v59, %v5491_v43  ;;  %v2407_v59 = vrot.slane %v2251_v37, 2 }
 0x22a   :  { %v5593_v1 = vpop.permute.xlu1 %1836  ;;  %v5595_v33 = vpop.permute.xlu0 %1834  ;;  %v2400_v30 = vsel %vm2096_vm1, %v2395_v8, %v2399_v36 }
 0x22b   :  { %8107 = vst [vmem:[#allocation236_spill] sm:$0xff] %v5593_v1  ;;  %8108 = vst [vmem:[#allocation237_spill] sm:$0xff] %v5595_v33  ;;  %v6093_v1 = vld [vmem:[%s7779_s1 + $0x90] sm:$0xff] }
 0x22c   :  { %2519 = vrot.lane.b32.xlu1 %v2390_v63, %s3514_s22  ;;  %2517 = vrot.lane.b32.xlu0 %v2388_v46, %s3514_s22  ;;  %v2402_v63 = vsel %vm2096_vm1, %v2397_v50, %v2401_v7  ;;  %v2405_v46 = vrot.slane %v2250_v16, 2  ;;  %v2409_v50 = vrot.slane %v2252_v17, 2  ;;  %v2413_v16 = vrot.slane %v2254_v24, 2 }
 0x22d   :  { %v2260_v24 = vmul.f32 %v5111_v19, %v5491_v43  ;;  %v5686_v19 = vld [vmem:[%s7779_s1 + $0x108] sm:$0x3] }
 0x22e   :  { %v5605_v9 = vpop.permute.xlu1 %1840  ;;  %v5607_v21 = vpop.permute.xlu0 %1838  ;;  %v2410_v51 = vsel %vm2096_vm1, %v2405_v46, %v2409_v50 }
 0x22f   :  { %8109 = vst [vmem:[#allocation238_spill] sm:$0xff] %v5605_v9  ;;  %8110 = vst [vmem:[#allocation239_spill] sm:$0xff] %v5607_v21  ;;  %v6084_v9 = vld [vmem:[%s7779_s1 + $0x80] sm:$0xff] }
 0x230   :  { %2523 = vrot.lane.b32.xlu1 %v2394_v10, %s3514_s22  ;;  %2521 = vrot.lane.b32.xlu0 %v2392_v11, %s3514_s22  ;;  %v2406_v10 = vsel %vm2096_vm1, %v2401_v7, %v2405_v46  ;;  %v2404_v11 = vsel %vm2096_vm1, %v2399_v36, %v2403_v15  ;;  %v2256_v7 = vmul.f32 %v5066_v12, %v5491_v43  ;;  %v2415_v46 = vrot.slane %v2255_v53, 2 }
 0x232   :  { %v5617_v48 = vpop.permute.xlu1 %1844  ;;  %v5619_v31 = vpop.permute.xlu0 %1842 }
 0x233   :  { %8111 = vst [vmem:[#allocation240_spill] sm:$0xff] %v5617_v48  ;;  %8112 = vst [vmem:[#allocation241_spill] sm:$0xff] %v5619_v31  ;;  %v6075_v48 = vld [vmem:[%s7779_s1 + $0x70] sm:$0xff] }
 0x234   :  { %2527 = vrot.lane.b32.xlu1 %v2398_v42, %s3514_s22  ;;  %2525 = vrot.lane.b32.xlu0 %v2396_v20, %s3514_s22  ;;  %v2408_v42 = vsel %vm2096_vm1, %v2403_v15, %v2407_v59  ;;  %v2411_v20 = vrot.slane %v2253_v4, 2  ;;  %v2258_v15 = vmul.f32 %v5090_v25, %v5491_v43  ;;  %v2419_v25 = vrot.slane %v2257_v35, 2 }
 0x235   :  { %v2266_v35 = vmul.f32 %v5152_v62, %v5491_v43 }
 0x236   :  { %v5629_v0 = vpop.permute.xlu1 %1848  ;;  %v5631_v28 = vpop.permute.xlu0 %1846  ;;  %v2412_v12 = vsel %vm2096_vm1, %v2407_v59, %v2411_v20  ;;  %v2420_v26 = vsel %vm2096_vm1, %v2415_v46, %v2419_v25 }
 0x237   :  { %8113 = vst [vmem:[#allocation242_spill] sm:$0xff] %v5629_v0  ;;  %8114 = vst [vmem:[#allocation243_spill] sm:$0xff] %v5631_v28 }
 0x238   :  { %2531 = vrot.lane.b32.xlu1 %v2402_v63, %s3514_s22  ;;  %2529 = vrot.lane.b32.xlu0 %v2400_v30, %s3514_s22  ;;  %v2414_v63 = vsel %vm2096_vm1, %v2409_v50, %v2413_v16  ;;  %v2417_v30 = vrot.slane %v2256_v7, 2  ;;  %v2421_v50 = vrot.slane %v2258_v15, 2  ;;  %v2425_v7 = vrot.slane %v2260_v24, 2 }
 0x239   :  { %v2264_v15 = vmul.f32 %v5145_v29, %v5491_v43 }
 0x23a   :  { %v5641_v8 = vpop.permute.xlu1 %1852  ;;  %v5643_v6 = vpop.permute.xlu0 %1850 }
 0x23b   :  { %8115 = vst [vmem:[#allocation244_spill] sm:$0xff] %v5641_v8  ;;  %8116 = vst [vmem:[#allocation245_spill] sm:$0xff] %v5643_v6  ;;  %v2434_v62 = vrot.slane %v2264_v15, 2 }
 0x23c   :  { %2535 = vrot.lane.b32.xlu1 %v2406_v10, %s3514_s22  ;;  %2533 = vrot.lane.b32.xlu0 %v2404_v11, %s3514_s22  ;;  %v2418_v10 = vsel %vm2096_vm1, %v2413_v16, %v2417_v30  ;;  %v2416_v11 = vsel %vm2096_vm1, %v2411_v20, %v2415_v46  ;;  %v2262_v16 = vmul.f32 %v5686_v19, %v5491_v43  ;;  %v5695_v20 = vld [vmem:[%s7779_s1 + $0x100] sm:$0x3] }
 0x23d   :  { %v2261_v53 = vmul.f32 %v5695_v20, %v5491_v43 }
 0x23e   :  { %v5653_v36 = vpop.permute.xlu1 %1856  ;;  %v5655_v23 = vpop.permute.xlu0 %1854  ;;  %v2429_v46 = vrot.slane %v2262_v16, 2 }
 0x23f   :  { %8117 = vst [vmem:[#allocation246_spill] sm:$0xff] %v5653_v36  ;;  %8118 = vst [vmem:[#allocation247_spill] sm:$0xff] %v5655_v23  ;;  %v2427_v24 = vrot.slane %v2261_v53, 2 }
 0x240   :  { %2539 = vrot.lane.b32.xlu1 %v2410_v51, %s3514_s22  ;;  %2537 = vrot.lane.b32.xlu0 %v2408_v42, %s3514_s22  ;;  %v2422_v51 = vsel %vm2096_vm1, %v2417_v30, %v2421_v50  ;;  %v2423_v42 = vrot.slane %v2259_v3, 2  ;;  %v2426_v30 = vsel %vm2096_vm1, %v2421_v50, %v2425_v7  ;;  %v2265_v3 = vmul.f32 %v5167_v38, %v5491_v43 }
 0x241   :  { %v2430_v29 = vsel %vm2096_vm1, %v2425_v7, %v2429_v46  ;;  %v2435_v50 = vrot.slane %v2266_v35, 2  ;;  %v2267_v38 = vmul.f32 %v5189_v41, %v5491_v43  ;;  %v2269_v41 = vmul.f32 %v5211_v14, %v5491_v43 }
 0x242   :  { %v5665_v17 = vpop.permute.xlu1 %1860  ;;  %v5667_v37 = vpop.permute.xlu0 %1858  ;;  %v2432_v53 = vrot.slane %v2265_v3, 2  ;;  %v2271_v14 = vmul.f32 %v5233_v55, %v5491_v43  ;;  %v2273_v55 = vmul.f32 %v5255_v22, %v5491_v43 }
 0x243   :  { %8119 = vst [vmem:[#allocation248_spill] sm:$0xff] %v5665_v17  ;;  %8120 = vst [vmem:[#allocation249_spill] sm:$0xff] %v5667_v37  ;;  %v2436_v7 = vsel %vm2096_vm1, %v2434_v62, %v2435_v50  ;;  %v2437_v46 = vrot.slane %v2267_v38, 2  ;;  %v6005_v17 = vld [vmem:[%s7779_s1 + $0x50] sm:$0xff] }
 0x244   :  { %2543 = vrot.lane.b32.xlu1 %v2414_v63, %s3514_s22  ;;  %2541 = vrot.lane.b32.xlu0 %v2412_v12, %s3514_s22 }
 0x246   :  { %v5677_v59 = vpop.permute.xlu1 %1864  ;;  %v5679_v4 = vpop.permute.xlu0 %1862 }
 0x247   :  { %8121 = vst [vmem:[#allocation250_spill] sm:$0xff] %v5677_v59  ;;  %8122 = vst [vmem:[#allocation251_spill] sm:$0xff] %v5679_v4 }
 0x248   :  { %2547 = vrot.lane.b32.xlu1 %v2418_v10, %s3514_s22  ;;  %2545 = vrot.lane.b32.xlu0 %v2416_v11, %s3514_s22  ;;  %v2424_v10 = vsel %vm2096_vm1, %v2419_v25, %v2423_v42  ;;  %v2263_v11 = vmul.f32 %v5160_v18, %v5491_v43  ;;  %v2268_v25 = vmul.f32 %v5181_v58, %v5491_v43 }
 0x249   :  { %v2428_v18 = vsel %vm2096_vm1, %v2423_v42, %v2427_v24  ;;  %v2270_v42 = vmul.f32 %v5204_v34, %v5491_v43  ;;  %v2272_v24 = vmul.f32 %v5225_v13, %v5491_v43  ;;  %v2441_v34 = vrot.slane %v2269_v41, 2  ;;  %v8136_v41 = vld [vmem:[#allocation181_spill] sm:$0xff] }
 0x24a   :  { %v5699_v63 = vpop.permute.xlu1 %1868  ;;  %v5701_v12 = vpop.permute.xlu0 %1866  ;;  %v2431_v16 = vrot.slane %v2263_v11, 2  ;;  %v2438_v11 = vsel %vm2096_vm1, %v2432_v53, %v2437_v46  ;;  %v2275_v22 = vmul.f32 %v8136_v41, %v5491_v43 }
 0x24b   :  { %8123 = vst [vmem:[#allocation252_spill] sm:$0xff] %v5699_v63  ;;  %8124 = vst [vmem:[#allocation253_spill] sm:$0xff] %v5701_v12  ;;  %v2443_v3 = vrot.slane %v2270_v42, 2 }
 0x24c   :  { %2551 = vrot.lane.b32.xlu1 %v2422_v51, %s3514_s22  ;;  %2549 = vrot.lane.b32.xlu0 %v2420_v26, %s3514_s22  ;;  %v2433_v58 = vsel %vm2096_vm1, %v2431_v16, %v2432_v53  ;;  %v2445_v16 = vrot.slane %v2271_v14, 2 }
 0x24e   :  { %v5715_v51 = vpop.permute.xlu1 %1872  ;;  %v5717_v26 = vpop.permute.xlu0 %1870 }
 0x24f   :  { %8125 = vst [vmem:[#allocation254_spill] sm:$0xff] %v5715_v51  ;;  %8126 = vst [vmem:[#allocation255_spill] sm:$0xff] %v5717_v26 }
 0x250   :  { %2555 = vrot.lane.b32.xlu1 %v2426_v30, %s3514_s22  ;;  %2553 = vrot.lane.b32.xlu0 %v2424_v10, %s3514_s22  ;;  %v2439_v30 = vrot.slane %v2268_v25, 2  ;;  %v2447_v25 = vrot.slane %v2272_v24, 2 }
 0x252   :  { %v5727_v51 = vpop.permute.xlu1 %1876  ;;  %v5729_v26 = vpop.permute.xlu0 %1874  ;;  %v2440_v10 = vsel %vm2096_vm1, %v2435_v50, %v2439_v30  ;;  %v2274_v50 = vmul.f32 %v5246_v45, %v5491_v43  ;;  %v2444_v13 = vsel %vm2096_vm1, %v2439_v30, %v2443_v3  ;;  %v2446_v45 = vsel %vm2096_vm1, %v2441_v34, %v2445_v16 }
 0x253   :  { %8127 = vst [vmem:[#allocation256_spill] sm:$0xff] %v5727_v51  ;;  %8128 = vst [vmem:[#allocation257_spill] sm:$0xff] %v5729_v26  ;;  %v2449_v30 = vrot.slane %v2273_v55, 2  ;;  %v3382_v26 = vld [vmem:[%s7779_s1 + $0x28] sm:$0xff] }
 0x254   :  { %2559 = vrot.lane.b32.xlu1 %v2430_v29, %s3514_s22  ;;  %2557 = vrot.lane.b32.xlu0 %v2428_v18, %s3514_s22  ;;  %v2442_v18 = vsel %vm2096_vm1, %v2437_v46, %v2441_v34  ;;  %v8135_v46 = vld [vmem:[#allocation180_spill] sm:$0xff] }
 0x255   :  { %v2276_v42 = vmul.f32 %v8135_v46, %v5491_v43  ;;  %v2450_v14 = vsel %vm2096_vm1, %v2445_v16, %v2449_v30 }
 0x256   :  { %v5739_v15 = vpop.permute.xlu1 %1880  ;;  %v5741_v35 = vpop.permute.xlu0 %1878 }
 0x257   :  { %8129 = vst [vmem:[#allocation258_spill] sm:$0xff] %v5739_v15  ;;  %8130 = vst [vmem:[#allocation259_spill] sm:$0xff] %v5741_v35 }
 0x258   :  { %2563 = vrot.lane.b32.xlu1 %v2436_v7, %s3514_s22  ;;  %2561 = vrot.lane.b32.xlu0 %v2433_v58, %s3514_s22  ;;  %v2448_v7 = vsel %vm2096_vm1, %v2443_v3, %v2447_v25  ;;  %v2451_v58 = vrot.slane %v2274_v50, 2  ;;  %v8139_v3 = vld [vmem:[#allocation184_spill] sm:$0xff]  ;;  %v2455_v50 = vrot.slane %v2276_v42, 2 }
 0x259   :  { %v2278_v34 = vmul.f32 %v8139_v3, %v5491_v43 }
 0x25a   :  { %v5751_v29 = vpop.permute.xlu1 %1884  ;;  %v5753_v62 = vpop.permute.xlu0 %1882  ;;  %v2456_v3 = vsel %vm2096_vm1, %v2451_v58, %v2455_v50 }
 0x25b   :  { %8131 = vst [vmem:[#allocation260_spill] sm:$0xff] %v5751_v29  ;;  %8132 = vst [vmem:[#allocation261_spill] sm:$0xff] %v5753_v62 }
 0x25c   :  { %2567 = vrot.lane.b32.xlu1 %v2440_v10, %s3514_s22  ;;  %2565 = vrot.lane.b32.xlu0 %v2438_v11, %s3514_s22  ;;  %v2452_v11 = vsel %vm2096_vm1, %v2447_v25, %v2451_v58  ;;  %v8143_v25 = vld [vmem:[#allocation188_spill] sm:$0xff] }
 0x25e   :  { %v5763_v53 = vpop.permute.xlu1 %1888  ;;  %v5765_v38 = vpop.permute.xlu0 %1886 }
 0x25f   :  { %8133 = vst [vmem:[#allocation262_spill] sm:$0xff] %v5763_v53  ;;  %8134 = vst [vmem:[#allocation263_spill] sm:$0xff] %v5765_v38 }
 0x260   :  { %2571 = vrot.lane.b32.xlu1 %v2444_v13, %s3514_s22  ;;  %2569 = vrot.lane.b32.xlu0 %v2442_v18, %s3514_s22  ;;  %v2453_v13 = vrot.slane %v2275_v22, 2  ;;  %v8140_v18 = vld [vmem:[#allocation185_spill] sm:$0xff] }
 0x261   :  { %v2277_v55 = vmul.f32 %v8140_v18, %v5491_v43  ;;  %v8144_v22 = vld [vmem:[#allocation189_spill] sm:$0xff] }
 0x262   :  { %v5775_v10 = vpop.permute.xlu1 %1892  ;;  %v5777_v24 = vpop.permute.xlu0 %1890  ;;  %v2454_v16 = vsel %vm2096_vm1, %v2449_v30, %v2453_v13  ;;  %v2279_v18 = vmul.f32 %v8144_v22, %v5491_v43  ;;  %v8147_v30 = vld [vmem:[#allocation192_spill] sm:$0xff] }
 0x263   :  { %8137 = vst [vmem:[#allocation180_spill] sm:$0xff] %v5775_v10  ;;  %8138 = vst [vmem:[#allocation181_spill] sm:$0xff] %v5777_v24  ;;  %v2457_v42 = vrot.slane %v2277_v55, 2  ;;  %v2282_v55 = vmul.f32 %v8147_v30, %v5491_v43  ;;  %v8152_v30 = vld [vmem:[#allocation197_spill] sm:$0xff] }
 0x264   :  { %2575 = vrot.lane.b32.xlu1 %v2448_v7, %s3514_s22  ;;  %2573 = vrot.lane.b32.xlu0 %v2446_v45, %s3514_s22  ;;  %v2459_v7 = vrot.slane %v2278_v34, 2  ;;  %v2280_v45 = vmul.f32 %v8143_v25, %v5491_v43  ;;  %v2461_v58 = vrot.slane %v2279_v18, 2  ;;  %v8148_v25 = vld [vmem:[#allocation193_spill] sm:$0xff] }
 0x265   :  { %v2281_v22 = vmul.f32 %v8148_v25, %v5491_v43  ;;  %v2283_v25 = vmul.f32 %v8152_v30, %v5491_v43 }
 0x266   :  { %v5787_v46 = vpop.permute.xlu1 %1896  ;;  %v5789_v41 = vpop.permute.xlu0 %1894  ;;  %v2463_v34 = vrot.slane %v2280_v45, 2  ;;  %v8151_v45 = vld [vmem:[#allocation196_spill] sm:$0xff] }
 0x267   :  { %8141 = vst [vmem:[#allocation184_spill] sm:$0xff] %v5787_v46  ;;  %8142 = vst [vmem:[#allocation185_spill] sm:$0xff] %v5789_v41  ;;  %v2465_v18 = vrot.slane %v2281_v22, 2  ;;  %v8156_v22 = vld [vmem:[#allocation201_spill] sm:$0xff] }
 0x268   :  { %2579 = vrot.lane.b32.xlu1 %v2452_v11, %s3514_s22  ;;  %2577 = vrot.lane.b32.xlu0 %v2450_v14, %s3514_s22  ;;  %v2460_v11 = vsel %vm2096_vm1, %v2455_v50, %v2459_v7  ;;  %v2458_v14 = vsel %vm2096_vm1, %v2453_v13, %v2457_v42  ;;  %v2464_v50 = vsel %vm2096_vm1, %v2459_v7, %v2463_v34  ;;  %v8155_v7 = vld [vmem:[#allocation200_spill] sm:$0xff] }
 0x269   :  { %v2284_v13 = vmul.f32 %v8151_v45, %v5491_v43  ;;  %v2285_v30 = vmul.f32 %v8156_v22, %v5491_v43 }
 0x26a   :  { %v5799_v24 = vpop.permute.xlu1 %1900  ;;  %v5801_v46 = vpop.permute.xlu0 %1898 }
 0x26b   :  { %8145 = vst [vmem:[#allocation188_spill] sm:$0xff] %v5799_v24  ;;  %8146 = vst [vmem:[#allocation189_spill] sm:$0xff] %v5801_v46 }
 0x26c   :  { %2583 = vrot.lane.b32.xlu1 %v2456_v3, %s3514_s22  ;;  %2581 = vrot.lane.b32.xlu0 %v2454_v16, %s3514_s22  ;;  %v2462_v3 = vsel %vm2096_vm1, %v2457_v42, %v2461_v58  ;;  %v2467_v16 = vrot.slane %v2282_v55, 2  ;;  %v2466_v42 = vsel %vm2096_vm1, %v2461_v58, %v2465_v18  ;;  %v2469_v55 = vrot.slane %v2283_v25, 2  ;;  %v8159_v58 = vld [vmem:[#allocation204_spill] sm:$0xff] }
 0x26d   :  { %v2288_v25 = vmul.f32 %v8159_v58, %v5491_v43  ;;  %v8164_v58 = vld [vmem:[#allocation209_spill] sm:$0xff] }
 0x26e   :  { %v5811_v41 = vpop.permute.xlu1 %1904  ;;  %v5813_v24 = vpop.permute.xlu0 %1902  ;;  %v2468_v45 = vsel %vm2096_vm1, %v2463_v34, %v2467_v16  ;;  %v2473_v34 = vrot.slane %v2285_v30, 2 }
 0x26f   :  { %8149 = vst [vmem:[#allocation192_spill] sm:$0xff] %v5811_v41  ;;  %8150 = vst [vmem:[#allocation193_spill] sm:$0xff] %v5813_v24 }
 0x270   :  { %2587 = vrot.lane.b32.xlu1 %v2460_v11, %s3514_s22  ;;  %2585 = vrot.lane.b32.xlu0 %v2458_v14, %s3514_s22  ;;  %v2471_v11 = vrot.slane %v2284_v13, 2  ;;  %v2286_v14 = vmul.f32 %v8155_v7, %v5491_v43  ;;  %v8160_v7 = vld [vmem:[#allocation205_spill] sm:$0xff] }
 0x271   :  { %v2287_v22 = vmul.f32 %v8160_v7, %v5491_v43 }
 0x272   :  { %v5823_v46 = vpop.permute.xlu1 %1908  ;;  %v5825_v41 = vpop.permute.xlu0 %1906  ;;  %v2475_v13 = vrot.slane %v2286_v14, 2  ;;  %v8163_v14 = vld [vmem:[#allocation208_spill] sm:$0xff] }
 0x273   :  { %8153 = vst [vmem:[#allocation196_spill] sm:$0xff] %v5823_v46  ;;  %8154 = vst [vmem:[#allocation197_spill] sm:$0xff] %v5825_v41  ;;  %v2477_v30 = vrot.slane %v2287_v22, 2  ;;  %v8168_v22 = vld [vmem:[#allocation213_spill] sm:$0xff] }
 0x274   :  { %2591 = vrot.lane.b32.xlu1 %v2464_v50, %s3514_s22  ;;  %2589 = vrot.lane.b32.xlu0 %v2462_v3, %s3514_s22  ;;  %v2472_v50 = vsel %vm2096_vm1, %v2467_v16, %v2471_v11  ;;  %v2470_v3 = vsel %vm2096_vm1, %v2465_v18, %v2469_v55  ;;  %v2476_v16 = vsel %vm2096_vm1, %v2471_v11, %v2475_v13  ;;  %v8167_v11 = vld [vmem:[#allocation212_spill] sm:$0xff] }
 0x275   :  { %v2290_v18 = vmul.f32 %v8163_v14, %v5491_v43 }
 0x276   :  { %v5835_v24 = vpop.permute.xlu1 %1912  ;;  %v5837_v46 = vpop.permute.xlu0 %1910 }
 0x277   :  { %8157 = vst [vmem:[#allocation200_spill] sm:$0xff] %v5835_v24  ;;  %8158 = vst [vmem:[#allocation201_spill] sm:$0xff] %v5837_v46  ;;  %v2289_v46 = vmul.f32 %v8164_v58, %v5491_v43 }
 0x278   :  { %2595 = vrot.lane.b32.xlu1 %v2468_v45, %s3514_s22  ;;  %2593 = vrot.lane.b32.xlu0 %v2466_v42, %s3514_s22  ;;  %v2474_v45 = vsel %vm2096_vm1, %v2469_v55, %v2473_v34  ;;  %v2479_v42 = vrot.slane %v2288_v25, 2  ;;  %v2478_v55 = vsel %vm2096_vm1, %v2473_v34, %v2477_v30 }
 0x279   :  { %v2481_v25 = vrot.slane %v2289_v46, 2  ;;  %v8171_v46 = vld [vmem:[#allocation216_spill] sm:$0xff] }
 0x27a   :  { %v5847_v41 = vpop.permute.xlu1 %1916  ;;  %v5849_v24 = vpop.permute.xlu0 %1914  ;;  %v2480_v14 = vsel %vm2096_vm1, %v2475_v13, %v2479_v42  ;;  %v2294_v34 = vmul.f32 %v8171_v46, %v5491_v43 }
 0x27b   :  { %8161 = vst [vmem:[#allocation204_spill] sm:$0xff] %v5847_v41  ;;  %8162 = vst [vmem:[#allocation205_spill] sm:$0xff] %v5849_v24  ;;  %v2291_v24 = vmul.f32 %v8168_v22, %v5491_v43  ;;  %v2482_v13 = vsel %vm2096_vm1, %v2477_v30, %v2481_v25 }
 0x27c   :  { %2599 = vrot.lane.b32.xlu1 %v2472_v50, %s3514_s22  ;;  %2597 = vrot.lane.b32.xlu0 %v2470_v3, %s3514_s22  ;;  %v2483_v50 = vrot.slane %v2290_v18, 2  ;;  %v2292_v3 = vmul.f32 %v8167_v11, %v5491_v43  ;;  %v8172_v11 = vld [vmem:[#allocation217_spill] sm:$0xff]  ;;  %v2491_v46 = vrot.slane %v2294_v34, 2 }
 0x27d   :  { %v2293_v38 = vmul.f32 %v8172_v11, %v5491_v43 }
 0x27e   :  { %v5859_v10 = vpop.permute.xlu1 %1920  ;;  %v5861_v41 = vpop.permute.xlu0 %1918  ;;  %v2487_v18 = vrot.slane %v2292_v3, 2  ;;  %v3377_v3 = vld [vmem:[%s7779_s1 + $0x210] sm:$0x3] }
 0x27f   :  { %8165 = vst [vmem:[#allocation208_spill] sm:$0xff] %v5859_v10  ;;  %8166 = vst [vmem:[#allocation209_spill] sm:$0xff] %v5861_v41 }
 0x280   :  { %2603 = vrot.lane.b32.xlu1 %v2476_v16, %s3514_s22  ;;  %2601 = vrot.lane.b32.xlu0 %v2474_v45, %s3514_s22  ;;  %v2484_v16 = vsel %vm2096_vm1, %v2479_v42, %v2483_v50  ;;  %v2485_v45 = vrot.slane %v2291_v24, 2  ;;  %v2488_v42 = vsel %vm2096_vm1, %v2483_v50, %v2487_v18  ;;  %v3376_v24 = vld [vmem:[%s7779_s1 + $0x218] sm:$0x3] }
 0x281   :  { %v2296_v30 = vmul.f32 %v3376_v24, %v5491_v43 }
 0x282   :  { %v5871_v10 = vpop.permute.xlu1 %1924  ;;  %v5873_v41 = vpop.permute.xlu0 %1922 }
 0x283   :  { %8169 = vst [vmem:[#allocation212_spill] sm:$0xff] %v5871_v10  ;;  %8170 = vst [vmem:[#allocation213_spill] sm:$0xff] %v5873_v41  ;;  %v2495_v24 = vrot.slane %v2296_v30, 2  ;;  %v5920_v30 = vld [vmem:[%s7779_s1] sm:$0xff] }
 0x284   :  { %2607 = vrot.lane.b32.xlu1 %v2480_v14, %s3514_s22  ;;  %2605 = vrot.lane.b32.xlu0 %v2478_v55, %s3514_s22  ;;  %v2295_v14 = vmul.f32 %v3377_v3, %v5491_v43  ;;  %v2486_v55 = vsel %vm2096_vm1, %v2481_v25, %v2485_v45  ;;  %v3378_v43 = vld [vmem:[%s7779_s1 + $0x8] sm:$0xff]  ;;  %v2492_v3 = vsel %vm2096_vm1, %v2487_v18, %v2491_v46 }
 0x285   :  { %8177 = vst [vmem:[#allocation266_spill] sm:$0xff] %v5920_v30 }
 0x286   :  { %v5883_v53 = vpop.permute.xlu1 %1928  ;;  %v5885_v10 = vpop.permute.xlu0 %1926 }
 0x287   :  { %8173 = vst [vmem:[#allocation216_spill] sm:$0xff] %v5883_v53  ;;  %8174 = vst [vmem:[#allocation217_spill] sm:$0xff] %v5885_v10  ;;  %v5899_v10 = vstv %s3303_s13  ;;  %v2493_v53 = vrot.slane %v2295_v14, 2 }
 0x288   :  { %2611 = vrot.lane.b32.xlu1 %v2484_v16, %s3514_s22  ;;  %2609 = vrot.lane.b32.xlu0 %v2482_v13, %s3514_s22  ;;  %v2489_v16 = vrot.slane %v2293_v38, 2  ;;  %v2724_v25 = vmul.f32 %v3378_v43, %v5899_v10  ;;  %v3379_v38 = vld [vmem:[%s7779_s1 + $0x18] sm:$0xff]  ;;  %v2723_v14 = vmul.f32 %v5920_v30, %v5899_v10  ;;  %v2728_v51 = vmul.f32 %v3382_v26, %v5899_v10 }
 0x289   :  { %v2726_v34 = vmul.f32 %v3379_v38, %v5899_v10  ;;  %v3384_v26 = vld [vmem:[%s7779_s1 + $0x38] sm:$0xff]  ;;  %v6204_v27 = vmul.f32 %v3404_v54, %v5899_v10 }
 0x28a   :  { %v5901_v13 = vpop.permute.xlu1 %2499  ;;  %v5903_v50 = vpop.permute.xlu0 %2497  ;;  %v2494_v41 = vsel %vm2096_vm1, %v2489_v16, %v2493_v53  ;;  %v2862_v62 = vrot.slane %v2724_v25, 2  ;;  %v2859_v35 = vrot.slane %v2723_v14, 2  ;;  %v5963_v25 = vld [vmem:[%s7779_s1 + $0x30] sm:$0xff] }
 0x28b   :  { %8175 = vst [vmem:[#allocation264_spill] sm:$0xff] %v5901_v13  ;;  %8176 = vst [vmem:[#allocation265_spill] sm:$0xff] %v5903_v50  ;;  %v2863_v29 = vrot.slane %v2726_v34, 2  ;;  %v2729_v34 = vmul.f32 %v5963_v25, %v5899_v10 }
 0x28c   :  { %2615 = vrot.lane.b32.xlu1 %v2488_v42, %s3514_s22  ;;  %2613 = vrot.lane.b32.xlu0 %v2486_v55, %s3514_s22  ;;  %v2490_v42 = vsel %vm2096_vm1, %v2485_v45, %v2489_v16  ;;  %v5927_v55 = vld [vmem:[%s7779_s1 + $0x10] sm:$0xff]  ;;  %v2496_v45 = vsel %vm2096_vm1, %v2491_v46, %v2495_v24  ;;  %v2730_v16 = vmul.f32 %v3384_v26, %v5899_v10 }
 0x28d   :  { %8178 = vst [vmem:[#allocation267_spill] sm:$0xff] %v5927_v55  ;;  %v2725_v43 = vmul.f32 %v5927_v55, %v5899_v10  ;;  %v2869_v63 = vrot.slane %v2729_v34, 2 }
 0x28e   :  { %v5931_v38 = vpop.permute.xlu1 %2503  ;;  %v5933_v18 = vpop.permute.xlu0 %2501  ;;  %v2871_v26 = vrot.slane %v2730_v16, 2 }
 0x28f   :  { %8179 = vst [vmem:[#allocation268_spill] sm:$0xff] %v5931_v38  ;;  %8180 = vst [vmem:[#allocation269_spill] sm:$0xff] %v5933_v18  ;;  %v2860_v15 = vrot.slane %v2725_v43, 2  ;;  %v2867_v43 = vrot.slane %v2728_v51, 2  ;;  %v3386_v51 = vld [vmem:[%s7779_s1 + $0x48] sm:$0xff] }
 0x290   :  { %2619 = vrot.lane.b32.xlu1 %v2492_v3, %s3514_s22  ;;  %2617 = vrot.lane.b32.xlu0 %v2490_v42, %s3514_s22  ;;  %v5946_v3 = vld [vmem:[%s7779_s1 + $0x20] sm:$0xff]  ;;  %v2864_v42 = vsel %vm2096_vm1, %v2862_v62, %v2863_v29 }
 0x291   :  { %8181 = vst [vmem:[#allocation270_spill] sm:$0xff] %v5946_v3  ;;  %v2727_v46 = vmul.f32 %v5946_v3, %v5899_v10  ;;  %v2861_v14 = vsel %vm2096_vm1, %v2859_v35, %v2860_v15  ;;  %v2868_v4 = vsel %vm2096_vm1, %v2863_v29, %v2867_v43  ;;  %v2732_v35 = vmul.f32 %v3386_v51, %v5899_v10  ;;  %v5984_v62 = vld [vmem:[%s7779_s1 + $0x40] sm:$0xff]  ;;  %v3388_v51 = vld [vmem:[%s7779_s1 + $0x58] sm:$0xff] }
 0x292   :  { %v5950_v24 = vpop.permute.xlu1 %2507  ;;  %v5952_v53 = vpop.permute.xlu0 %2505  ;;  %v6000_v37 = vmul.f32 %v3388_v51, %v5899_v10  ;;  %v6030_v51 = vld [vmem:[%s7779_s1 + $0x60] sm:$0xff] }
 0x293   :  { %8182 = vst [vmem:[#allocation271_spill] sm:$0xff] %v5950_v24  ;;  %8183 = vst [vmem:[#allocation272_spill] sm:$0xff] %v5952_v53  ;;  %v6034_v23 = vmul.f32 %v6030_v51, %v5899_v10  ;;  %v6188_v53 = vld [vmem:[%s7779_s1 + $0x120] sm:$0xff] }
 0x294   :  { %2623 = vrot.lane.b32.xlu1 %v2496_v45, %s3514_s22  ;;  %2621 = vrot.lane.b32.xlu0 %v2494_v41, %s3514_s22  ;;  %v2865_v41 = vrot.slane %v2727_v46, 2  ;;  %s93_s22 = sld [smem:[#allocation2]]  ;;  %v2731_v46 = vmul.f32 %v5984_v62, %v5899_v10  ;;  %v2879_v36 = vrot.slane %v6000_v37, 2 }
 0x295   :  { %v2881_v57 = vrot.slane %v6034_v23, 2 }
 0x296   :  { %v5969_v45 = vpop.permute.xlu1 %2511  ;;  %v5971_v12 = vpop.permute.xlu0 %2509  ;;  %v2866_v59 = vsel %vm2096_vm1, %v2860_v15, %v2865_v41  ;;  %v2872_v15 = vsel %vm2096_vm1, %v2867_v43, %v2871_v26  ;;  %v2870_v29 = vsel %vm2096_vm1, %v2865_v41, %v2869_v63 }
 0x297   :  { %8184 = vst [vmem:[#allocation273_spill] sm:$0xff] %v5969_v45  ;;  %8185 = vst [vmem:[#allocation274_spill] sm:$0xff] %v5971_v12  ;;  %v6167_v45 = vld [vmem:[%s7779_s1 + $0xf0] sm:$0xff] }
 0x298   :  { %2993 = vrot.lane.b32.xlu1 %v2864_v42, %s3515_s4  ;;  %2991 = vrot.lane.b32.xlu0 %v2861_v14, %s3515_s4  ;;  %v2875_v42 = vrot.slane %v2732_v35, 2  ;;  %v2873_v14 = vrot.slane %v2731_v46, 2  ;;  %v3390_v35 = vld [vmem:[%s7779_s1 + $0x68] sm:$0xff] }
 0x299   :  { %v6025_v46 = vmul.f32 %v3390_v35, %v5899_v10 }
 0x29a   :  { %v5988_v16 = vpop.permute.xlu1 %2515  ;;  %v5990_v34 = vpop.permute.xlu0 %2513  ;;  %v6015_v41 = vstv %s93_s22  ;;  %v2880_v5 = vsel %vm2096_vm1, %v2875_v42, %v2879_v36 }
 0x29b   :  { %8186 = vst [vmem:[#allocation275_spill] sm:$0xff] %v5988_v16  ;;  %8187 = vst [vmem:[#allocation276_spill] sm:$0xff] %v5990_v34  ;;  %v6042_v35 = vmul.f32 %v5927_v55, %v6015_v41  ;;  %v6046_v8 = vmul.f32 %v5920_v30, %v6015_v41  ;;  %v6050_v28 = vmul.f32 %v5946_v3, %v6015_v41 }
 0x29c   :  { %2997 = vrot.lane.b32.xlu1 %v2868_v4, %s3515_s4  ;;  %2995 = vrot.lane.b32.xlu0 %v2866_v59, %s3515_s4  ;;  %v6009_v59 = vmul.f32 %v6005_v17, %v5899_v10  ;;  %v6066_v0 = vmul.f32 %v6005_v17, %v6015_v41  ;;  %v6070_v31 = vmul.f32 %v6030_v51, %v6015_v41 }
 0x29d   :  { %v6079_v21 = vmul.f32 %v6075_v48, %v6015_v41  ;;  %v6088_v33 = vmul.f32 %v6084_v9, %v6015_v41  ;;  %v6149_v34 = vmul.f32 %v6145_v39, %v6015_v41  ;;  %v6162_v12 = vmul.f32 %v6158_v40, %v6015_v41 }
 0x29e   :  { %v6011_v4 = vpop.permute.xlu1 %2519  ;;  %v6013_v43 = vpop.permute.xlu0 %2517  ;;  %v2877_v6 = vrot.slane %v6009_v59, 2  ;;  %v6062_v59 = vmul.f32 %v5984_v62, %v6015_v41  ;;  %v6171_v52 = vmul.f32 %v6167_v45, %v6015_v41  ;;  %v6192_v24 = vmul.f32 %v6188_v53, %v6015_v41 }
 0x29f   :  { %8188 = vst [vmem:[#allocation277_spill] sm:$0xff] %v6011_v4  ;;  %8189 = vst [vmem:[#allocation278_spill] sm:$0xff] %v6013_v43  ;;  %v3395_v4 = vld [vmem:[%s7779_s1 + $0x78] sm:$0xff]  ;;  %v6245_v49 = vmul.f32 %v6241_v32, %v6015_v41 }
 0x2a0   :  { %3001 = vrot.lane.b32.xlu1 %v2872_v15, %s3515_s4  ;;  %2999 = vrot.lane.b32.xlu0 %v2870_v29, %s3515_s4  ;;  %v2876_v15 = vsel %vm2096_vm1, %v2871_v26, %v2875_v42  ;;  %v2874_v29 = vsel %vm2096_vm1, %v2869_v63, %v2873_v14  ;;  %v6054_v26 = vmul.f32 %v5963_v25, %v6015_v41  ;;  %v6127_v42 = vld [vmem:[%s7779_s1 + $0xb0] sm:$0xff] }
 0x2a1   :  { %v2878_v43 = vsel %vm2096_vm1, %v2873_v14, %v2877_v6  ;;  %v6109_v47 = vmul.f32 %v3395_v4, %v5899_v10  ;;  %v6131_v14 = vmul.f32 %v6127_v42, %v6015_v41  ;;  %v6136_v4 = vld [vmem:[%s7779_s1 + $0xc0] sm:$0xff]  ;;  %8194 = vst [vmem:[#allocation283_spill] sm:$0xff] %v6192_v24  ;;  %v2882_v44 = vsel %vm2096_vm1, %v2877_v6, %v2881_v57 }
 0x2a2   :  { %v6056_v63 = vpop.permute.xlu1 %2523  ;;  %v6058_v37 = vpop.permute.xlu0 %2521  ;;  %v6222_v6 = vld [vmem:[%s7779_s1 + $0x140] sm:$0xff]  ;;  %8199 = vst [vmem:[#allocation288_spill] sm:$0xff] %v6245_v49 }
 0x2a3   :  { %8190 = vst [vmem:[#allocation279_spill] sm:$0xff] %v6056_v63  ;;  %8191 = vst [vmem:[#allocation280_spill] sm:$0xff] %v6058_v37  ;;  %v6097_v37 = vmul.f32 %v6093_v1, %v6015_v41  ;;  %v2883_v63 = vrot.slane %v6025_v46, 2  ;;  %v6118_v46 = vld [vmem:[%s7779_s1 + $0xa0] sm:$0xff]  ;;  %v2887_v18 = vrot.slane %v6109_v47, 2  ;;  %v6226_v54 = vmul.f32 %v6222_v6, %v6015_v41 }
 0x2a4   :  { %3005 = vrot.lane.b32.xlu1 %v2876_v15, %s3515_s4  ;;  %3003 = vrot.lane.b32.xlu0 %v2874_v29, %s3515_s4  ;;  %v6113_v15 = vmul.f32 %v6075_v48, %v5899_v10  ;;  %v6122_v23 = vmul.f32 %v6118_v46, %v6015_v41  ;;  %v6140_v29 = vmul.f32 %v6136_v4, %v6015_v41 }
 0x2a5   :  { %v2884_v61 = vsel %vm2096_vm1, %v2879_v36, %v2883_v63  ;;  %v6213_v36 = vld [vmem:[%s7779_s1 + $0x130] sm:$0xff]  ;;  %8196 = vst [vmem:[#allocation285_spill] sm:$0xff] %v6226_v54 }
 0x2a6   :  { %v6151_v16 = vpop.permute.xlu1 %2527  ;;  %v6153_v60 = vpop.permute.xlu0 %2525  ;;  %v2885_v38 = vrot.slane %v6113_v15, 2  ;;  %v6217_v47 = vmul.f32 %v6213_v36, %v6015_v41  ;;  %v6232_v15 = vmul.f32 %v5927_v55, %v6183_v2  ;;  %v6254_v55 = vmul.f32 %v6250_v56, %v6015_v41 }
 0x2a7   :  { %8192 = vst [vmem:[#allocation281_spill] sm:$0xff] %v6151_v16  ;;  %8193 = vst [vmem:[#allocation282_spill] sm:$0xff] %v6153_v60  ;;  %v6176_v60 = vld [vmem:[%s7779_s1 + $0x110] sm:$0xff] }
 0x2a8   :  { %v6180_v16 = vmul.f32 %v6176_v60, %v6015_v41  ;;  %3009 = vrot.lane.b32.xlu1 %v2880_v5, %s3515_s4  ;;  %3007 = vrot.lane.b32.xlu0 %v2878_v43, %s3515_s4  ;;  %v6208_v5 = vmul.f32 %v6084_v9, %v5899_v10  ;;  %8195 = vst [vmem:[#allocation284_spill] sm:$0xff] %v6217_v47  ;;  %8201 = vst [vmem:[#allocation290_spill] sm:$0xff] %v6254_v55  ;;  %v6277_v55 = vld [vmem:[%s7779_s1 + $0x190] sm:$0xff]  ;;  %v909_v56 = vrot.slane %v6232_v15, 1 }
 0x2a9   :  { %v839_v43 = vmul.f32 %v5920_v30, %v6183_v2  ;;  %v6268_v30 = vld [vmem:[%s7779_s1 + $0x180] sm:$0xff]  ;;  %8206 = vst [vmem:[#allocation295_spill] sm:$0xff] %v6277_v55  ;;  %v6281_v54 = vmul.f32 %v6277_v55, %v6015_v41  ;;  %v2888_v47 = vsel %vm2096_vm1, %v2883_v63, %v2887_v18  ;;  %v2886_v55 = vsel %vm2096_vm1, %v2881_v57, %v2885_v38 }
 0x2aa   :  { %v6234_v50 = vpop.permute.xlu1 %2531  ;;  %v6236_v13 = vpop.permute.xlu0 %2529  ;;  %8204 = vst [vmem:[#allocation293_spill] sm:$0xff] %v6268_v30  ;;  %v6272_v49 = vmul.f32 %v6268_v30, %v6015_v41  ;;  %v6293_v30 = vmul.f32 %v6093_v1, %v5899_v10  ;;  %v841_v63 = vmul.f32 %v5946_v3, %v6183_v2  ;;  %v8216_v3 = vld [vmem:[#allocation23_spill] sm:$0xff] }
 0x2ab   :  { %8197 = vst [vmem:[#allocation286_spill] sm:$0xff] %v6234_v50  ;;  %8198 = vst [vmem:[#allocation287_spill] sm:$0xff] %v6236_v13  ;;  %v6259_v13 = vld [vmem:[%s7779_s1 + $0x170] sm:$0xff] }
 0x2ac   :  { %8202 = vst [vmem:[#allocation291_spill] sm:$0xff] %v6259_v13  ;;  %v6263_v50 = vmul.f32 %v6259_v13, %v6015_v41  ;;  %8205 = vst [vmem:[#allocation294_spill] sm:$0xff] %v6272_v49  ;;  %3013 = vrot.lane.b32.xlu1 %v2884_v61, %s3515_s4  ;;  %3011 = vrot.lane.b32.xlu0 %v2882_v44, %s3515_s4  ;;  %v2889_v61 = vrot.slane %v6208_v5, 2  ;;  %v6302_v44 = vld [vmem:[%s7779_s1 + $0x1a0] sm:$0xff]  ;;  %v908_v13 = vrot.slane %v839_v43, 1  ;;  %v6318_v5 = vld [vmem:[%s7779_s1 + $0x1b0] sm:$0xff] }
 0x2ad   :  { %8207 = vst [vmem:[#allocation296_spill] sm:$0xff] %v6281_v54  ;;  %v2891_v54 = vrot.slane %v6204_v27, 2  ;;  %8211 = vst [vmem:[#allocation300_spill] sm:$0xff] %v6318_v5  ;;  %v6322_v24 = vmul.f32 %v6318_v5, %v6015_v41  ;;  %v6327_v43 = vld [vmem:[%s7779_s1 + $0x1c0] sm:$0xff]  ;;  %v6344_v5 = vmul.f32 %v8164_v58, %v6015_v41  ;;  %v2743_v58 = vmul.f32 %v6118_v46, %v5899_v10 }
 0x2ae   :  { %8203 = vst [vmem:[#allocation292_spill] sm:$0xff] %v6263_v50  ;;  %v3412_v50 = vld [vmem:[%s7779_s1 + $0x98] sm:$0xff]  ;;  %v6311_v57 = vpop.permute.xlu1 %2535  ;;  %v6313_v27 = vpop.permute.xlu0 %2533  ;;  %8213 = vst [vmem:[#allocation302_spill] sm:$0xff] %v6327_v43  ;;  %v6331_v15 = vmul.f32 %v6327_v43, %v6015_v41  ;;  %v8224_v43 = vld [vmem:[#allocation22_spill] sm:$0xff] }
 0x2af   :  { %v6289_v49 = vmul.f32 %v3412_v50, %v5899_v10  ;;  %v6306_v50 = vmul.f32 %v6302_v44, %v6015_v41  ;;  %8209 = vst [vmem:[#allocation298_spill] sm:$0xff] %v6311_v57  ;;  %8210 = vst [vmem:[#allocation299_spill] sm:$0xff] %v6313_v27  ;;  %v6335_v27 = vmul.f32 %v8160_v7, %v6015_v41  ;;  %v2893_v7 = vrot.slane %v6293_v30, 2 }
 0x2b0   :  { %8212 = vst [vmem:[#allocation301_spill] sm:$0xff] %v6322_v24  ;;  %8214 = vst [vmem:[#allocation303_spill] sm:$0xff] %v6331_v15  ;;  %v842_v57 = vmul.f32 %v5963_v25, %v6183_v2  ;;  %3017 = vrot.lane.b32.xlu1 %v2888_v47, %s3515_s4  ;;  %3015 = vrot.lane.b32.xlu0 %v2886_v55, %s3515_s4  ;;  %v2890_v25 = vsel %vm2096_vm1, %v2885_v38, %v2889_v61  ;;  %v911_v38 = vrot.slane %v841_v63, 1 }
 0x2b1   :  { %8208 = vst [vmem:[#allocation297_spill] sm:$0xff] %v6306_v50  ;;  %8215 = vst [vmem:[#allocation304_spill] sm:$0xff] %v6335_v27  ;;  %v8217_v50 = vld [vmem:[#allocation21_spill] sm:$0xff]  ;;  %v2895_v15 = vrot.slane %v6289_v49, 2  ;;  %v2892_v27 = vsel %vm2096_vm1, %v2887_v18, %v2891_v54  ;;  %v6360_v55 = vmul.f32 %v8168_v22, %v6015_v41  ;;  %v6364_v49 = vmul.f32 %v8172_v11, %v6015_v41 }
 0x2b2   :  { %v387_v24 = vsel %vm385_vm2, %v8217_v50, %v8216_v3  ;;  %8218 = vst [vmem:[#allocation23_spill] sm:$0xff] %v6344_v5  ;;  %v3416_v3 = vld [vmem:[%s7779_s1 + $0xa8] sm:$0xff]  ;;  %v6367_v30 = vsel %vm907_vm0, %v908_v13, %v909_v56  ;;  %v6369_v18 = vpop.permute.xlu1 %2539  ;;  %v6371_v47 = vpop.permute.xlu0 %2537  ;;  %v8223_v5 = vld [vmem:[#allocation24_spill] sm:$0xff]  ;;  %v843_v11 = vmul.f32 %v5984_v62, %v6183_v2 }
 0x2b3   :  { %v2744_v50 = vmul.f32 %v3416_v3, %v5899_v10  ;;  %8219 = vst [vmem:[#allocation21_spill] sm:$0xff] %v6360_v55  ;;  %8220 = vst [vmem:[#allocation305_spill] sm:$0xff] %v6364_v49  ;;  %v6374_v3 = vadd.f32 %v387_v24, %v6042_v35  ;;  %v386_v22 = vsel %vm385_vm2, %v8224_v43, %v8223_v5  ;;  %v913_v55 = vrot.slane %v842_v57, 1  ;;  %v8225_v41 = vld [vmem:[#allocation25_spill] sm:$0xff]  ;;  %v8226_v49 = vld [vmem:[#allocation26_spill] sm:$0xff] }
 0x2b4   :  { %8221 = vst [vmem:[#allocation306_spill] sm:$0xff] %v6369_v18  ;;  %8222 = vst [vmem:[#allocation307_spill] sm:$0xff] %v6371_v47  ;;  %v388_v13 = vsel %vm385_vm2, %v8226_v49, %v8225_v41  ;;  %3021 = vrot.lane.b32.xlu1 %v2892_v27, %s3515_s4  ;;  %3019 = vrot.lane.b32.xlu0 %v2890_v25, %s3515_s4  ;;  %v2896_v63 = vsel %vm2096_vm1, %v2891_v54, %v2895_v15  ;;  %v2897_v47 = vrot.slane %v2743_v58, 2  ;;  %v3417_v57 = vld [vmem:[%s7779_s1 + $0xb8] sm:$0xff]  ;;  %v8230_v41 = vld [vmem:[#allocation28_spill] sm:$0xff] }
 0x2b5   :  { %v2894_v24 = vsel %vm2096_vm1, %v2889_v61, %v2893_v7  ;;  %v2899_v35 = vrot.slane %v2744_v50, 2  ;;  %v2746_v62 = vmul.f32 %v3417_v57, %v5899_v10  ;;  %v2745_v5 = vmul.f32 %v6127_v42, %v5899_v10  ;;  %v8229_v49 = vld [vmem:[#allocation27_spill] sm:$0xff]  ;;  %v8232_v57 = vld [vmem:[#allocation29_spill] sm:$0xff] }
 0x2b6   :  { %v6395_v43 = vadd.f32 %v386_v22, %v6046_v8  ;;  %v6398_v27 = vsel %vm907_vm0, %v909_v56, %v911_v38  ;;  %v844_v54 = vmul.f32 %v6005_v17, %v6183_v2  ;;  %v845_v61 = vmul.f32 %v6030_v51, %v6183_v2  ;;  %v6404_v25 = vpop.permute.xlu1 %2543  ;;  %v6406_v50 = vpop.permute.xlu0 %2541  ;;  %v8233_v17 = vld [vmem:[#allocation30_spill] sm:$0xff] }
 0x2b7   :  { %8227 = vst [vmem:[#allocation24_spill] sm:$0xff] %v6404_v25  ;;  %8228 = vst [vmem:[#allocation22_spill] sm:$0xff] %v6406_v50  ;;  %v6409_v58 = vadd.f32 %v388_v13, %v6050_v28  ;;  %v389_v8 = vsel %vm385_vm2, %v8230_v41, %v8229_v49  ;;  %v6415_v56 = vsel %vm907_vm0, %v911_v38, %v913_v55  ;;  %v915_v22 = vrot.slane %v843_v11, 1  ;;  %v3418_v28 = vld [vmem:[%s7779_s1 + $0xc8] sm:$0xff] }
 0x2b8   :  { %8231 = vst [vmem:[#allocation25_spill] sm:$0xff] %v6415_v56  ;;  %v390_v18 = vsel %vm385_vm2, %v8233_v17, %v8232_v57  ;;  %3025 = vrot.lane.b32.xlu1 %v2896_v63, %s3515_s4  ;;  %3023 = vrot.lane.b32.xlu0 %v2894_v24, %s3515_s4  ;;  %v6426_v51 = vmul.f32 %v3418_v28, %v5899_v10  ;;  %v2903_v49 = vrot.slane %v2746_v62, 2  ;;  %v2901_v41 = vrot.slane %v2745_v5, 2  ;;  %v8237_v56 = vld [vmem:[#allocation32_spill] sm:$0xff]  ;;  %v8238_v5 = vld [vmem:[#allocation33_spill] sm:$0xff] }
 0x2b9   :  { %v6430_v38 = vmul.f32 %v6136_v4, %v5899_v10  ;;  %v2900_v11 = vsel %vm2096_vm1, %v2895_v15, %v2899_v35  ;;  %v2898_v13 = vsel %vm2096_vm1, %v2893_v7, %v2897_v47  ;;  %v6435_v63 = vadd.f32 %v389_v8, %v6054_v26  ;;  %v8236_v15 = vld [vmem:[#allocation31_spill] sm:$0xff] }
 0x2ba   :  { %v917_v24 = vrot.slane %v844_v54, 1  ;;  %v919_v57 = vrot.slane %v845_v61, 1  ;;  %v846_v17 = vmul.f32 %v6075_v48, %v6183_v2  ;;  %v6439_v28 = vpop.permute.xlu1 %2547  ;;  %v6441_v50 = vpop.permute.xlu0 %2545  ;;  %v6444_v25 = vadd.f32 %v390_v18, %v6062_v59  ;;  %v8239_v54 = vld [vmem:[#allocation34_spill] sm:$0xff]  ;;  %v3419_v8 = vld [vmem:[%s7779_s1 + $0xd8] sm:$0xff] }
 0x2bb   :  { %8234 = vst [vmem:[#allocation26_spill] sm:$0xff] %v6439_v28  ;;  %8235 = vst [vmem:[#allocation27_spill] sm:$0xff] %v6441_v50  ;;  %v391_v7 = vsel %vm385_vm2, %v8237_v56, %v8236_v15  ;;  %v6450_v62 = vsel %vm907_vm0, %v913_v55, %v915_v22  ;;  %v847_v26 = vmul.f32 %v6084_v9, %v6183_v2  ;;  %v2907_v59 = vrot.slane %v6426_v51, 2  ;;  %v8254_v28 = vld [vmem:[#allocation43_spill] sm:$0xff] }
 0x2bc   :  { %v392_v48 = vsel %vm385_vm2, %v8239_v54, %v8238_v5  ;;  %v6459_v61 = vmul.f32 %v6093_v1, %v6183_v2  ;;  %3029 = vrot.lane.b32.xlu1 %v2900_v11, %s3515_s4  ;;  %3027 = vrot.lane.b32.xlu0 %v2898_v13, %s3515_s4  ;;  %v2905_v55 = vrot.slane %v6430_v38, 2  ;;  %v2904_v18 = vsel %vm2096_vm1, %v2899_v35, %v2903_v49  ;;  %v8242_v5 = vld [vmem:[#allocation35_spill] sm:$0xff]  ;;  %v8243_v54 = vld [vmem:[#allocation36_spill] sm:$0xff] }
 0x2bd   :  { %v2902_v9 = vsel %vm2096_vm1, %v2897_v47, %v2901_v41  ;;  %v6471_v56 = vmul.f32 %v3419_v8, %v5899_v10  ;;  %v6475_v1 = vmul.f32 %v6145_v39, %v5899_v10  ;;  %v6478_v11 = vadd.f32 %v391_v7, %v6066_v0  ;;  %v8244_v0 = vld [vmem:[#allocation37_spill] sm:$0xff]  ;;  %v8245_v7 = vld [vmem:[#allocation38_spill] sm:$0xff] }
 0x2be   :  { %v6481_v51 = vsel %vm907_vm0, %v915_v22, %v917_v24  ;;  %v6484_v35 = vsel %vm907_vm0, %v917_v24, %v919_v57  ;;  %v921_v47 = vrot.slane %v846_v17, 1  ;;  %v6486_v38 = vpop.permute.xlu1 %2551  ;;  %v6488_v13 = vpop.permute.xlu0 %2549  ;;  %v6491_v15 = vadd.f32 %v392_v48, %v6070_v31 }
 0x2bf   :  { %8240 = vst [vmem:[#allocation28_spill] sm:$0xff] %v6486_v38  ;;  %8241 = vst [vmem:[#allocation29_spill] sm:$0xff] %v6488_v13  ;;  %v393_v8 = vsel %vm385_vm2, %v8243_v54, %v8242_v5  ;;  %v394_v22 = vsel %vm385_vm2, %v8245_v7, %v8244_v0  ;;  %v923_v50 = vrot.slane %v847_v26, 1  ;;  %v925_v24 = vrot.slane %v6459_v61, 1  ;;  %v3420_v26 = vld [vmem:[%s7779_s1 + $0xe8] sm:$0xff]  ;;  %v8249_v7 = vld [vmem:[#allocation39_spill] sm:$0xff] }
 0x2c0   :  { %v849_v17 = vmul.f32 %v6118_v46, %v6183_v2  ;;  %3033 = vrot.lane.b32.xlu1 %v2904_v18, %s3515_s4  ;;  %3031 = vrot.lane.b32.xlu0 %v2902_v9, %s3515_s4  ;;  %v2908_v31 = vsel %vm2096_vm1, %v2903_v49, %v2907_v59  ;;  %v2906_v48 = vsel %vm2096_vm1, %v2901_v41, %v2905_v55  ;;  %v2911_v5 = vrot.slane %v6471_v56, 2 }
 0x2c1   :  { %v2909_v54 = vrot.slane %v6475_v1, 2  ;;  %v2752_v61 = vmul.f32 %v3420_v26, %v5899_v10  ;;  %v2751_v46 = vmul.f32 %v6158_v40, %v5899_v10  ;;  %v6515_v18 = vadd.f32 %v393_v8, %v6079_v21  ;;  %v8250_v26 = vld [vmem:[#allocation40_spill] sm:$0xff] }
 0x2c2   :  { %v6518_v49 = vsel %vm907_vm0, %v919_v57, %v921_v47  ;;  %v850_v41 = vmul.f32 %v6127_v42, %v6183_v2  ;;  %v851_v9 = vmul.f32 %v6136_v4, %v6183_v2  ;;  %v6524_v56 = vpop.permute.xlu1 %2555  ;;  %v6526_v1 = vpop.permute.xlu0 %2553  ;;  %v6529_v0 = vadd.f32 %v394_v22, %v6088_v33  ;;  %v3421_v33 = vld [vmem:[%s7779_s1 + $0xf8] sm:$0xff] }
 0x2c3   :  { %8246 = vst [vmem:[#allocation30_spill] sm:$0xff] %v6524_v56  ;;  %8247 = vst [vmem:[#allocation31_spill] sm:$0xff] %v6526_v1  ;;  %v395_v21 = vsel %vm385_vm2, %v8250_v26, %v8249_v7  ;;  %v6535_v57 = vsel %vm907_vm0, %v921_v47, %v923_v50  ;;  %v6539_v42 = vmul.f32 %v6145_v39, %v6183_v2  ;;  %v927_v8 = vrot.slane %v849_v17, 1 }
 0x2c4   :  { %8248 = vst [vmem:[#allocation32_spill] sm:$0xff] %v6529_v0  ;;  %v6542_v4 = vsel %vm907_vm0, %v923_v50, %v925_v24  ;;  %3037 = vrot.lane.b32.xlu1 %v2908_v31, %s3515_s4  ;;  %3035 = vrot.lane.b32.xlu0 %v2906_v48, %s3515_s4  ;;  %v2754_v22 = vmul.f32 %v3421_v33, %v5899_v10  ;;  %v2915_v50 = vrot.slane %v2752_v61, 2  ;;  %v2913_v26 = vrot.slane %v2751_v46, 2  ;;  %v8252_v31 = vld [vmem:[#allocation41_spill] sm:$0xff]  ;;  %v8253_v48 = vld [vmem:[#allocation42_spill] sm:$0xff] }
 0x2c5   :  { %8251 = vst [vmem:[#allocation33_spill] sm:$0xff] %v6542_v4  ;;  %v2753_v47 = vmul.f32 %v6167_v45, %v5899_v10  ;;  %v2912_v39 = vsel %vm2096_vm1, %v2907_v59, %v2911_v5  ;;  %v2910_v7 = vsel %vm2096_vm1, %v2905_v55, %v2909_v54  ;;  %v6555_v17 = vadd.f32 %v395_v21, %v6097_v37  ;;  %v8255_v4 = vld [vmem:[#allocation44_spill] sm:$0xff]  ;;  %v8257_v61 = vld [vmem:[#allocation45_spill] sm:$0xff]  ;;  %v8258_v46 = vld [vmem:[#allocation46_spill] sm:$0xff] }
 0x2c6   :  { %v396_v1 = vsel %vm385_vm2, %v8253_v48, %v8252_v31  ;;  %v929_v56 = vrot.slane %v850_v41, 1  ;;  %v931_v13 = vrot.slane %v851_v9, 1  ;;  %v2560_v38 = vpop.permute.xlu1 %2559  ;;  %v2558_v33 = vpop.permute.xlu0 %2557  ;;  %v397_v0 = vsel %vm385_vm2, %v8255_v4, %v8254_v28 }
 0x2c7   :  { %v933_v59 = vrot.slane %v6539_v42, 1  ;;  %v6565_v55 = vsel %vm385_vm2, %v2558_v33, %v2560_v38  ;;  %v2756_v37 = vmul.f32 %v5686_v19, %v5899_v10  ;;  %v398_v21 = vsel %vm385_vm2, %v8258_v46, %v8257_v61  ;;  %v3423_v33 = vld [vmem:[%s7779_s1 + $0x128] sm:$0xff]  ;;  %v8263_v46 = vld [vmem:[#allocation50_spill] sm:$0xff] }
 0x2c8   :  { %8256 = vst [vmem:[#allocation34_spill] sm:$0xff] %v6565_v55  ;;  %3041 = vrot.lane.b32.xlu1 %v2912_v39, %s3515_s4  ;;  %3039 = vrot.lane.b32.xlu0 %v2910_v7, %s3515_s4  ;;  %v2919_v41 = vrot.slane %v2754_v22, 2  ;;  %v2917_v9 = vrot.slane %v2753_v47, 2  ;;  %v2755_v28 = vmul.f32 %v5695_v20, %v5899_v10  ;;  %v6577_v42 = vadd.f32 %v396_v1, %v6122_v23 }
 0x2c9   :  { %v6580_v38 = vsel %vm907_vm0, %v925_v24, %v927_v8  ;;  %v2916_v19 = vsel %vm2096_vm1, %v2911_v5, %v2915_v50  ;;  %v2914_v4 = vsel %vm2096_vm1, %v2909_v54, %v2913_v26  ;;  %v6585_v31 = vadd.f32 %v397_v0, %v6131_v14  ;;  %v8260_v0 = vld [vmem:[#allocation47_spill] sm:$0xff] }
 0x2ca   :  { %v6588_v39 = vsel %vm907_vm0, %v927_v8, %v929_v56  ;;  %v6591_v22 = vsel %vm907_vm0, %v929_v56, %v931_v13  ;;  %v6595_v23 = vmul.f32 %v6158_v40, %v6183_v2  ;;  %v2564_v1 = vpop.permute.xlu1 %2563  ;;  %v2562_v24 = vpop.permute.xlu0 %2561  ;;  %v6598_v47 = vadd.f32 %v398_v21, %v6140_v29  ;;  %v8261_v8 = vld [vmem:[#allocation48_spill] sm:$0xff] }
 0x2cb   :  { %v6601_v5 = vsel %vm907_vm0, %v931_v13, %v933_v59  ;;  %v6604_v14 = vsel %vm385_vm2, %v2562_v24, %v2564_v1  ;;  %v2923_v54 = vrot.slane %v2756_v37, 2  ;;  %v399_v56 = vsel %vm385_vm2, %v8261_v8, %v8260_v0  ;;  %v3422_v13 = vld [vmem:[%s7779_s1 + $0x118] sm:$0xff] }
 0x2cc   :  { %8259 = vst [vmem:[#allocation35_spill] sm:$0xff] %v6604_v14  ;;  %3045 = vrot.lane.b32.xlu1 %v2916_v19, %s3515_s4  ;;  %3043 = vrot.lane.b32.xlu0 %v2914_v4, %s3515_s4  ;;  %v2920_v40 = vsel %vm2096_vm1, %v2915_v50, %v2919_v41  ;;  %v2918_v29 = vsel %vm2096_vm1, %v2913_v26, %v2917_v9  ;;  %v2921_v7 = vrot.slane %v2755_v28, 2  ;;  %v8262_v26 = vld [vmem:[#allocation49_spill] sm:$0xff]  ;;  %v935_v28 = vrot.slane %v6595_v23, 1 }
 0x2cd   :  { %v2758_v48 = vmul.f32 %v3422_v13, %v5899_v10  ;;  %v2760_v37 = vmul.f32 %v3423_v33, %v5899_v10  ;;  %v2757_v61 = vmul.f32 %v6176_v60, %v5899_v10  ;;  %v2759_v50 = vmul.f32 %v6188_v53, %v5899_v10 }
 0x2ce   :  { %v400_v21 = vsel %vm385_vm2, %v8263_v46, %v8262_v26  ;;  %v854_v19 = vmul.f32 %v6167_v45, %v6183_v2  ;;  %v855_v4 = vmul.f32 %v5695_v20, %v6183_v2  ;;  %v2568_v1 = vpop.permute.xlu1 %2567  ;;  %v2566_v24 = vpop.permute.xlu0 %2565  ;;  %v856_v0 = vmul.f32 %v6176_v60, %v6183_v2  ;;  %v3424_v45 = vld [vmem:[%s7779_s1 + $0x138] sm:$0xff] }
 0x2cf   :  { %v6637_v8 = vmul.f32 %v6188_v53, %v6183_v2  ;;  %v6640_v13 = vsel %vm385_vm2, %v2566_v24, %v2568_v1  ;;  %v2924_v23 = vsel %vm2096_vm1, %v2919_v41, %v2923_v54  ;;  %v2922_v20 = vsel %vm2096_vm1, %v2917_v9, %v2921_v7 }
 0x2d0   :  { %8264 = vst [vmem:[#allocation36_spill] sm:$0xff] %v6640_v13  ;;  %3049 = vrot.lane.b32.xlu1 %v2920_v40, %s3515_s4  ;;  %3047 = vrot.lane.b32.xlu0 %v2918_v29, %s3515_s4  ;;  %v6650_v60 = vmul.f32 %v3424_v45, %v5899_v10  ;;  %v6654_v53 = vmul.f32 %v6213_v36, %v5899_v10  ;;  %v2928_v33 = vrot.slane %v2758_v48, 2  ;;  %v2929_v26 = vrot.slane %v2760_v37, 2  ;;  %v8265_v45 = vld [vmem:[#allocation51_spill] sm:$0xff]  ;;  %v8266_v13 = vld [vmem:[#allocation52_spill] sm:$0xff]  ;;  %v8267_v37 = vld [vmem:[#allocation53_spill] sm:$0xff] }
 0x2d1   :  { %v2925_v41 = vrot.slane %v2757_v61, 2  ;;  %v2926_v54 = vrot.slane %v2759_v50, 2  ;;  %v6657_v40 = vadd.f32 %v399_v56, %v6149_v34  ;;  %v6660_v9 = vsel %vm907_vm0, %v933_v59, %v935_v28  ;;  %v8268_v61 = vld [vmem:[#allocation54_spill] sm:$0xff] }
 0x2d2   :  { %v937_v29 = vrot.slane %v854_v19, 1  ;;  %v939_v7 = vrot.slane %v855_v4, 1  ;;  %v2572_v46 = vpop.permute.xlu1 %2571  ;;  %v2570_v1 = vpop.permute.xlu0 %2569  ;;  %v6663_v24 = vadd.f32 %v400_v21, %v6162_v12  ;;  %v401_v48 = vsel %vm385_vm2, %v8266_v13, %v8265_v45  ;;  %v3425_v13 = vld [vmem:[%s7779_s1 + $0x148] sm:$0xff]  ;;  %v8272_v45 = vld [vmem:[#allocation56_spill] sm:$0xff] }
 0x2d3   :  { %v402_v50 = vsel %vm385_vm2, %v8268_v61, %v8267_v37  ;;  %v6672_v34 = vsel %vm385_vm2, %v2570_v1, %v2572_v46  ;;  %v941_v59 = vrot.slane %v856_v0, 1  ;;  %v942_v56 = vrot.slane %v6637_v8, 1  ;;  %v8271_v1 = vld [vmem:[#allocation55_spill] sm:$0xff] }
 0x2d4   :  { %8269 = vst [vmem:[#allocation37_spill] sm:$0xff] %v6672_v34  ;;  %3053 = vrot.lane.b32.xlu1 %v2924_v23, %s3515_s4  ;;  %3051 = vrot.lane.b32.xlu0 %v2922_v20, %s3515_s4  ;;  %v2933_v12 = vrot.slane %v6650_v60, 2  ;;  %v2931_v21 = vrot.slane %v6654_v53, 2  ;;  %v2930_v19 = vsel %vm2096_vm1, %v2928_v33, %v2929_v26  ;;  %v2927_v4 = vsel %vm2096_vm1, %v2925_v41, %v2926_v54 }
 0x2d5   :  { %v2764_v0 = vmul.f32 %v3425_v13, %v5899_v10  ;;  %v2763_v8 = vmul.f32 %v6222_v6, %v5899_v10  ;;  %v6688_v23 = vadd.f32 %v401_v48, %v6171_v52  ;;  %v6691_v20 = vsel %vm907_vm0, %v935_v28, %v937_v29 }
 0x2d6   :  { %v6694_v60 = vsel %vm907_vm0, %v937_v29, %v939_v7  ;;  %v858_v53 = vmul.f32 %v6213_v36, %v6183_v2  ;;  %v2576_v33 = vpop.permute.xlu1 %2575  ;;  %v2574_v41 = vpop.permute.xlu0 %2573  ;;  %v6699_v46 = vadd.f32 %v402_v50, %v6180_v16  ;;  %v403_v37 = vsel %vm385_vm2, %v8272_v45, %v8271_v1  ;;  %v8280_v45 = vld [vmem:[#allocation59_spill] sm:$0xff] }
 0x2d7   :  { %8270 = vst [vmem:[#allocation38_spill] sm:$0xff] %v6694_v60  ;;  %v859_v52 = vmul.f32 %v6222_v6, %v6183_v2  ;;  %v6707_v28 = vsel %vm385_vm2, %v2574_v41, %v2576_v33  ;;  %v6710_v29 = vsel %vm907_vm0, %v941_v59, %v942_v56  ;;  %v2934_v16 = vsel %vm2096_vm1, %v2929_v26, %v2933_v12  ;;  %v3426_v6 = vld [vmem:[%s7779_s1 + $0x158] sm:$0xff]  ;;  %v8278_v33 = vld [vmem:[#allocation57_spill] sm:$0xff]  ;;  %v8279_v41 = vld [vmem:[#allocation58_spill] sm:$0xff] }
 0x2d8   :  { %8273 = vst [vmem:[#allocation39_spill] sm:$0xff] %v6707_v28  ;;  %8274 = vst [vmem:[#allocation40_spill] sm:$0xff] %v6710_v29  ;;  %3057 = vrot.lane.b32.xlu1 %v2930_v19, %s3515_s4  ;;  %3055 = vrot.lane.b32.xlu0 %v2927_v4, %s3515_s4  ;;  %v2932_v36 = vsel %vm2096_vm1, %v2926_v54, %v2931_v21  ;;  %v2937_v7 = vrot.slane %v2764_v0, 2  ;;  %v2935_v48 = vrot.slane %v2763_v8, 2  ;;  %v8275_v59 = vld [vmem:[#allocation283_spill] sm:$0xff]  ;;  %v944_v19 = vrot.slane %v858_v53, 1 }
 0x2d9   :  { %v2766_v61 = vmul.f32 %v3426_v6, %v5899_v10  ;;  %v2765_v50 = vmul.f32 %v6241_v32, %v5899_v10  ;;  %v6723_v13 = vadd.f32 %v403_v37, %v8275_v59  ;;  %v860_v26 = vmul.f32 %v6241_v32, %v6183_v2  ;;  %v8277_v54 = vld [vmem:[#allocation289_spill] sm:$0xff]  ;;  %v8281_v6 = vld [vmem:[#allocation60_spill] sm:$0xff]  ;;  %v8283_v53 = vld [vmem:[#allocation291_spill] sm:$0xff] }
 0x2da   :  { %v861_v4 = vmul.f32 %v8277_v54, %v6183_v2  ;;  %v2580_v0 = vpop.permute.xlu1 %2579  ;;  %v2578_v8 = vpop.permute.xlu0 %2577  ;;  %v404_v1 = vsel %vm385_vm2, %v8279_v41, %v8278_v33  ;;  %v405_v28 = vsel %vm385_vm2, %v8281_v6, %v8280_v45  ;;  %v946_v34 = vrot.slane %v859_v52, 1  ;;  %v3427_v59 = vld [vmem:[%s7779_s1 + $0x168] sm:$0xff]  ;;  %v8290_v60 = vld [vmem:[#allocation62_spill] sm:$0xff] }
 0x2db   :  { %8276 = vst [vmem:[#allocation41_spill] sm:$0xff] %v6723_v13  ;;  %v6736_v37 = vsel %vm385_vm2, %v2578_v8, %v2580_v0  ;;  %v6740_v32 = vmul.f32 %v8283_v53, %v6183_v2  ;;  %v6748_v33 = vmul.f32 %v3427_v59, %v5899_v10  ;;  %v6752_v52 = vmul.f32 %v8277_v54, %v5899_v10  ;;  %v8287_v13 = vld [vmem:[#allocation285_spill] sm:$0xff] }
 0x2dc   :  { %8282 = vst [vmem:[#allocation42_spill] sm:$0xff] %v6736_v37  ;;  %3061 = vrot.lane.b32.xlu1 %v2934_v16, %s3515_s4  ;;  %3059 = vrot.lane.b32.xlu0 %v2932_v36, %s3515_s4  ;;  %v2938_v0 = vsel %vm2096_vm1, %v2933_v12, %v2937_v7  ;;  %v2936_v8 = vsel %vm2096_vm1, %v2931_v21, %v2935_v48  ;;  %v2941_v41 = vrot.slane %v2766_v61, 2  ;;  %v2939_v45 = vrot.slane %v2765_v50, 2  ;;  %v8284_v16 = vld [vmem:[#allocation284_spill] sm:$0xff]  ;;  %v8289_v54 = vld [vmem:[#allocation61_spill] sm:$0xff]  ;;  %v8293_v50 = vld [vmem:[#allocation63_spill] sm:$0xff] }
 0x2dd   :  { %v6757_v6 = vadd.f32 %v404_v1, %v8284_v16  ;;  %v6760_v36 = vsel %vm907_vm0, %v942_v56, %v944_v19  ;;  %v948_v37 = vrot.slane %v860_v26, 1  ;;  %v950_v14 = vrot.slane %v861_v4, 1  ;;  %v8294_v56 = vld [vmem:[#allocation64_spill] sm:$0xff] }
 0x2de   :  { %8286 = vst [vmem:[#allocation44_spill] sm:$0xff] %v6760_v36  ;;  %v2584_v59 = vpop.permute.xlu1 %2583  ;;  %v2582_v55 = vpop.permute.xlu0 %2581  ;;  %v6763_v29 = vadd.f32 %v405_v28, %v8287_v13  ;;  %v406_v12 = vsel %vm385_vm2, %v8290_v60, %v8289_v54  ;;  %v6769_v21 = vsel %vm907_vm0, %v944_v19, %v946_v34  ;;  %v407_v26 = vsel %vm385_vm2, %v8294_v56, %v8293_v50  ;;  %v8300_v54 = vld [vmem:[#allocation290_spill] sm:$0xff]  ;;  %v8302_v56 = vld [vmem:[#allocation65_spill] sm:$0xff]  ;;  %v8317_v36 = vld [vmem:[#allocation71_spill] sm:$0xff] }
 0x2df   :  { %8285 = vst [vmem:[#allocation43_spill] sm:$0xff] %v6757_v6  ;;  %8291 = vst [vmem:[#allocation46_spill] sm:$0xff] %v6769_v21  ;;  %v6772_v61 = vsel %vm385_vm2, %v2582_v55, %v2584_v59  ;;  %v952_v4 = vrot.slane %v6740_v32, 1  ;;  %v2945_v28 = vrot.slane %v6748_v33, 2  ;;  %v2943_v60 = vrot.slane %v6752_v52, 2  ;;  %v3428_v55 = vld [vmem:[%s7779_s1 + $0x178] sm:$0xff] }
 0x2e0   :  { %8288 = vst [vmem:[#allocation45_spill] sm:$0xff] %v6763_v29  ;;  %8292 = vst [vmem:[#allocation47_spill] sm:$0xff] %v6772_v61  ;;  %3065 = vrot.lane.b32.xlu1 %v2938_v0, %s3515_s4  ;;  %3063 = vrot.lane.b32.xlu0 %v2936_v8, %s3515_s4  ;;  %v2942_v13 = vsel %vm2096_vm1, %v2937_v7, %v2941_v41  ;;  %v2940_v19 = vsel %vm2096_vm1, %v2935_v48, %v2939_v45  ;;  %v8295_v0 = vld [vmem:[#allocation288_spill] sm:$0xff]  ;;  %v8299_v7 = vld [vmem:[#allocation293_spill] sm:$0xff] }
 0x2e1   :  { %v2770_v1 = vmul.f32 %v3428_v55, %v5899_v10  ;;  %v2769_v32 = vmul.f32 %v8283_v53, %v5899_v10  ;;  %v6791_v16 = vadd.f32 %v406_v12, %v8295_v0  ;;  %v6794_v33 = vsel %vm907_vm0, %v946_v34, %v948_v37  ;;  %v8303_v55 = vld [vmem:[#allocation66_spill] sm:$0xff]  ;;  %v8304_v12 = vld [vmem:[#allocation295_spill] sm:$0xff]  ;;  %v8318_v6 = vld [vmem:[#allocation72_spill] sm:$0xff] }
 0x2e2   :  { %8297 = vst [vmem:[#allocation49_spill] sm:$0xff] %v6794_v33  ;;  %v6797_v52 = vsel %vm907_vm0, %v948_v37, %v950_v14  ;;  %v863_v48 = vmul.f32 %v8299_v7, %v6183_v2  ;;  %v2588_v8 = vpop.permute.xlu1 %2587  ;;  %v2586_v59 = vpop.permute.xlu0 %2585  ;;  %v6802_v50 = vadd.f32 %v407_v26, %v8300_v54  ;;  %v408_v53 = vsel %vm385_vm2, %v8303_v55, %v8302_v56  ;;  %v3429_v56 = vld [vmem:[%s7779_s1 + $0x188] sm:$0xff]  ;;  %v8312_v33 = vld [vmem:[#allocation302_spill] sm:$0xff] }
 0x2e3   :  { %8296 = vst [vmem:[#allocation48_spill] sm:$0xff] %v6791_v16  ;;  %8298 = vst [vmem:[#allocation50_spill] sm:$0xff] %v6797_v52  ;;  %v864_v0 = vmul.f32 %v8304_v12, %v6183_v2  ;;  %v6810_v34 = vsel %vm385_vm2, %v2586_v59, %v2588_v8  ;;  %v6813_v37 = vsel %vm907_vm0, %v950_v14, %v952_v4  ;;  %v2949_v61 = vrot.slane %v2770_v1, 2  ;;  %v8307_v59 = vld [vmem:[#allocation292_spill] sm:$0xff] }
 0x2e4   :  { %8301 = vst [vmem:[#allocation51_spill] sm:$0xff] %v6802_v50  ;;  %8305 = vst [vmem:[#allocation52_spill] sm:$0xff] %v6810_v34  ;;  %3069 = vrot.lane.b32.xlu1 %v2942_v13, %s3515_s4  ;;  %3067 = vrot.lane.b32.xlu0 %v2940_v19, %s3515_s4  ;;  %v2946_v26 = vsel %vm2096_vm1, %v2941_v41, %v2945_v28  ;;  %v2944_v54 = vsel %vm2096_vm1, %v2939_v45, %v2943_v60  ;;  %v2947_v52 = vrot.slane %v2769_v32, 2  ;;  %v8309_v45 = vld [vmem:[#allocation300_spill] sm:$0xff]  ;;  %v8310_v34 = vld [vmem:[#allocation67_spill] sm:$0xff] }
 0x2e5   :  { %8306 = vst [vmem:[#allocation53_spill] sm:$0xff] %v6813_v37  ;;  %v2772_v8 = vmul.f32 %v3429_v56, %v5899_v10  ;;  %v2771_v14 = vmul.f32 %v8299_v7, %v5899_v10  ;;  %v6826_v55 = vadd.f32 %v408_v53, %v8307_v59  ;;  %v954_v13 = vrot.slane %v863_v48, 1  ;;  %v8311_v37 = vld [vmem:[#allocation68_spill] sm:$0xff]  ;;  %v8314_v48 = vld [vmem:[#allocation69_spill] sm:$0xff]  ;;  %v8315_v59 = vld [vmem:[#allocation70_spill] sm:$0xff] }
 0x2e6   :  { %v865_v41 = vmul.f32 %v6302_v44, %v6183_v2  ;;  %v866_v19 = vmul.f32 %v8309_v45, %v6183_v2  ;;  %v2592_v1 = vpop.permute.xlu1 %2591  ;;  %v2590_v32 = vpop.permute.xlu0 %2589  ;;  %v409_v50 = vsel %vm385_vm2, %v8311_v37, %v8310_v34  ;;  %v956_v56 = vrot.slane %v864_v0, 1  ;;  %v3430_v0 = vld [vmem:[%s7779_s1 + $0x198] sm:$0xff] }
 0x2e7   :  { %8308 = vst [vmem:[#allocation54_spill] sm:$0xff] %v6826_v55  ;;  %v6837_v7 = vmul.f32 %v8312_v33, %v6183_v2  ;;  %v6840_v53 = vsel %vm385_vm2, %v2590_v32, %v2592_v1  ;;  %v410_v55 = vsel %vm385_vm2, %v8315_v59, %v8314_v48  ;;  %v6851_v34 = vmul.f32 %v3430_v0, %v5899_v10 }
 0x2e8   :  { %8313 = vst [vmem:[#allocation55_spill] sm:$0xff] %v6840_v53  ;;  %3073 = vrot.lane.b32.xlu1 %v2946_v26, %s3515_s4  ;;  %3071 = vrot.lane.b32.xlu0 %v2944_v54, %s3515_s4  ;;  %v6855_v37 = vmul.f32 %v8304_v12, %v5899_v10  ;;  %v2950_v1 = vsel %vm2096_vm1, %v2945_v28, %v2949_v61  ;;  %v2953_v48 = vrot.slane %v2772_v8, 2  ;;  %v2951_v59 = vrot.slane %v2771_v14, 2  ;;  %v8316_v26 = vld [vmem:[#allocation294_spill] sm:$0xff] }
 0x2e9   :  { %v2948_v32 = vsel %vm2096_vm1, %v2943_v60, %v2947_v52  ;;  %v6860_v53 = vadd.f32 %v409_v50, %v8316_v26  ;;  %v6863_v54 = vsel %vm907_vm0, %v952_v4, %v954_v13  ;;  %v958_v16 = vrot.slane %v865_v41, 1  ;;  %v8321_v50 = vld [vmem:[#allocation296_spill] sm:$0xff]  ;;  %v8322_v4 = vld [vmem:[#allocation73_spill] sm:$0xff]  ;;  %v8323_v41 = vld [vmem:[#allocation74_spill] sm:$0xff] }
 0x2ea   :  { %v960_v21 = vrot.slane %v866_v19, 1  ;;  %v2596_v0 = vpop.permute.xlu1 %2595  ;;  %v2594_v29 = vpop.permute.xlu0 %2593  ;;  %v411_v12 = vsel %vm385_vm2, %v8318_v6, %v8317_v36  ;;  %v6869_v28 = vsel %vm907_vm0, %v954_v13, %v956_v56  ;;  %v962_v60 = vrot.slane %v6837_v7, 1 }
 0x2eb   :  { %8319 = vst [vmem:[#allocation56_spill] sm:$0xff] %v6869_v28  ;;  %v6873_v8 = vsel %vm385_vm2, %v2594_v29, %v2596_v0  ;;  %v6876_v14 = vadd.f32 %v410_v55, %v8321_v50  ;;  %v412_v19 = vsel %vm385_vm2, %v8323_v41, %v8322_v4  ;;  %v2957_v6 = vrot.slane %v6851_v34, 2  ;;  %v3431_v55 = vld [vmem:[%s7779_s1 + $0x1a8] sm:$0xff]  ;;  %v8331_v41 = vld [vmem:[#allocation76_spill] sm:$0xff] }
 0x2ec   :  { %8320 = vst [vmem:[#allocation283_spill] sm:$0xff] %v6873_v8  ;;  %3077 = vrot.lane.b32.xlu1 %v2950_v1, %s3515_s4  ;;  %3075 = vrot.lane.b32.xlu0 %v2948_v32, %s3515_s4  ;;  %v2955_v36 = vrot.slane %v6855_v37, 2  ;;  %v2954_v13 = vsel %vm2096_vm1, %v2949_v61, %v2953_v48  ;;  %v2952_v29 = vsel %vm2096_vm1, %v2947_v52, %v2951_v59  ;;  %v8324_v32 = vld [vmem:[#allocation297_spill] sm:$0xff]  ;;  %v3432_v52 = vld [vmem:[%s7779_s1 + $0x1d0] sm:$0xff] }
 0x2ed   :  { %v6891_v7 = vmul.f32 %v3431_v55, %v5899_v10  ;;  %v6895_v1 = vmul.f32 %v6302_v44, %v5899_v10  ;;  %v6898_v26 = vadd.f32 %v411_v12, %v8324_v32  ;;  %v6901_v34 = vsel %vm907_vm0, %v956_v56, %v958_v16  ;;  %v8328_v44 = vld [vmem:[#allocation301_spill] sm:$0xff]  ;;  %v8330_v12 = vld [vmem:[#allocation75_spill] sm:$0xff]  ;;  %v8335_v8 = vld [vmem:[#allocation86_spill] sm:$0xff] }
 0x2ee   :  { %8326 = vst [vmem:[#allocation57_spill] sm:$0xff] %v6901_v34  ;;  %v6904_v61 = vsel %vm907_vm0, %v958_v16, %v960_v21  ;;  %v6910_v37 = vmul.f32 %v3432_v52, %v6183_v2  ;;  %v2600_v0 = vpop.permute.xlu1 %2599  ;;  %v2598_v50 = vpop.permute.xlu0 %2597  ;;  %v6913_v4 = vadd.f32 %v412_v19, %v8328_v44  ;;  %v413_v56 = vsel %vm385_vm2, %v8331_v41, %v8330_v12  ;;  %v8334_v32 = vld [vmem:[#allocation85_spill] sm:$0xff] }
 0x2ef   :  { %8325 = vst [vmem:[#allocation289_spill] sm:$0xff] %v6898_v26  ;;  %8327 = vst [vmem:[#allocation58_spill] sm:$0xff] %v6904_v61  ;;  %v6919_v55 = vsel %vm907_vm0, %v960_v21, %v962_v60  ;;  %v6922_v16 = vsel %vm385_vm2, %v2598_v50, %v2600_v0  ;;  %v741_v61 = vsel %vm740_vm3, %v8335_v8, %v8334_v32  ;;  %v2961_v21 = vrot.slane %v6891_v7, 2  ;;  %v3433_v0 = vld [vmem:[%s7779_s1 + $0x1b8] sm:$0xff]  ;;  %v8351_v28 = vld [vmem:[#allocation93_spill] sm:$0xff] }
 0x2f0   :  { %8329 = vst [vmem:[#allocation59_spill] sm:$0xff] %v6913_v4  ;;  %8332 = vst [vmem:[#allocation60_spill] sm:$0xff] %v6919_v55  ;;  %3081 = vrot.lane.b32.xlu1 %v2954_v13, %s3515_s4  ;;  %3079 = vrot.lane.b32.xlu0 %v2952_v29, %s3515_s4  ;;  %v2958_v19 = vsel %vm2096_vm1, %v2953_v48, %v2957_v6  ;;  %v2956_v44 = vsel %vm2096_vm1, %v2951_v59, %v2955_v36  ;;  %v2959_v12 = vrot.slane %v6895_v1, 2  ;;  %v8336_v13 = vld [vmem:[#allocation303_spill] sm:$0xff]  ;;  %v8338_v29 = vld [vmem:[#allocation77_spill] sm:$0xff] }
 0x2f1   :  { %8333 = vst [vmem:[#allocation291_spill] sm:$0xff] %v6922_v16  ;;  %v2778_v8 = vmul.f32 %v3433_v0, %v5899_v10  ;;  %v2777_v50 = vmul.f32 %v8309_v45, %v5899_v10  ;;  %v6942_v41 = vadd.f32 %v413_v56, %v8336_v13  ;;  %v8339_v48 = vld [vmem:[#allocation78_spill] sm:$0xff]  ;;  %v3434_v1 = vld [vmem:[%s7779_s1 + $0x1e0] sm:$0xff]  ;;  %v8340_v55 = vld [vmem:[#allocation87_spill] sm:$0xff]  ;;  %v805_v26 = vadd.f32 %v741_v61, %v6395_v43 }
 0x2f2   :  { %v414_v59 = vsel %vm385_vm2, %v8339_v48, %v8338_v29  ;;  %v6952_v32 = vmul.f32 %v3434_v1, %v6183_v2  ;;  %v2604_v0 = vpop.permute.xlu1 %2603  ;;  %v2602_v16 = vpop.permute.xlu0 %2601  ;;  %v8341_v45 = vld [vmem:[#allocation88_spill] sm:$0xff]  ;;  %v8342_v13 = vld [vmem:[#allocation89_spill] sm:$0xff]  ;;  %v8344_v29 = vld [vmem:[#allocation91_spill] sm:$0xff]  ;;  %v2960_v43 = vsel %vm2096_vm1, %v2955_v36, %v2959_v12 }
 0x2f3   :  { %8337 = vst [vmem:[#allocation284_spill] sm:$0xff] %v6942_v41  ;;  %v742_v56 = vsel %vm740_vm3, %v8341_v45, %v8340_v55  ;;  %v8343_v41 = vld [vmem:[#allocation90_spill] sm:$0xff]  ;;  %v8345_v48 = vld [vmem:[#allocation92_spill] sm:$0xff]  ;;  %v6964_v34 = vsel %vm385_vm2, %v2602_v16, %v2604_v0  ;;  %v3435_v55 = vld [vmem:[%s7779_s1 + $0x1c8] sm:$0xff]  ;;  %v2962_v16 = vsel %vm2096_vm1, %v2957_v6, %v2961_v21  ;;  %v2965_v61 = vrot.slane %v2778_v8, 2 }
 0x2f4   :  { %v743_v4 = vsel %vm740_vm3, %v8343_v41, %v8342_v13  ;;  %v744_v7 = vsel %vm740_vm3, %v8345_v48, %v8344_v29  ;;  %8346 = vst [vmem:[#allocation285_spill] sm:$0xff] %v6964_v34  ;;  %3085 = vrot.lane.b32.xlu1 %v2958_v19, %s3515_s4  ;;  %3083 = vrot.lane.b32.xlu0 %v2956_v44, %s3515_s4  ;;  %v2963_v19 = vrot.slane %v2777_v50, 2  ;;  %v8347_v29 = vrot.slane %v6910_v37, 1  ;;  %v8349_v34 = vld [vmem:[#allocation304_spill] sm:$0xff]  ;;  %v8352_v36 = vld [vmem:[#allocation94_spill] sm:$0xff] }
 0x2f5   :  { %v6973_v45 = vmul.f32 %v3435_v55, %v5899_v10  ;;  %v6977_v41 = vmul.f32 %v8312_v33, %v5899_v10  ;;  %v806_v44 = vadd.f32 %v742_v56, %v6374_v3  ;;  %v807_v0 = vadd.f32 %v743_v4, %v6409_v58  ;;  %v3436_v3 = vld [vmem:[%s7779_s1 + $0x1f0] sm:$0xff] }
 0x2f6   :  { %v808_v13 = vadd.f32 %v744_v7, %v6435_v63  ;;  %v6987_v48 = vsel %vm907_vm0, %v962_v60, %v8347_v29  ;;  %v2608_v33 = vpop.permute.xlu1 %2607  ;;  %v2606_v55 = vpop.permute.xlu0 %2605  ;;  %v6990_v6 = vadd.f32 %v414_v59, %v8349_v34  ;;  %v745_v8 = vsel %vm740_vm3, %v8352_v36, %v8351_v28  ;;  %v3437_v7 = vld [vmem:[%s7779_s1 + $0x1d8] sm:$0xff]  ;;  %v8357_v36 = vld [vmem:[#allocation266_spill] sm:$0xff] }
 0x2f7   :  { %8348 = vst [vmem:[#allocation61_spill] sm:$0xff] %v6987_v48  ;;  %v6999_v58 = vmul.f32 %v3436_v3, %v6183_v2  ;;  %v7002_v63 = vsel %vm385_vm2, %v2606_v55, %v2608_v33  ;;  %v1006_v60 = vadd.f32 %v6367_v30, %v805_v26  ;;  %v7006_v4 = vstv %s6927_s17  ;;  %v8356_v33 = vld [vmem:[#allocation96_spill] sm:$0xff] }
 0x2f8   :  { %8350 = vst [vmem:[#allocation62_spill] sm:$0xff] %v6990_v6  ;;  %8353 = vst [vmem:[#allocation63_spill] sm:$0xff] %v7002_v63  ;;  %3089 = vrot.lane.b32.xlu1 %v2962_v16, %s3515_s4  ;;  %3087 = vrot.lane.b32.xlu0 %v2960_v43, %s3515_s4  ;;  %v2969_v28 = vrot.slane %v6973_v45, 2  ;;  %v2967_v34 = vrot.slane %v6977_v41, 2  ;;  %v2966_v50 = vsel %vm2096_vm1, %v2961_v21, %v2965_v61  ;;  %v8354_v43 = vld [vmem:[#allocation25_spill] sm:$0xff]  ;;  %v8387_v48 = vld [vmem:[#allocation100_spill] sm:$0xff] }
 0x2f9   :  { %v2964_v59 = vsel %vm2096_vm1, %v2959_v12, %v2963_v19  ;;  %v2782_v30 = vmul.f32 %v3437_v7, %v5899_v10  ;;  %v2781_v26 = vmul.f32 %v3432_v52, %v5899_v10  ;;  %v809_v56 = vadd.f32 %v745_v8, %v6444_v25  ;;  %v8355_v12 = vld [vmem:[#allocation95_spill] sm:$0xff] }
 0x2fa   :  { %v1007_v16 = vadd.f32 %v6398_v27, %v806_v44  ;;  %v1008_v45 = vadd.f32 %v8354_v43, %v807_v0  ;;  %v7023_v41 = vadd.f32 %v6450_v62, %v808_v13  ;;  %v2612_v21 = vpop.permute.xlu1 %2611  ;;  %v2610_v29 = vpop.permute.xlu0 %2609  ;;  %v746_v55 = vsel %vm740_vm3, %v8356_v33, %v8355_v12  ;;  %v8358_v52 = vld [vmem:[#allocation267_spill] sm:$0xff]  ;;  %v8360_v27 = vld [vmem:[#allocation136_spill] sm:$0xff]  ;;  %v8361_v44 = vld [vmem:[#allocation137_spill] sm:$0xff] }
 0x2fb   :  { %v2028_v7 = vmul.f32 %v8357_v36, %v7006_v4  ;;  %v2029_v63 = vmul.f32 %v8358_v52, %v7006_v4  ;;  %v7033_v25 = vsel %vm385_vm2, %v2610_v29, %v2612_v21  ;;  %v1436_v62 = vsel %vm385_vm2, %v8361_v44, %v8360_v27  ;;  %v3438_v12 = vld [vmem:[%s7779_s1 + $0x1e8] sm:$0xff]  ;;  %v8365_v44 = vld [vmem:[#allocation138_spill] sm:$0xff] }
 0x2fc   :  { %8359 = vst [vmem:[#allocation64_spill] sm:$0xff] %v7033_v25  ;;  %3093 = vrot.lane.b32.xlu1 %v2966_v50, %s3515_s4  ;;  %3091 = vrot.lane.b32.xlu0 %v2964_v59, %s3515_s4  ;;  %v2970_v0 = vsel %vm2096_vm1, %v2965_v61, %v2969_v28  ;;  %v2968_v13 = vsel %vm2096_vm1, %v2963_v19, %v2967_v34  ;;  %v2973_v8 = vrot.slane %v2782_v30, 2  ;;  %v2971_v43 = vrot.slane %v2781_v26, 2  ;;  %v8362_v36 = vld [vmem:[#allocation97_spill] sm:$0xff]  ;;  %v8363_v50 = vld [vmem:[#allocation98_spill] sm:$0xff] }
 0x2fd   :  { %v2784_v21 = vmul.f32 %v3438_v12, %v5899_v10  ;;  %v2783_v29 = vmul.f32 %v3434_v1, %v5899_v10  ;;  %v810_v33 = vadd.f32 %v746_v55, %v6478_v11  ;;  %v747_v59 = vsel %vm740_vm3, %v8363_v50, %v8362_v36  ;;  %v8364_v19 = vld [vmem:[#allocation270_spill] sm:$0xff]  ;;  %v8366_v12 = vld [vmem:[#allocation139_spill] sm:$0xff]  ;;  %v8368_v55 = vld [vmem:[#allocation220_spill] sm:$0xff] }
 0x2fe   :  { %v7052_v61 = vadd.f32 %v6481_v51, %v809_v56  ;;  %v7056_v30 = vmul.f32 %v8364_v19, %v7006_v4  ;;  %v2616_v26 = vpop.permute.xlu1 %2615  ;;  %v2614_v52 = vpop.permute.xlu0 %2613  ;;  %v1500_v27 = vadd.f32 %v1436_v62, %v1006_v60  ;;  %v1437_v1 = vsel %vm385_vm2, %v8366_v12, %v8365_v44  ;;  %v8369_v36 = vld [vmem:[#allocation221_spill] sm:$0xff]  ;;  %v3439_v60 = vld [vmem:[%s7779_s1 + $0x1f8] sm:$0xff]  ;;  %v3440_v44 = vld [vmem:[%s7779_s1 + $0x30] sm:$0xff] }
 0x2ff   :  { %v2097_v25 = vrot.slane %v2028_v7, 2  ;;  %v7062_v11 = vsel %vm385_vm2, %v2614_v52, %v2616_v26  ;;  %v1930_v51 = vsel %vm740_vm3, %v8369_v36, %v8368_v55  ;;  %v2098_v56 = vrot.slane %v2029_v63, 2 }
 0x300   :  { %8367 = vst [vmem:[#allocation288_spill] sm:$0xff] %v7062_v11  ;;  %3097 = vrot.lane.b32.xlu1 %v2970_v0, %s3515_s4  ;;  %3095 = vrot.lane.b32.xlu0 %v2968_v13, %s3515_s4  ;;  %v7073_v62 = vmul.f32 %v3439_v60, %v5899_v10  ;;  %v7076_v7 = vmul.f32 %v3436_v3, %v5899_v10  ;;  %v2977_v26 = vrot.slane %v2784_v21, 2  ;;  %v2975_v63 = vrot.slane %v2783_v29, 2  ;;  %v8370_v21 = vld [vmem:[#allocation140_spill] sm:$0xff]  ;;  %v8371_v29 = vld [vmem:[#allocation141_spill] sm:$0xff] }
 0x301   :  { %v2974_v50 = vsel %vm2096_vm1, %v2969_v28, %v2973_v8  ;;  %v2972_v19 = vsel %vm2096_vm1, %v2967_v34, %v2971_v43  ;;  %v7081_v0 = vadd.f32 %v747_v59, %v6491_v15  ;;  %v7084_v13 = vadd.f32 %v6484_v35, %v810_v33  ;;  %v8373_v33 = vld [vmem:[#allocation222_spill] sm:$0xff] }
 0x302   :  { %v2100_v52 = vrot.slane %v7056_v30, 2  ;;  %v7091_v3 = vmul.f32 %v3440_v44, %v7006_v4  ;;  %v2620_v28 = vpop.permute.xlu1 %2619  ;;  %v2618_v12 = vpop.permute.xlu0 %2617  ;;  %v1501_v34 = vadd.f32 %v1437_v1, %v1007_v16  ;;  %v1438_v15 = vsel %vm385_vm2, %v8371_v29, %v8370_v21  ;;  %v8374_v30 = vld [vmem:[#allocation223_spill] sm:$0xff] }
 0x303   :  { %v1994_v59 = vadd.f32 %v1930_v51, %v1500_v27  ;;  %v7097_v35 = vsel %vm385_vm2, %v2618_v12, %v2620_v28  ;;  %v1931_v55 = vsel %vm740_vm3, %v8374_v30, %v8373_v33  ;;  %v2099_v36 = vsel %vm2096_vm1, %v2097_v25, %v2098_v56  ;;  %v3441_v51 = vld [vmem:[%s7779_s1 + $0x208] sm:$0xff]  ;;  %v7118_v25 = vld [vmem:[%s7779_s1 + $0x200] sm:$0xff] }
 0x304   :  { %8372 = vst [vmem:[#allocation293_spill] sm:$0xff] %v7097_v35  ;;  %3101 = vrot.lane.b32.xlu1 %v2974_v50, %s3515_s4  ;;  %3099 = vrot.lane.b32.xlu0 %v2972_v19, %s3515_s4  ;;  %v2981_v16 = vrot.slane %v7073_v62, 2  ;;  %v2979_v1 = vrot.slane %v7076_v7, 2  ;;  %v2978_v60 = vsel %vm2096_vm1, %v2973_v8, %v2977_v26  ;;  %v2976_v27 = vsel %vm2096_vm1, %v2971_v43, %v2975_v63  ;;  %v3443_v50 = vld [vmem:[%s7779_s1 + $0x40] sm:$0xff]  ;;  %v8376_v30 = vld [vmem:[#allocation265_spill] sm:$0xff] }
 0x305   :  { %v7113_v44 = vmul.f32 %v3441_v51, %v5899_v10  ;;  %v7122_v62 = vmul.f32 %v7118_v25, %v5899_v10  ;;  %v1502_v7 = vadd.f32 %v1438_v15, %v1008_v45  ;;  %v2101_v8 = vsel %vm2096_vm1, %v2098_v56, %v2100_v52  ;;  %v8375_v33 = vld [vmem:[#allocation264_spill] sm:$0xff] }
 0x306   :  { %v2102_v43 = vrot.slane %v7091_v3, 2  ;;  %v7130_v19 = vmul.f32 %v3443_v50, %v7006_v4  ;;  %v2624_v28 = vpop.permute.xlu1 %2623  ;;  %v2622_v12 = vpop.permute.xlu0 %2621  ;;  %v1995_v21 = vadd.f32 %v1931_v55, %v1501_v34  ;;  %v2195_v29 = vadd.f32 %v2099_v36, %v1994_v59  ;;  %v8378_v56 = vld [vmem:[#allocation224_spill] sm:$0xff]  ;;  %v8379_v3 = vld [vmem:[#allocation225_spill] sm:$0xff]  ;;  %v3444_v36 = vld [vmem:[%s7779_s1 + $0x218] sm:$0x3] }
 0x307   :  { %v2625_v51 = vsel %vm385_vm2, %v8376_v30, %v8375_v33  ;;  %v7136_v45 = vsel %vm385_vm2, %v2622_v12, %v2624_v28  ;;  %v1932_v15 = vsel %vm740_vm3, %v8379_v3, %v8378_v56  ;;  %v2982_v50 = vsel %vm2096_vm1, %v2977_v26, %v2981_v16 }
 0x308   :  { %8377 = vst [vmem:[#allocation290_spill] sm:$0xff] %v7136_v45  ;;  %3105 = vrot.lane.b32.xlu1 %v2978_v60, %s3515_s4  ;;  %3103 = vrot.lane.b32.xlu0 %v2976_v27, %s3515_s4  ;;  %v2980_v34 = vsel %vm2096_vm1, %v2975_v63, %v2979_v1  ;;  %v2985_v59 = vrot.slane %v7113_v44, 2  ;;  %v2983_v55 = vrot.slane %v7122_v62, 2  ;;  %v2790_v28 = vmul.f32 %v3444_v36, %v5899_v10  ;;  %v7154_v60 = vld [vmem:[%s7779_s1 + $0x210] sm:$0x3]  ;;  %v8381_v63 = vld [vmem:[#allocation143_spill] sm:$0xff] }
 0x309   :  { %v2789_v26 = vmul.f32 %v7154_v60, %v5899_v10  ;;  %v8380_v27 = vld [vmem:[#allocation142_spill] sm:$0xff]  ;;  %v2689_v12 = vadd.f32 %v2625_v51, %v2195_v29  ;;  %v2103_v62 = vsel %vm2096_vm1, %v2100_v52, %v2102_v43  ;;  %v2104_v33 = vrot.slane %v7130_v19, 2  ;;  %v8382_v36 = vld [vmem:[#allocation268_spill] sm:$0xff]  ;;  %v8383_v45 = vld [vmem:[#allocation269_spill] sm:$0xff] }
 0x30a   :  { %v1439_v44 = vsel %vm385_vm2, %v8381_v63, %v8380_v27  ;;  %v2994_v30 = vpop.permute.xlu1 %2993  ;;  %v2992_v56 = vpop.permute.xlu0 %2991  ;;  %v2196_v3 = vadd.f32 %v2101_v8, %v1995_v21  ;;  %v2626_v35 = vsel %vm385_vm2, %v8383_v45, %v8382_v36  ;;  %v3446_v10 = vld [vmem:[%s7779_s1 + $0x50] sm:$0xff]  ;;  %v1996_v51 = vadd.f32 %v1932_v15, %v1502_v7  ;;  %v8385_v27 = vld [vmem:[#allocation227_spill] sm:$0xff] }
 0x30b   :  { %v7170_v11 = vmul.f32 %v3446_v10, %v7006_v4  ;;  %v3119_v29 = vsel %vm740_vm3, %v2992_v56, %v2994_v30  ;;  %v8384_v52 = vld [vmem:[#allocation226_spill] sm:$0xff]  ;;  %v2986_v8 = vsel %vm2096_vm1, %v2981_v16, %v2985_v59  ;;  %v2984_v21 = vsel %vm2096_vm1, %v2979_v1, %v2983_v55  ;;  %v8386_v10 = vld [vmem:[#allocation99_spill] sm:$0xff]  ;;  %v8391_v16 = vld [vmem:[#allocation272_spill] sm:$0xff] }
 0x30c   :  { %v1933_v19 = vsel %vm740_vm3, %v8385_v27, %v8384_v52  ;;  %v3183_v63 = vadd.f32 %v3119_v29, %v2689_v12  ;;  %3109 = vrot.lane.b32.xlu1 %v2982_v50, %s3515_s4  ;;  %3107 = vrot.lane.b32.xlu0 %v2980_v34, %s3515_s4  ;;  %v2989_v45 = vrot.slane %v2790_v28, 2  ;;  %v2987_v36 = vrot.slane %v2789_v26, 2  ;;  %v8388_v29 = vld [vmem:[#allocation144_spill] sm:$0xff]  ;;  %v8389_v50 = vld [vmem:[#allocation145_spill] sm:$0xff]  ;;  %v8390_v27 = vld [vmem:[#allocation271_spill] sm:$0xff] }
 0x30d   :  { %v748_v30 = vsel %vm740_vm3, %v8387_v48, %v8386_v10  ;;  %v1503_v7 = vadd.f32 %v1439_v44, %v7023_v41  ;;  %v2690_v15 = vadd.f32 %v2626_v35, %v2196_v3  ;;  %v1440_v34 = vsel %vm385_vm2, %v8389_v50, %v8388_v29  ;;  %v8392_v44 = vld [vmem:[#allocation228_spill] sm:$0xff]  ;;  %v8393_v3 = vld [vmem:[#allocation229_spill] sm:$0xff] }
 0x30e   :  { %v3215_v56 = vmul.f32 100.0, %v3183_v63  ;;  %v2998_v52 = vpop.permute.xlu1 %2997  ;;  %v2996_v12 = vpop.permute.xlu0 %2995  ;;  %v2627_v1 = vsel %vm385_vm2, %v8391_v16, %v8390_v27  ;;  %v2105_v28 = vsel %vm2096_vm1, %v2102_v43, %v2104_v33  ;;  %v2197_v48 = vadd.f32 %v2103_v62, %v1996_v51  ;;  %v3447_v43 = vld [vmem:[%s7779_s1 + $0x60] sm:$0xff]  ;;  %v8396_v50 = vld [vmem:[#allocation273_spill] sm:$0xff]  ;;  %v8397_v27 = vld [vmem:[#allocation274_spill] sm:$0xff] }
 0x30f   :  { %v3120_v26 = vsel %vm740_vm3, %v2996_v12, %v2998_v52  ;;  %v1997_v6 = vadd.f32 %v1933_v19, %v1503_v7  ;;  %v2106_v41 = vrot.slane %v7170_v11, 2  ;;  %v1934_v63 = vsel %vm740_vm3, %v8393_v3, %v8392_v44  ;;  %v8395_v52 = vld [vmem:[#allocation147_spill] sm:$0xff] }
 0x310   :  { %3247 = vst [vmem:[#allocation5] sm:$0xff] %v3215_v56  ;;  %v3184_v35 = vadd.f32 %v3120_v26, %v2690_v15  ;;  %3113 = vrot.lane.b32.xlu1 %v2986_v8, %s3515_s4  ;;  %3111 = vrot.lane.b32.xlu0 %v2984_v21, %s3515_s4  ;;  %v7202_v10 = vmul.f32 %v3447_v43, %v7006_v4  ;;  %v8394_v56 = vld [vmem:[#allocation146_spill] sm:$0xff] }
 0x311   :  { %v2990_v62 = vsel %vm2096_vm1, %v2985_v59, %v2989_v45  ;;  %v2988_v11 = vsel %vm2096_vm1, %v2983_v55, %v2987_v36  ;;  %v812_v51 = vadd.f32 %v748_v30, %v6515_v18  ;;  %v1504_v19 = vadd.f32 %v1440_v34, %v7052_v61  ;;  %v8398_v30 = vld [vmem:[#allocation230_spill] sm:$0xff]  ;;  %v8399_v34 = vld [vmem:[#allocation231_spill] sm:$0xff] }
 0x312   :  { %v2691_v8 = vadd.f32 %v2627_v1, %v2197_v48  ;;  %v3216_v21 = vmul.f32 100.0, %v3184_v35  ;;  %v3002_v7 = vpop.permute.xlu1 %3001  ;;  %v3000_v15 = vpop.permute.xlu0 %2999  ;;  %v1441_v12 = vsel %vm385_vm2, %v8395_v52, %v8394_v56  ;;  %v1012_v29 = vadd.f32 %v6518_v49, %v7081_v0  ;;  %v3448_v1 = vld [vmem:[%s7779_s1 + $0x70] sm:$0xff] }
 0x313   :  { %v2628_v59 = vsel %vm385_vm2, %v8397_v27, %v8396_v50  ;;  %v3121_v55 = vsel %vm740_vm3, %v3000_v15, %v3002_v7  ;;  %v966_v18 = vrot.slane %v6952_v32, 1  ;;  %v1998_v61 = vadd.f32 %v1934_v63, %v1504_v19  ;;  %v8400_v63 = vld [vmem:[#allocation101_spill] sm:$0xff]  ;;  %v8401_v43 = vld [vmem:[#allocation102_spill] sm:$0xff]  ;;  %v8404_v19 = vld [vmem:[#allocation275_spill] sm:$0xff] }
 0x314   :  { %v2198_v45 = vadd.f32 %v2105_v28, %v1997_v6  ;;  %3248 = vst [vmem:[#allocation5 + $0x8] sm:$0xff] %v3216_v21  ;;  %v3185_v36 = vadd.f32 %v3121_v55, %v2691_v8  ;;  %3117 = vrot.lane.b32.xlu1 %v2990_v62, %s3515_s4  ;;  %3115 = vrot.lane.b32.xlu0 %v2988_v11, %s3515_s4  ;;  %v2108_v16 = vrot.slane %v7202_v10, 2  ;;  %v8402_v62 = vld [vmem:[#allocation148_spill] sm:$0xff]  ;;  %v8403_v10 = vld [vmem:[#allocation149_spill] sm:$0xff]  ;;  %v8406_v7 = vld [vmem:[#allocation103_spill] sm:$0xff] }
 0x315   :  { %v1935_v49 = vsel %vm740_vm3, %v8399_v34, %v8398_v30  ;;  %v2107_v0 = vsel %vm2096_vm1, %v2104_v33, %v2106_v41  ;;  %v2035_v6 = vmul.f32 %v3448_v1, %v7006_v4  ;;  %v1505_v28 = vadd.f32 %v1441_v12, %v7084_v13  ;;  %v8405_v8 = vld [vmem:[#allocation276_spill] sm:$0xff]  ;;  %v8409_v50 = vld [vmem:[#allocation233_spill] sm:$0xff] }
 0x316   :  { %v1013_v26 = vadd.f32 %v6535_v57, %v812_v51  ;;  %v2692_v48 = vadd.f32 %v2628_v59, %v2198_v45  ;;  %v3217_v35 = vmul.f32 100.0, %v3185_v36  ;;  %v3006_v44 = vpop.permute.xlu1 %3005  ;;  %v3004_v3 = vpop.permute.xlu0 %3003  ;;  %v749_v33 = vsel %vm740_vm3, %v8401_v43, %v8400_v63  ;;  %v8407_v57 = vld [vmem:[#allocation104_spill] sm:$0xff]  ;;  %v8415_v63 = vld [vmem:[#allocation277_spill] sm:$0xff]  ;;  %v8416_v43 = vld [vmem:[#allocation278_spill] sm:$0xff] }
 0x317   :  { %v1442_v11 = vsel %vm385_vm2, %v8403_v10, %v8402_v62  ;;  %v2629_v21 = vsel %vm385_vm2, %v8405_v8, %v8404_v19  ;;  %v3122_v13 = vsel %vm740_vm3, %v3004_v3, %v3006_v44  ;;  %v750_v51 = vsel %vm740_vm3, %v8407_v57, %v8406_v7  ;;  %v8408_v12 = vld [vmem:[#allocation232_spill] sm:$0xff]  ;;  %v8413_v3 = vld [vmem:[#allocation150_spill] sm:$0xff]  ;;  %v8545_v32 = vld [vmem:[#allocation133_spill] sm:$0xff] }
 0x318   :  { %v1999_v15 = vadd.f32 %v1935_v49, %v1505_v28  ;;  %v2199_v56 = vadd.f32 %v2107_v0, %v1998_v61  ;;  %3249 = vst [vmem:[#allocation5 + $0x10] sm:$0xff] %v3217_v35  ;;  %v3186_v52 = vadd.f32 %v3122_v13, %v2692_v48  ;;  %v1936_v27 = vsel %vm740_vm3, %v8409_v50, %v8408_v12  ;;  %v3449_v45 = vld [vmem:[%s7779_s1 + $0x80] sm:$0xff]  ;;  %v8411_v48 = vld [vmem:[#allocation105_spill] sm:$0xff]  ;;  %v8412_v35 = vld [vmem:[#allocation106_spill] sm:$0xff] }
 0x319   :  { %v2109_v59 = vsel %vm2096_vm1, %v2106_v41, %v2108_v16  ;;  %v2110_v55 = vrot.slane %v2035_v6, 2  ;;  %v2036_v36 = vmul.f32 %v3449_v45, %v7006_v4  ;;  %v8410_v30 = vld [vmem:[#allocation32_spill] sm:$0xff]  ;;  %v1506_v1 = vadd.f32 %v1442_v11, %v1012_v29  ;;  %v8414_v41 = vld [vmem:[#allocation151_spill] sm:$0xff]  ;;  %v8417_v8 = vld [vmem:[#allocation234_spill] sm:$0xff] }
 0x31a   :  { %v813_v34 = vadd.f32 %v749_v33, %v8410_v30  ;;  %v2693_v49 = vadd.f32 %v2629_v21, %v2199_v56  ;;  %v3218_v61 = vmul.f32 100.0, %v3186_v52  ;;  %v3010_v0 = vpop.permute.xlu1 %3009  ;;  %v3008_v28 = vpop.permute.xlu0 %3007  ;;  %v751_v44 = vsel %vm740_vm3, %v8412_v35, %v8411_v48  ;;  %v8418_v21 = vld [vmem:[#allocation235_spill] sm:$0xff]  ;;  %v3450_v56 = vld [vmem:[%s7779_s1 + $0x90] sm:$0xff]  ;;  %v8420_v30 = vld [vmem:[#allocation152_spill] sm:$0xff] }
 0x31b   :  { %v1443_v6 = vsel %vm385_vm2, %v8414_v41, %v8413_v3  ;;  %v2630_v62 = vsel %vm385_vm2, %v8416_v43, %v8415_v63  ;;  %v3123_v10 = vsel %vm740_vm3, %v3008_v28, %v3010_v0  ;;  %v814_v29 = vadd.f32 %v750_v51, %v6555_v17  ;;  %v8424_v35 = vld [vmem:[#allocation236_spill] sm:$0xff] }
 0x31c   :  { %v2000_v33 = vadd.f32 %v1936_v27, %v1506_v1  ;;  %v2200_v11 = vadd.f32 %v2109_v59, %v1999_v15  ;;  %3250 = vst [vmem:[#allocation5 + $0x18] sm:$0xff] %v3218_v61  ;;  %v3187_v19 = vadd.f32 %v3123_v10, %v2693_v49  ;;  %v1937_v13 = vsel %vm740_vm3, %v8418_v21, %v8417_v8  ;;  %v8419_v59 = vld [vmem:[#allocation33_spill] sm:$0xff]  ;;  %v8423_v49 = vld [vmem:[#allocation280_spill] sm:$0xff]  ;;  %v8428_v21 = vld [vmem:[#allocation154_spill] sm:$0xff] }
 0x31d   :  { %v2111_v7 = vsel %vm2096_vm1, %v2108_v16, %v2110_v55  ;;  %v2112_v57 = vrot.slane %v2036_v36, 2  ;;  %v2037_v52 = vmul.f32 %v3450_v56, %v7006_v4  ;;  %v815_v12 = vadd.f32 %v751_v44, %v6577_v42  ;;  %v8421_v1 = vld [vmem:[#allocation153_spill] sm:$0xff]  ;;  %v8422_v36 = vld [vmem:[#allocation279_spill] sm:$0xff]  ;;  %v8431_v56 = vld [vmem:[#allocation282_spill] sm:$0xff] }
 0x31e   :  { %v1507_v17 = vadd.f32 %v1443_v6, %v1013_v26  ;;  %v2694_v51 = vadd.f32 %v2630_v62, %v2200_v11  ;;  %v3219_v15 = vmul.f32 100.0, %v3187_v19  ;;  %v3014_v50 = vpop.permute.xlu1 %3013  ;;  %v3012_v27 = vpop.permute.xlu0 %3011  ;;  %v1014_v45 = vadd.f32 %v8419_v59, %v813_v34  ;;  %v8425_v44 = vld [vmem:[#allocation237_spill] sm:$0xff]  ;;  %v3451_v6 = vld [vmem:[%s7779_s1 + $0xa0] sm:$0xff]  ;;  %v8426_v11 = vld [vmem:[#allocation107_spill] sm:$0xff] }
 0x31f   :  { %v1444_v16 = vsel %vm385_vm2, %v8421_v1, %v8420_v30  ;;  %v2631_v61 = vsel %vm385_vm2, %v8423_v49, %v8422_v36  ;;  %v3124_v0 = vsel %vm740_vm3, %v3012_v27, %v3014_v50  ;;  %v1015_v28 = vadd.f32 %v6580_v38, %v814_v29  ;;  %v8427_v19 = vld [vmem:[#allocation108_spill] sm:$0xff]  ;;  %v8434_v59 = vld [vmem:[#allocation238_spill] sm:$0xff] }
 0x320   :  { %v2001_v42 = vadd.f32 %v1937_v13, %v1507_v17  ;;  %v2201_v26 = vadd.f32 %v2111_v7, %v2000_v33  ;;  %3251 = vst [vmem:[#allocation5 + $0x20] sm:$0xff] %v3219_v15  ;;  %v3188_v48 = vadd.f32 %v3124_v0, %v2694_v51  ;;  %v1938_v34 = vsel %vm740_vm3, %v8425_v44, %v8424_v35  ;;  %v8430_v7 = vld [vmem:[#allocation281_spill] sm:$0xff]  ;;  %v3452_v36 = vld [vmem:[%s7779_s1 + $0xb0] sm:$0xff]  ;;  %v8436_v44 = vld [vmem:[#allocation111_spill] sm:$0xff] }
 0x321   :  { %v2113_v3 = vsel %vm2096_vm1, %v2110_v55, %v2112_v57  ;;  %v2114_v41 = vrot.slane %v2037_v52, 2  ;;  %v2038_v63 = vmul.f32 %v3451_v6, %v7006_v4  ;;  %v1508_v43 = vadd.f32 %v1444_v16, %v1014_v45  ;;  %v8429_v55 = vld [vmem:[#allocation155_spill] sm:$0xff]  ;;  %v8432_v51 = vld [vmem:[#allocation109_spill] sm:$0xff]  ;;  %v8438_v6 = vld [vmem:[#allocation156_spill] sm:$0xff] }
 0x322   :  { %v1016_v38 = vadd.f32 %v6588_v39, %v815_v12  ;;  %v2695_v62 = vadd.f32 %v2631_v61, %v2201_v26  ;;  %v3220_v10 = vmul.f32 100.0, %v3188_v48  ;;  %v3018_v29 = vpop.permute.xlu1 %3017  ;;  %v3016_v33 = vpop.permute.xlu0 %3015  ;;  %v752_v8 = vsel %vm740_vm3, %v8427_v19, %v8426_v11  ;;  %v8433_v39 = vld [vmem:[#allocation110_spill] sm:$0xff]  ;;  %v8435_v45 = vld [vmem:[#allocation239_spill] sm:$0xff]  ;;  %v8442_v19 = vld [vmem:[#allocation240_spill] sm:$0xff] }
 0x323   :  { %v1445_v13 = vsel %vm385_vm2, %v8429_v55, %v8428_v21  ;;  %v2632_v52 = vsel %vm385_vm2, %v8431_v56, %v8430_v7  ;;  %v3125_v17 = vsel %vm740_vm3, %v3016_v33, %v3018_v29  ;;  %v753_v12 = vsel %vm740_vm3, %v8433_v39, %v8432_v51  ;;  %v3453_v7 = vld [vmem:[%s7779_s1 + $0xc0] sm:$0xff] }
 0x324   :  { %v2002_v15 = vadd.f32 %v1938_v34, %v1508_v43  ;;  %v2202_v50 = vadd.f32 %v2113_v3, %v2001_v42  ;;  %3252 = vst [vmem:[#allocation5 + $0x28] sm:$0xff] %v3220_v10  ;;  %v3189_v27 = vadd.f32 %v3125_v17, %v2695_v62  ;;  %v1939_v30 = vsel %vm740_vm3, %v8435_v45, %v8434_v59  ;;  %v8437_v34 = vld [vmem:[#allocation112_spill] sm:$0xff]  ;;  %v8440_v43 = vld [vmem:[#allocation286_spill] sm:$0xff]  ;;  %v8441_v62 = vld [vmem:[#allocation287_spill] sm:$0xff] }
 0x325   :  { %v2115_v1 = vsel %vm2096_vm1, %v2112_v57, %v2114_v41  ;;  %v2116_v16 = vrot.slane %v2038_v63, 2  ;;  %v2039_v49 = vmul.f32 %v3452_v36, %v7006_v4  ;;  %v816_v61 = vadd.f32 %v752_v8, %v6585_v31  ;;  %v8439_v57 = vld [vmem:[#allocation157_spill] sm:$0xff]  ;;  %v8446_v59 = vld [vmem:[#allocation298_spill] sm:$0xff]  ;;  %v8447_v45 = vld [vmem:[#allocation299_spill] sm:$0xff] }
 0x326   :  { %v1509_v0 = vadd.f32 %v1445_v13, %v1015_v28  ;;  %v2696_v26 = vadd.f32 %v2632_v52, %v2202_v50  ;;  %v3221_v42 = vmul.f32 100.0, %v3189_v27  ;;  %v3022_v48 = vpop.permute.xlu1 %3021  ;;  %v3020_v35 = vpop.permute.xlu0 %3019  ;;  %v754_v3 = vsel %vm740_vm3, %v8437_v34, %v8436_v44  ;;  %v8443_v8 = vld [vmem:[#allocation241_spill] sm:$0xff]  ;;  %v8444_v50 = vld [vmem:[#allocation158_spill] sm:$0xff]  ;;  %v8445_v27 = vld [vmem:[#allocation159_spill] sm:$0xff] }
 0x327   :  { %v1446_v63 = vsel %vm385_vm2, %v8439_v57, %v8438_v6  ;;  %v2633_v10 = vsel %vm385_vm2, %v8441_v62, %v8440_v43  ;;  %v3126_v29 = vsel %vm740_vm3, %v3020_v35, %v3022_v48  ;;  %v817_v31 = vadd.f32 %v753_v12, %v6598_v47  ;;  %v3454_v48 = vld [vmem:[%s7779_s1 + $0xd0] sm:$0xff] }
 0x328   :  { %v2003_v28 = vadd.f32 %v1939_v30, %v1509_v0  ;;  %v2203_v33 = vadd.f32 %v2115_v1, %v2002_v15  ;;  %3253 = vst [vmem:[#allocation5 + $0x30] sm:$0xff] %v3221_v42  ;;  %v3190_v11 = vadd.f32 %v3126_v29, %v2696_v26  ;;  %v1940_v21 = vsel %vm740_vm3, %v8443_v8, %v8442_v19  ;;  %v8448_v0 = vld [vmem:[#allocation242_spill] sm:$0xff]  ;;  %v8449_v26 = vld [vmem:[#allocation243_spill] sm:$0xff] }
 0x329   :  { %v2117_v55 = vsel %vm2096_vm1, %v2114_v41, %v2116_v16  ;;  %v2118_v13 = vrot.slane %v2039_v49, 2  ;;  %v2040_v56 = vmul.f32 %v3453_v7, %v7006_v4  ;;  %v818_v52 = vadd.f32 %v754_v3, %v6657_v40  ;;  %v8451_v43 = vld [vmem:[#allocation114_spill] sm:$0xff]  ;;  %v8456_v19 = vld [vmem:[#allocation115_spill] sm:$0xff] }
 0x32a   :  { %v1510_v47 = vadd.f32 %v1446_v63, %v1016_v38  ;;  %v2697_v17 = vadd.f32 %v2633_v10, %v2203_v33  ;;  %v3222_v51 = vmul.f32 100.0, %v3190_v11  ;;  %v3026_v39 = vpop.permute.xlu1 %3025  ;;  %v3024_v12 = vpop.permute.xlu0 %3023  ;;  %v1017_v15 = vadd.f32 %v6591_v22, %v816_v61  ;;  %v8450_v63 = vld [vmem:[#allocation113_spill] sm:$0xff]  ;;  %v8452_v10 = vld [vmem:[#allocation160_spill] sm:$0xff] }
 0x32b   :  { %v1447_v41 = vsel %vm385_vm2, %v8445_v27, %v8444_v50  ;;  %v2634_v30 = vsel %vm385_vm2, %v8447_v45, %v8446_v59  ;;  %v3127_v1 = vsel %vm740_vm3, %v3024_v12, %v3026_v39  ;;  %v1018_v36 = vadd.f32 %v6601_v5, %v817_v31  ;;  %v8454_v31 = vld [vmem:[#allocation306_spill] sm:$0xff]  ;;  %v3455_v39 = vld [vmem:[%s7779_s1 + $0xe0] sm:$0xff] }
 0x32c   :  { %v2004_v40 = vadd.f32 %v1940_v21, %v1510_v47  ;;  %v2204_v38 = vadd.f32 %v2117_v55, %v2003_v28  ;;  %3254 = vst [vmem:[#allocation5 + $0x38] sm:$0xff] %v3222_v51  ;;  %v3191_v49 = vadd.f32 %v3127_v1, %v2697_v17  ;;  %v1941_v22 = vsel %vm740_vm3, %v8449_v26, %v8448_v0  ;;  %v8455_v28 = vld [vmem:[#allocation307_spill] sm:$0xff]  ;;  %v8461_v1 = vld [vmem:[#allocation118_spill] sm:$0xff]  ;;  %v8464_v0 = vld [vmem:[#allocation24_spill] sm:$0xff] }
 0x32d   :  { %v2119_v61 = vsel %vm2096_vm1, %v2116_v16, %v2118_v13  ;;  %v2120_v42 = vrot.slane %v2040_v56, 2  ;;  %v2041_v35 = vmul.f32 %v3454_v48, %v7006_v4  ;;  %v1511_v44 = vadd.f32 %v1447_v41, %v1017_v15  ;;  %v8453_v16 = vld [vmem:[#allocation161_spill] sm:$0xff]  ;;  %v8458_v56 = vld [vmem:[#allocation244_spill] sm:$0xff]  ;;  %v8465_v26 = vld [vmem:[#allocation22_spill] sm:$0xff] }
 0x32e   :  { %v1019_v5 = vadd.f32 %v6660_v9, %v818_v52  ;;  %v2698_v34 = vadd.f32 %v2634_v30, %v2204_v38  ;;  %v3223_v3 = vmul.f32 100.0, %v3191_v49  ;;  %v3030_v6 = vpop.permute.xlu1 %3029  ;;  %v3028_v57 = vpop.permute.xlu0 %3027  ;;  %v755_v62 = vsel %vm740_vm3, %v8451_v43, %v8450_v63  ;;  %v8457_v9 = vld [vmem:[#allocation116_spill] sm:$0xff]  ;;  %v8459_v52 = vld [vmem:[#allocation245_spill] sm:$0xff]  ;;  %v8462_v38 = vld [vmem:[#allocation162_spill] sm:$0xff] }
 0x32f   :  { %v1448_v29 = vsel %vm385_vm2, %v8453_v16, %v8452_v10  ;;  %v2635_v33 = vsel %vm385_vm2, %v8455_v28, %v8454_v31  ;;  %v3128_v11 = vsel %vm740_vm3, %v3028_v57, %v3030_v6  ;;  %v756_v8 = vsel %vm740_vm3, %v8457_v9, %v8456_v19  ;;  %v8460_v30 = vld [vmem:[#allocation117_spill] sm:$0xff]  ;;  %v3456_v63 = vld [vmem:[%s7779_s1 + $0xf0] sm:$0xff]  ;;  %v8471_v9 = vld [vmem:[#allocation27_spill] sm:$0xff] }
 0x330   :  { %v2005_v21 = vadd.f32 %v1941_v22, %v1511_v44  ;;  %v2205_v55 = vadd.f32 %v2119_v61, %v2004_v40  ;;  %3255 = vst [vmem:[#allocation5 + $0x40] sm:$0xff] %v3223_v3  ;;  %v3192_v7 = vadd.f32 %v3128_v11, %v2698_v34  ;;  %v1942_v47 = vsel %vm740_vm3, %v8459_v52, %v8458_v56  ;;  %v8466_v44 = vld [vmem:[#allocation246_spill] sm:$0xff]  ;;  %v8467_v34 = vld [vmem:[#allocation247_spill] sm:$0xff]  ;;  %v8469_v11 = vld [vmem:[#allocation165_spill] sm:$0xff] }
 0x331   :  { %v2121_v17 = vsel %vm2096_vm1, %v2118_v13, %v2120_v42  ;;  %v2122_v51 = vrot.slane %v2041_v35, 2  ;;  %v2042_v12 = vmul.f32 %v3455_v39, %v7006_v4  ;;  %v819_v15 = vadd.f32 %v755_v62, %v6663_v24  ;;  %v8463_v13 = vld [vmem:[#allocation163_spill] sm:$0xff]  ;;  %v8470_v19 = vld [vmem:[#allocation26_spill] sm:$0xff] }
 0x332   :  { %v1512_v50 = vadd.f32 %v1448_v29, %v1018_v36  ;;  %v2699_v27 = vadd.f32 %v2635_v33, %v2205_v55  ;;  %v3224_v41 = vmul.f32 100.0, %v3192_v7  ;;  %v3034_v59 = vpop.permute.xlu1 %3033  ;;  %v3032_v45 = vpop.permute.xlu0 %3031  ;;  %v757_v40 = vsel %vm740_vm3, %v8461_v1, %v8460_v30  ;;  %v8468_v33 = vld [vmem:[#allocation164_spill] sm:$0xff]  ;;  %v8472_v56 = vld [vmem:[#allocation38_spill] sm:$0xff] }
 0x333   :  { %v1449_v49 = vsel %vm385_vm2, %v8463_v13, %v8462_v38  ;;  %v2636_v22 = vsel %vm385_vm2, %v8465_v26, %v8464_v0  ;;  %v3129_v61 = vsel %vm740_vm3, %v3032_v45, %v3034_v59  ;;  %v820_v24 = vadd.f32 %v756_v8, %v6688_v23  ;;  %v8477_v38 = vld [vmem:[#allocation120_spill] sm:$0xff]  ;;  %v8479_v0 = vld [vmem:[#allocation167_spill] sm:$0xff] }
 0x334   :  { %v2006_v36 = vadd.f32 %v1942_v47, %v1512_v50  ;;  %v2206_v48 = vadd.f32 %v2121_v17, %v2005_v21  ;;  %3256 = vst [vmem:[#allocation5 + $0x48] sm:$0xff] %v3224_v41  ;;  %v3193_v35 = vadd.f32 %v3129_v61, %v2699_v27  ;;  %v1943_v3 = vsel %vm740_vm3, %v8467_v34, %v8466_v44  ;;  %v8473_v47 = vld [vmem:[#allocation248_spill] sm:$0xff]  ;;  %v8474_v17 = vld [vmem:[#allocation249_spill] sm:$0xff]  ;;  %v8482_v34 = vld [vmem:[#allocation250_spill] sm:$0xff] }
 0x335   :  { %v2123_v6 = vsel %vm2096_vm1, %v2120_v42, %v2122_v51  ;;  %v2124_v57 = vrot.slane %v2042_v12, 2  ;;  %v2043_v43 = vmul.f32 %v3456_v63, %v7006_v4  ;;  %v821_v62 = vadd.f32 %v757_v40, %v6699_v46  ;;  %v3457_v46 = vld [vmem:[%s7779_s1 + $0x100] sm:$0x3]  ;;  %v8476_v40 = vld [vmem:[#allocation119_spill] sm:$0xff]  ;;  %v8481_v61 = vld [vmem:[#allocation29_spill] sm:$0xff] }
 0x336   :  { %v1513_v23 = vadd.f32 %v1449_v49, %v1019_v5  ;;  %v2700_v10 = vadd.f32 %v2636_v22, %v2206_v48  ;;  %v3225_v16 = vmul.f32 100.0, %v3193_v35  ;;  %v3038_v29 = vpop.permute.xlu1 %3037  ;;  %v3036_v31 = vpop.permute.xlu0 %3035  ;;  %v1020_v28 = vadd.f32 %v6691_v20, %v819_v15  ;;  %v8475_v27 = vld [vmem:[#allocation40_spill] sm:$0xff]  ;;  %v8478_v49 = vld [vmem:[#allocation166_spill] sm:$0xff] }
 0x337   :  { %v1450_v42 = vsel %vm385_vm2, %v8469_v11, %v8468_v33  ;;  %v2637_v8 = vsel %vm385_vm2, %v8471_v9, %v8470_v19  ;;  %v3130_v21 = vsel %vm740_vm3, %v3036_v31, %v3038_v29  ;;  %v2207_v7 = vadd.f32 %v2123_v6, %v2006_v36  ;;  %v8480_v22 = vld [vmem:[#allocation28_spill] sm:$0xff]  ;;  %v8486_v19 = vld [vmem:[#allocation122_spill] sm:$0xff] }
 0x338   :  { %v2007_v55 = vadd.f32 %v1943_v3, %v1513_v23  ;;  %v2044_v5 = vmul.f32 %v3457_v46, %v7006_v4  ;;  %3257 = vst [vmem:[#allocation5 + $0x50] sm:$0xff] %v3225_v16  ;;  %v3194_v20 = vadd.f32 %v3130_v21, %v2700_v10  ;;  %v1021_v52 = vadd.f32 %v8472_v56, %v820_v24  ;;  %v8483_v3 = vld [vmem:[#allocation251_spill] sm:$0xff]  ;;  %v3459_v23 = vld [vmem:[%s7779_s1 + $0x120] sm:$0xff]  ;;  %v8484_v16 = vld [vmem:[#allocation41_spill] sm:$0xff] }
 0x339   :  { %v1944_v39 = vsel %vm740_vm3, %v8474_v17, %v8473_v47  ;;  %v2125_v12 = vsel %vm2096_vm1, %v2122_v51, %v2124_v57  ;;  %v2126_v15 = vrot.slane %v2043_v43, 2  ;;  %v1514_v50 = vadd.f32 %v1450_v42, %v1020_v28  ;;  %v3458_v43 = vld [vmem:[%s7779_s1 + $0x110] sm:$0xff]  ;;  %v8488_v21 = vld [vmem:[#allocation169_spill] sm:$0xff]  ;;  %v8490_v46 = vld [vmem:[#allocation31_spill] sm:$0xff] }
 0x33a   :  { %v1022_v41 = vadd.f32 %v8475_v27, %v821_v62  ;;  %v2701_v59 = vadd.f32 %v2637_v8, %v2207_v7  ;;  %v3226_v45 = vmul.f32 100.0, %v3194_v20  ;;  %v3042_v30 = vpop.permute.xlu1 %3041  ;;  %v3040_v1 = vpop.permute.xlu0 %3039  ;;  %v758_v13 = vsel %vm740_vm3, %v8477_v38, %v8476_v40  ;;  %v8487_v8 = vld [vmem:[#allocation168_spill] sm:$0xff]  ;;  %v8489_v7 = vld [vmem:[#allocation30_spill] sm:$0xff] }
 0x33b   :  { %v1451_v26 = vsel %vm385_vm2, %v8479_v0, %v8478_v49  ;;  %v2638_v51 = vsel %vm385_vm2, %v8481_v61, %v8480_v22  ;;  %v3131_v24 = vsel %vm740_vm3, %v3040_v1, %v3042_v30  ;;  %v2008_v36 = vadd.f32 %v1944_v39, %v1514_v50  ;;  %v8491_v39 = vld [vmem:[#allocation252_spill] sm:$0xff] }
 0x33c   :  { %v2208_v48 = vadd.f32 %v2125_v12, %v2007_v55  ;;  %v2128_v35 = vrot.slane %v2044_v5, 2  ;;  %3258 = vst [vmem:[#allocation5 + $0x58] sm:$0xff] %v3226_v45  ;;  %v3195_v44 = vadd.f32 %v3131_v24, %v2701_v59  ;;  %v1945_v6 = vsel %vm740_vm3, %v8483_v3, %v8482_v34  ;;  %v8492_v12 = vld [vmem:[#allocation253_spill] sm:$0xff]  ;;  %v3460_v45 = vld [vmem:[%s7779_s1 + $0x130] sm:$0xff]  ;;  %v8495_v61 = vld [vmem:[#allocation44_spill] sm:$0xff] }
 0x33d   :  { %v2127_v63 = vsel %vm2096_vm1, %v2124_v57, %v2126_v15  ;;  %v2045_v62 = vmul.f32 %v3458_v43, %v7006_v4  ;;  %v2046_v10 = vmul.f32 %v3459_v23, %v7006_v4  ;;  %v822_v29 = vadd.f32 %v758_v13, %v8484_v16  ;;  %v8485_v57 = vld [vmem:[#allocation121_spill] sm:$0xff]  ;;  %v8496_v24 = vld [vmem:[#allocation170_spill] sm:$0xff]  ;;  %v8501_v43 = vld [vmem:[#allocation255_spill] sm:$0xff] }
 0x33e   :  { %v1515_v31 = vadd.f32 %v1451_v26, %v1021_v52  ;;  %v2702_v28 = vadd.f32 %v2638_v51, %v2208_v48  ;;  %v3227_v33 = vmul.f32 100.0, %v3195_v44  ;;  %v3046_v11 = vpop.permute.xlu1 %3045  ;;  %v3044_v42 = vpop.permute.xlu0 %3043  ;;  %v759_v9 = vsel %vm740_vm3, %v8486_v19, %v8485_v57  ;;  %v8494_v26 = vld [vmem:[#allocation43_spill] sm:$0xff]  ;;  %v8499_v44 = vld [vmem:[#allocation124_spill] sm:$0xff] }
 0x33f   :  { %v1452_v55 = vsel %vm385_vm2, %v8488_v21, %v8487_v8  ;;  %v2639_v5 = vsel %vm385_vm2, %v8490_v46, %v8489_v7  ;;  %v3132_v20 = vsel %vm740_vm3, %v3044_v42, %v3046_v11  ;;  %v2209_v52 = vadd.f32 %v2127_v63, %v2008_v36  ;;  %v8497_v36 = vld [vmem:[#allocation171_spill] sm:$0xff]  ;;  %v8500_v63 = vld [vmem:[#allocation254_spill] sm:$0xff]  ;;  %v3461_v16 = vld [vmem:[%s7779_s1 + $0x140] sm:$0xff] }
 0x340   :  { %v2009_v56 = vadd.f32 %v1945_v6, %v1515_v31  ;;  %v2129_v47 = vsel %vm2096_vm1, %v2126_v15, %v2128_v35  ;;  %3259 = vst [vmem:[#allocation5 + $0x60] sm:$0xff] %v3227_v33  ;;  %v3196_v17 = vadd.f32 %v3132_v20, %v2702_v28  ;;  %v1946_v50 = vsel %vm740_vm3, %v8492_v12, %v8491_v39  ;;  %v8498_v35 = vld [vmem:[#allocation123_spill] sm:$0xff]  ;;  %v8503_v28 = vld [vmem:[#allocation80_spill] sm:$0xff]  ;;  %v8504_v42 = vld [vmem:[#allocation34_spill] sm:$0xff] }
 0x341   :  { %v2130_v27 = vrot.slane %v2045_v62, 2  ;;  %v2131_v59 = vrot.slane %v2046_v10, 2  ;;  %v2047_v30 = vmul.f32 %v3460_v45, %v7006_v4  ;;  %v1516_v1 = vadd.f32 %v1452_v55, %v1022_v41  ;;  %v8502_v31 = vld [vmem:[#allocation79_spill] sm:$0xff]  ;;  %v8505_v21 = vld [vmem:[#allocation45_spill] sm:$0xff]  ;;  %v8506_v7 = vld [vmem:[#allocation46_spill] sm:$0xff] }
 0x342   :  { %v8493_v40 = vrot.slane %v6910_v37, 1  ;;  %v2703_v38 = vadd.f32 %v2639_v5, %v2209_v52  ;;  %v3228_v13 = vmul.f32 100.0, %v3196_v17  ;;  %v3050_v49 = vpop.permute.xlu1 %3049  ;;  %v3048_v0 = vpop.permute.xlu0 %3047  ;;  %v823_v22 = vadd.f32 %v759_v9, %v8494_v26  ;;  %v8507_v5 = vld [vmem:[#allocation172_spill] sm:$0xff]  ;;  %v8508_v20 = vld [vmem:[#allocation173_spill] sm:$0xff]  ;;  %v8510_v17 = vld [vmem:[#allocation126_spill] sm:$0xff] }
 0x343   :  { %v1023_v51 = vadd.f32 %v8495_v61, %v822_v29  ;;  %v1453_v48 = vsel %vm385_vm2, %v8497_v36, %v8496_v24  ;;  %v3133_v41 = vsel %vm740_vm3, %v3048_v0, %v3050_v49  ;;  %v760_v37 = vsel %vm740_vm3, %v8499_v44, %v8498_v35  ;;  %v8511_v45 = vld [vmem:[#allocation256_spill] sm:$0xff]  ;;  %v8513_v0 = vld [vmem:[#allocation23_spill] sm:$0xff]  ;;  %v8516_v44 = vld [vmem:[#allocation49_spill] sm:$0xff] }
 0x344   :  { %v7457_v15 = vsel %vm907_vm0, %v8493_v40, %v966_v18  ;;  %v2010_v34 = vadd.f32 %v1946_v50, %v1516_v1  ;;  %v2210_v3 = vadd.f32 %v2129_v47, %v2009_v56  ;;  %3260 = vst [vmem:[#allocation5 + $0x68] sm:$0xff] %v3228_v13  ;;  %v3197_v6 = vadd.f32 %v3133_v41, %v2703_v38  ;;  %v8509_v47 = vld [vmem:[#allocation125_spill] sm:$0xff]  ;;  %v3462_v13 = vld [vmem:[%s7779_s1 + $0x150] sm:$0xff]  ;;  %v8514_v61 = vld [vmem:[#allocation35_spill] sm:$0xff] }
 0x345   :  { %v1947_v62 = vsel %vm740_vm3, %v8501_v43, %v8500_v63  ;;  %v2132_v23 = vsel %vm2096_vm1, %v2130_v27, %v2131_v59  ;;  %v2133_v10 = vrot.slane %v2047_v30, 2  ;;  %v2048_v29 = vmul.f32 %v3461_v16, %v7006_v4  ;;  %v8512_v30 = vld [vmem:[#allocation257_spill] sm:$0xff]  ;;  %v8515_v41 = vld [vmem:[#allocation48_spill] sm:$0xff]  ;;  %v8519_v63 = vld [vmem:[#allocation127_spill] sm:$0xff] }
 0x346   :  { %v415_v33 = vsel %vm385_vm2, %v8503_v28, %v8502_v31  ;;  %v1517_v11 = vadd.f32 %v1453_v48, %v1023_v51  ;;  %v2704_v57 = vadd.f32 %v8504_v42, %v2210_v3  ;;  %v3229_v19 = vmul.f32 100.0, %v3197_v6  ;;  %v3054_v9 = vpop.permute.xlu1 %3053  ;;  %v3052_v8 = vpop.permute.xlu0 %3051  ;;  %v8520_v43 = vld [vmem:[#allocation128_spill] sm:$0xff]  ;;  %v8521_v31 = vld [vmem:[#allocation258_spill] sm:$0xff]  ;;  %v8522_v28 = vld [vmem:[#allocation259_spill] sm:$0xff] }
 0x347   :  { %v824_v55 = vadd.f32 %v760_v37, %v8505_v21  ;;  %v1024_v46 = vadd.f32 %v8506_v7, %v823_v22  ;;  %v1454_v56 = vsel %vm385_vm2, %v8508_v20, %v8507_v5  ;;  %v3134_v52 = vsel %vm740_vm3, %v3052_v8, %v3054_v9  ;;  %v8517_v37 = vld [vmem:[#allocation174_spill] sm:$0xff]  ;;  %v8523_v21 = vld [vmem:[#allocation36_spill] sm:$0xff]  ;;  %v8524_v20 = vld [vmem:[#allocation51_spill] sm:$0xff] }
 0x348   :  { %v761_v39 = vsel %vm740_vm3, %v8510_v17, %v8509_v47  ;;  %v2011_v12 = vadd.f32 %v1947_v62, %v1517_v11  ;;  %v2211_v50 = vadd.f32 %v2132_v23, %v2010_v34  ;;  %3261 = vst [vmem:[#allocation5 + $0x70] sm:$0xff] %v3229_v19  ;;  %v3198_v27 = vadd.f32 %v3134_v52, %v2704_v57  ;;  %v8518_v34 = vld [vmem:[#allocation175_spill] sm:$0xff]  ;;  %v3463_v57 = vld [vmem:[%s7779_s1 + $0x160] sm:$0xff]  ;;  %v8525_v52 = vld [vmem:[#allocation50_spill] sm:$0xff] }
 0x349   :  { %v1948_v1 = vsel %vm740_vm3, %v8512_v30, %v8511_v45  ;;  %v2134_v40 = vsel %vm2096_vm1, %v2131_v59, %v2133_v10  ;;  %v2135_v38 = vrot.slane %v2048_v29, 2  ;;  %v2049_v49 = vmul.f32 %v3462_v13, %v7006_v4  ;;  %v8527_v17 = vld [vmem:[#allocation177_spill] sm:$0xff]  ;;  %v8530_v13 = vld [vmem:[#allocation260_spill] sm:$0xff] }
 0x34a   :  { %v7498_v26 = vadd.f32 %v415_v33, %v8513_v0  ;;  %v1518_v22 = vadd.f32 %v1454_v56, %v1024_v46  ;;  %v2705_v51 = vadd.f32 %v8514_v61, %v2211_v50  ;;  %v3230_v24 = vmul.f32 100.0, %v3198_v27  ;;  %v3058_v36 = vpop.permute.xlu1 %3057  ;;  %v3056_v48 = vpop.permute.xlu0 %3055  ;;  %v8528_v50 = vld [vmem:[#allocation129_spill] sm:$0xff]  ;;  %v8529_v27 = vld [vmem:[#allocation130_spill] sm:$0xff] }
 0x34b   :  { %v825_v35 = vadd.f32 %v761_v39, %v8515_v41  ;;  %v1025_v59 = vadd.f32 %v8516_v44, %v824_v55  ;;  %v1455_v3 = vsel %vm385_vm2, %v8518_v34, %v8517_v37  ;;  %v3135_v6 = vsel %vm740_vm3, %v3056_v48, %v3058_v36  ;;  %v8532_v41 = vld [vmem:[#allocation37_spill] sm:$0xff]  ;;  %v8533_v34 = vld [vmem:[#allocation54_spill] sm:$0xff] }
 0x34c   :  { %v762_v62 = vsel %vm740_vm3, %v8520_v43, %v8519_v63  ;;  %v2012_v23 = vadd.f32 %v1948_v1, %v1518_v22  ;;  %v2212_v16 = vadd.f32 %v2134_v40, %v2011_v12  ;;  %3262 = vst [vmem:[#allocation5 + $0x78] sm:$0xff] %v3230_v24  ;;  %v3199_v29 = vadd.f32 %v3135_v6, %v2705_v51  ;;  %v3464_v51 = vld [vmem:[%s7779_s1 + $0x170] sm:$0xff]  ;;  %v8536_v43 = vld [vmem:[#allocation179_spill] sm:$0xff] }
 0x34d   :  { %v1949_v33 = vsel %vm740_vm3, %v8522_v28, %v8521_v31  ;;  %v2136_v11 = vsel %vm2096_vm1, %v2133_v10, %v2135_v38  ;;  %v2137_v42 = vrot.slane %v2049_v49, 2  ;;  %v2050_v19 = vmul.f32 %v3463_v57, %v7006_v4  ;;  %v8526_v10 = vld [vmem:[#allocation176_spill] sm:$0xff]  ;;  %v8531_v49 = vld [vmem:[#allocation261_spill] sm:$0xff]  ;;  %v8535_v63 = vld [vmem:[#allocation178_spill] sm:$0xff] }
 0x34e   :  { %v1519_v9 = vadd.f32 %v1455_v3, %v1025_v59  ;;  %v968_v8 = vrot.slane %v6999_v58, 1  ;;  %v2706_v55 = vadd.f32 %v8523_v21, %v2212_v16  ;;  %v3231_v7 = vmul.f32 100.0, %v3199_v29  ;;  %v3062_v46 = vpop.permute.xlu1 %3061  ;;  %v3060_v5 = vpop.permute.xlu0 %3059  ;;  %v8537_v16 = vld [vmem:[#allocation131_spill] sm:$0xff]  ;;  %v8538_v29 = vld [vmem:[#allocation132_spill] sm:$0xff]  ;;  %v8592_v58 = vld [vmem:[#allocation18_spill] sm:$0xff] }
 0x34f   :  { %v826_v56 = vadd.f32 %v762_v62, %v8524_v20  ;;  %v1026_v47 = vadd.f32 %v8525_v52, %v825_v35  ;;  %v1456_v39 = vsel %vm385_vm2, %v8527_v17, %v8526_v10  ;;  %v3136_v12 = vsel %vm740_vm3, %v3060_v5, %v3062_v46  ;;  %v8540_v57 = vld [vmem:[#allocation263_spill] sm:$0xff] }
 0x350   :  { %v763_v45 = vsel %vm740_vm3, %v8529_v27, %v8528_v50  ;;  %v2013_v30 = vadd.f32 %v1949_v33, %v1519_v9  ;;  %v2213_v1 = vadd.f32 %v2136_v11, %v2012_v23  ;;  %3263 = vst [vmem:[#allocation5 + $0x80] sm:$0xff] %v3231_v7  ;;  %v3200_v40 = vadd.f32 %v3136_v12, %v2706_v55  ;;  %v8539_v11 = vld [vmem:[#allocation262_spill] sm:$0xff]  ;;  %v3465_v55 = vld [vmem:[%s7779_s1 + $0x180] sm:$0xff]  ;;  %v8541_v20 = vld [vmem:[#allocation39_spill] sm:$0xff] }
 0x351   :  { %v1950_v0 = vsel %vm740_vm3, %v8531_v49, %v8530_v13  ;;  %v2138_v22 = vsel %vm2096_vm1, %v2135_v38, %v2137_v42  ;;  %v2139_v61 = vrot.slane %v2050_v19, 2  ;;  %v2051_v24 = vmul.f32 %v3464_v51, %v7006_v4  ;;  %v8534_v38 = vld [vmem:[#allocation53_spill] sm:$0xff]  ;;  %v8543_v12 = vld [vmem:[#allocation183_spill] sm:$0xff]  ;;  %v8546_v13 = vld [vmem:[#allocation180_spill] sm:$0xff] }
 0x352   :  { %v1520_v36 = vadd.f32 %v1456_v39, %v1026_v47  ;;  %v7539_v48 = vmul.f32 %v7118_v25, %v6183_v2  ;;  %v2707_v35 = vadd.f32 %v8532_v41, %v2213_v1  ;;  %v3232_v44 = vmul.f32 100.0, %v3200_v40  ;;  %v3066_v59 = vpop.permute.xlu1 %3065  ;;  %v3064_v37 = vpop.permute.xlu0 %3063  ;;  %v8542_v39 = vld [vmem:[#allocation182_spill] sm:$0xff]  ;;  %v8547_v49 = vld [vmem:[#allocation181_spill] sm:$0xff] }
 0x353   :  { %v827_v3 = vadd.f32 %v763_v45, %v8533_v34  ;;  %v1027_v6 = vadd.f32 %v8534_v38, %v826_v56  ;;  %v1457_v62 = vsel %vm385_vm2, %v8536_v43, %v8535_v63  ;;  %v3137_v23 = vsel %vm740_vm3, %v3064_v37, %v3066_v59  ;;  %v8544_v45 = vld [vmem:[#allocation8_spill] sm:$0xff]  ;;  %v8552_v63 = vld [vmem:[#allocation186_spill] sm:$0xff]  ;;  %v8553_v43 = vld [vmem:[#allocation187_spill] sm:$0xff] }
 0x354   :  { %v764_v25 = vsel %vm740_vm3, %v8538_v29, %v8537_v16  ;;  %v2014_v31 = vadd.f32 %v1950_v0, %v1520_v36  ;;  %v2214_v28 = vadd.f32 %v2138_v22, %v2013_v30  ;;  %3264 = vst [vmem:[#allocation5 + $0x88] sm:$0xff] %v3232_v44  ;;  %v3201_v33 = vadd.f32 %v3137_v23, %v2707_v35  ;;  %v3466_v22 = vld [vmem:[%s7779_s1 + $0x190] sm:$0xff]  ;;  %v8554_v16 = vld [vmem:[#allocation9_spill] sm:$0xff] }
 0x355   :  { %v1951_v19 = vsel %vm740_vm3, %v8540_v57, %v8539_v11  ;;  %v2140_v9 = vsel %vm2096_vm1, %v2137_v42, %v2139_v61  ;;  %v2141_v21 = vrot.slane %v2051_v24, 2  ;;  %v2052_v7 = vmul.f32 %v3465_v55, %v7006_v4  ;;  %v8548_v24 = vld [vmem:[#allocation81_spill] sm:$0xff]  ;;  %v8549_v36 = vld [vmem:[#allocation82_spill] sm:$0xff]  ;;  %v8556_v11 = vld [vmem:[#allocation184_spill] sm:$0xff] }
 0x356   :  { %v1521_v46 = vadd.f32 %v1457_v62, %v1027_v6  ;;  %v7564_v5 = vsel %vm907_vm0, %v966_v18, %v968_v8  ;;  %v2708_v56 = vadd.f32 %v8541_v20, %v2214_v28  ;;  %v3233_v52 = vmul.f32 100.0, %v3201_v33  ;;  %v3070_v47 = vpop.permute.xlu1 %3069  ;;  %v3068_v42 = vpop.permute.xlu0 %3067  ;;  %v8550_v44 = vld [vmem:[#allocation42_spill] sm:$0xff]  ;;  %v8557_v57 = vld [vmem:[#allocation185_spill] sm:$0xff]  ;;  %v3467_v55 = vld [vmem:[%s7779_s1 + $0x1a0] sm:$0xff] }
 0x357   :  { %v828_v10 = vadd.f32 %v764_v25, %v6860_v53  ;;  %v1028_v17 = vadd.f32 %v6863_v54, %v827_v3  ;;  %v1458_v50 = vsel %vm385_vm2, %v8543_v12, %v8542_v39  ;;  %v3138_v27 = vsel %vm740_vm3, %v3068_v42, %v3070_v47  ;;  %v8555_v29 = vld [vmem:[#allocation10_spill] sm:$0xff]  ;;  %v8560_v39 = vld [vmem:[#allocation289_spill] sm:$0xff] }
 0x358   :  { %v765_v18 = vsel %vm740_vm3, %v8545_v32, %v8544_v45  ;;  %v2015_v30 = vadd.f32 %v1951_v19, %v1521_v46  ;;  %v2215_v1 = vadd.f32 %v2140_v9, %v2014_v31  ;;  %3265 = vst [vmem:[#allocation5 + $0x90] sm:$0xff] %v3233_v52  ;;  %v3202_v40 = vadd.f32 %v3138_v27, %v2708_v56  ;;  %v8558_v46 = vld [vmem:[#allocation21_spill] sm:$0xff]  ;;  %v8559_v52 = vld [vmem:[#allocation47_spill] sm:$0xff]  ;;  %v8562_v27 = vld [vmem:[#allocation190_spill] sm:$0xff] }
 0x359   :  { %v1952_v53 = vsel %vm740_vm3, %v8547_v49, %v8546_v13  ;;  %v2142_v54 = vsel %vm2096_vm1, %v2139_v61, %v2141_v21  ;;  %v2143_v0 = vrot.slane %v2052_v7, 2  ;;  %v2053_v51 = vmul.f32 %v3466_v22, %v7006_v4  ;;  %v8551_v61 = vld [vmem:[#allocation56_spill] sm:$0xff]  ;;  %v8563_v45 = vld [vmem:[#allocation191_spill] sm:$0xff]  ;;  %v8567_v22 = vld [vmem:[#allocation189_spill] sm:$0xff] }
 0x35a   :  { %v416_v41 = vsel %vm385_vm2, %v8549_v36, %v8548_v24  ;;  %v1522_v35 = vadd.f32 %v1458_v50, %v1028_v17  ;;  %v2709_v59 = vadd.f32 %v8550_v44, %v2215_v1  ;;  %v3234_v37 = vmul.f32 100.0, %v3202_v40  ;;  %v3074_v34 = vpop.permute.xlu1 %3073  ;;  %v3072_v3 = vpop.permute.xlu0 %3071  ;;  %v8561_v50 = vld [vmem:[#allocation57_spill] sm:$0xff]  ;;  %v8565_v1 = vld [vmem:[#allocation12_spill] sm:$0xff] }
 0x35b   :  { %v829_v38 = vadd.f32 %v765_v18, %v6876_v14  ;;  %v1029_v6 = vadd.f32 %v8551_v61, %v828_v10  ;;  %v1459_v62 = vsel %vm385_vm2, %v8553_v43, %v8552_v63  ;;  %v3139_v23 = vsel %vm740_vm3, %v3072_v3, %v3074_v34  ;;  %v8570_v43 = vld [vmem:[#allocation58_spill] sm:$0xff] }
 0x35c   :  { %v766_v25 = vsel %vm740_vm3, %v8555_v29, %v8554_v16  ;;  %v2016_v31 = vadd.f32 %v1952_v53, %v1522_v35  ;;  %v2216_v28 = vadd.f32 %v2142_v54, %v2015_v30  ;;  %3266 = vst [vmem:[#allocation5 + $0x98] sm:$0xff] %v3234_v37  ;;  %v3203_v33 = vadd.f32 %v3139_v23, %v2709_v59  ;;  %v8564_v30 = vld [vmem:[#allocation11_spill] sm:$0xff]  ;;  %v8566_v54 = vld [vmem:[#allocation188_spill] sm:$0xff] }
 0x35d   :  { %v1953_v14 = vsel %vm740_vm3, %v8557_v57, %v8556_v11  ;;  %v2144_v19 = vsel %vm2096_vm1, %v2141_v21, %v2143_v0  ;;  %v2145_v9 = vrot.slane %v2053_v51, 2  ;;  %v2054_v7 = vmul.f32 %v3467_v55, %v7006_v4  ;;  %v8568_v37 = vld [vmem:[#allocation52_spill] sm:$0xff]  ;;  %v8572_v23 = vld [vmem:[#allocation195_spill] sm:$0xff] }
 0x35e   :  { %v7606_v20 = vadd.f32 %v416_v41, %v8558_v46  ;;  %v1523_v56 = vadd.f32 %v1459_v62, %v1029_v6  ;;  %v2710_v47 = vadd.f32 %v8559_v52, %v2216_v28  ;;  %v3235_v42 = vmul.f32 100.0, %v3203_v33  ;;  %v3078_v10 = vpop.permute.xlu1 %3077  ;;  %v3076_v17 = vpop.permute.xlu0 %3075  ;;  %v3468_v41 = vld [vmem:[%s7779_s1 + $0x1b0] sm:$0xff]  ;;  %v8569_v6 = vld [vmem:[#allocation59_spill] sm:$0xff] }
 0x35f   :  { %v830_v12 = vadd.f32 %v766_v25, %v8560_v39  ;;  %v1030_v21 = vadd.f32 %v8561_v50, %v829_v38  ;;  %v1460_v32 = vsel %vm385_vm2, %v8563_v45, %v8562_v27  ;;  %v3140_v18 = vsel %vm740_vm3, %v3076_v17, %v3078_v10  ;;  %v8573_v25 = vld [vmem:[#allocation13_spill] sm:$0xff]  ;;  %v8577_v10 = vld [vmem:[#allocation55_spill] sm:$0xff] }
 0x360   :  { %v767_v40 = vsel %vm740_vm3, %v8565_v1, %v8564_v30  ;;  %v2017_v13 = vadd.f32 %v1953_v14, %v1523_v56  ;;  %v2217_v49 = vadd.f32 %v2144_v19, %v2016_v31  ;;  %3267 = vst [vmem:[#allocation5 + $0xa0] sm:$0xff] %v3235_v42  ;;  %v3204_v53 = vadd.f32 %v3140_v18, %v2710_v47  ;;  %v8574_v31 = vld [vmem:[#allocation14_spill] sm:$0xff]  ;;  %v8575_v14 = vld [vmem:[#allocation192_spill] sm:$0xff]  ;;  %v8576_v19 = vld [vmem:[#allocation193_spill] sm:$0xff] }
 0x361   :  { %v1954_v51 = vsel %vm740_vm3, %v8567_v22, %v8566_v54  ;;  %v2146_v24 = vsel %vm2096_vm1, %v2143_v0, %v2145_v9  ;;  %v2147_v36 = vrot.slane %v2054_v7, 2  ;;  %v2055_v35 = vmul.f32 %v3468_v41, %v7006_v4  ;;  %v8571_v0 = vld [vmem:[#allocation194_spill] sm:$0xff]  ;;  %v3469_v56 = vld [vmem:[%s7779_s1 + $0x1c0] sm:$0xff]  ;;  %v8581_v18 = vld [vmem:[#allocation199_spill] sm:$0xff] }
 0x362   :  { %v1524_v44 = vadd.f32 %v1460_v32, %v1030_v21  ;;  %v970_v59 = vrot.slane %v7539_v48, 1  ;;  %v2711_v34 = vadd.f32 %v8568_v37, %v2217_v49  ;;  %v3236_v3 = vmul.f32 100.0, %v3204_v53  ;;  %v3082_v38 = vpop.permute.xlu1 %3081  ;;  %v3080_v61 = vpop.permute.xlu0 %3079  ;;  %v8578_v21 = vld [vmem:[#allocation284_spill] sm:$0xff]  ;;  %v8580_v32 = vld [vmem:[#allocation198_spill] sm:$0xff]  ;;  %v8585_v22 = vld [vmem:[#allocation197_spill] sm:$0xff] }
 0x363   :  { %v831_v63 = vadd.f32 %v767_v40, %v8569_v6  ;;  %v1031_v62 = vadd.f32 %v8570_v43, %v830_v12  ;;  %v1461_v16 = vsel %vm385_vm2, %v8572_v23, %v8571_v0  ;;  %v3141_v29 = vsel %vm740_vm3, %v3080_v61, %v3082_v38  ;;  %v8582_v40 = vld [vmem:[#allocation15_spill] sm:$0xff]  ;;  %v8584_v54 = vld [vmem:[#allocation196_spill] sm:$0xff]  ;;  %v8589_v23 = vld [vmem:[#allocation202_spill] sm:$0xff] }
 0x364   :  { %v768_v28 = vsel %vm740_vm3, %v8574_v31, %v8573_v25  ;;  %v2018_v33 = vadd.f32 %v1954_v51, %v1524_v44  ;;  %v2218_v11 = vadd.f32 %v2146_v24, %v2017_v13  ;;  %3268 = vst [vmem:[#allocation5 + $0xa8] sm:$0xff] %v3236_v3  ;;  %v3205_v57 = vadd.f32 %v3141_v29, %v2711_v34  ;;  %v8583_v13 = vld [vmem:[#allocation16_spill] sm:$0xff]  ;;  %v8586_v3 = vld [vmem:[#allocation283_spill] sm:$0xff]  ;;  %v8591_v31 = vld [vmem:[#allocation17_spill] sm:$0xff] }
 0x365   :  { %v1955_v55 = vsel %vm740_vm3, %v8576_v19, %v8575_v14  ;;  %v2148_v7 = vsel %vm2096_vm1, %v2145_v9, %v2147_v36  ;;  %v2149_v46 = vrot.slane %v2055_v35, 2  ;;  %v2056_v52 = vmul.f32 %v3469_v56, %v7006_v4  ;;  %v8579_v9 = vld [vmem:[#allocation60_spill] sm:$0xff]  ;;  %v3470_v35 = vld [vmem:[%s7779_s1 + $0x1d0] sm:$0xff]  ;;  %v8594_v14 = vld [vmem:[#allocation201_spill] sm:$0xff] }
 0x366   :  { %v1525_v47 = vadd.f32 %v1461_v16, %v1031_v62  ;;  %v7647_v42 = vmul.f32 %v7154_v60, %v6183_v2  ;;  %v2712_v17 = vadd.f32 %v8577_v10, %v2218_v11  ;;  %v3237_v39 = vmul.f32 100.0, %v3205_v57  ;;  %v3086_v12 = vpop.permute.xlu1 %3085  ;;  %v3084_v50 = vpop.permute.xlu0 %3083  ;;  %v8588_v62 = vld [vmem:[#allocation61_spill] sm:$0xff]  ;;  %v8590_v16 = vld [vmem:[#allocation203_spill] sm:$0xff]  ;;  %v8593_v57 = vld [vmem:[#allocation200_spill] sm:$0xff] }
 0x367   :  { %v832_v27 = vadd.f32 %v768_v28, %v8578_v21  ;;  %v1032_v45 = vadd.f32 %v8579_v9, %v831_v63  ;;  %v1462_v30 = vsel %vm385_vm2, %v8581_v18, %v8580_v32  ;;  %v3142_v1 = vsel %vm740_vm3, %v3084_v50, %v3086_v12  ;;  %v8587_v63 = vld [vmem:[#allocation62_spill] sm:$0xff]  ;;  %v3471_v56 = vld [vmem:[%s7779_s1 + $0x1e0] sm:$0xff]  ;;  %v8597_v12 = vld [vmem:[#allocation291_spill] sm:$0xff] }
 0x368   :  { %v769_v2 = vsel %vm740_vm3, %v8583_v13, %v8582_v40  ;;  %v2019_v60 = vadd.f32 %v1955_v55, %v1525_v47  ;;  %v2219_v49 = vadd.f32 %v2148_v7, %v2018_v33  ;;  %3269 = vst [vmem:[#allocation5 + $0xb0] sm:$0xff] %v3237_v39  ;;  %v3206_v53 = vadd.f32 %v3142_v1, %v2712_v17  ;;  %v8595_v47 = vld [vmem:[#allocation83_spill] sm:$0xff]  ;;  %v8596_v10 = vld [vmem:[#allocation84_spill] sm:$0xff]  ;;  %v8598_v32 = vld [vmem:[#allocation206_spill] sm:$0xff] }
 0x369   :  { %v1956_v51 = vsel %vm740_vm3, %v8585_v22, %v8584_v54  ;;  %v2150_v24 = vsel %vm2096_vm1, %v2147_v36, %v2149_v46  ;;  %v2151_v41 = vrot.slane %v2056_v52, 2  ;;  %v2057_v44 = vmul.f32 %v3470_v35, %v7006_v4  ;;  %v8599_v18 = vld [vmem:[#allocation207_spill] sm:$0xff]  ;;  %v8601_v13 = vld [vmem:[#allocation20_spill] sm:$0xff]  ;;  %v8603_v22 = vld [vmem:[#allocation205_spill] sm:$0xff] }
 0x36a   :  { %v1526_v37 = vadd.f32 %v1462_v30, %v1032_v45  ;;  %v7672_v34 = vsel %vm907_vm0, %v968_v8, %v970_v59  ;;  %v2713_v38 = vadd.f32 %v8586_v3, %v2219_v49  ;;  %v3238_v61 = vmul.f32 100.0, %v3206_v53  ;;  %v3090_v6 = vpop.permute.xlu1 %3089  ;;  %v3088_v36 = vpop.permute.xlu0 %3087  ;;  %v8600_v40 = vld [vmem:[#allocation19_spill] sm:$0xff]  ;;  %v8602_v54 = vld [vmem:[#allocation204_spill] sm:$0xff]  ;;  %v8604_v3 = vld [vmem:[#allocation285_spill] sm:$0xff] }
 0x36b   :  { %v833_v43 = vadd.f32 %v769_v2, %v8587_v63  ;;  %v1033_v0 = vadd.f32 %v8588_v62, %v832_v27  ;;  %v1463_v29 = vsel %vm385_vm2, %v8590_v16, %v8589_v23  ;;  %v3143_v25 = vsel %vm740_vm3, %v3088_v36, %v3090_v6  ;;  %v8606_v62 = vld [vmem:[#allocation211_spill] sm:$0xff]  ;;  %v8607_v16 = vld [vmem:[#allocation134_spill] sm:$0xff] }
 0x36c   :  { %v770_v8 = vsel %vm740_vm3, %v8592_v58, %v8591_v31  ;;  %v2020_v28 = vadd.f32 %v1956_v51, %v1526_v37  ;;  %v2220_v33 = vadd.f32 %v2150_v24, %v2019_v60  ;;  %3270 = vst [vmem:[#allocation5 + $0xb8] sm:$0xff] %v3238_v61  ;;  %v3207_v11 = vadd.f32 %v3143_v25, %v2713_v38  ;;  %v3472_v24 = vld [vmem:[%s7779_s1 + $0x1f0] sm:$0xff] }
 0x36d   :  { %v1957_v19 = vsel %vm740_vm3, %v8594_v14, %v8593_v57  ;;  %v2152_v55 = vsel %vm2096_vm1, %v2149_v46, %v2151_v41  ;;  %v2153_v7 = vrot.slane %v2057_v44, 2  ;;  %v2058_v52 = vmul.f32 %v3471_v56, %v7006_v4  ;;  %v8611_v14 = vld [vmem:[#allocation305_spill] sm:$0xff]  ;;  %v8612_v56 = vld [vmem:[#allocation63_spill] sm:$0xff]  ;;  %v3474_v48 = vld [vmem:[%s7779_s1 + $0x210] sm:$0x3] }
 0x36e   :  { %v417_v17 = vsel %vm385_vm2, %v8596_v10, %v8595_v47  ;;  %v1527_v39 = vadd.f32 %v1463_v29, %v1033_v0  ;;  %v2714_v50 = vadd.f32 %v8597_v12, %v2220_v33  ;;  %v3239_v21 = vmul.f32 100.0, %v3207_v11  ;;  %v3094_v27 = vpop.permute.xlu1 %3093  ;;  %v3092_v9 = vpop.permute.xlu0 %3091  ;;  %v8608_v29 = vld [vmem:[#allocation135_spill] sm:$0xff]  ;;  %v3473_v11 = vld [vmem:[%s7779_s1 + $0x200] sm:$0xff]  ;;  %s3516_s1 = smov [#allocation5]  }
 0x36f   :  { %v834_v45 = vadd.f32 %v770_v8, %v7498_v26  ;;  %v1034_v46 = vadd.f32 %v7457_v15, %v833_v43  ;;  %v1464_v30 = vsel %vm385_vm2, %v8599_v18, %v8598_v32  ;;  %v3144_v1 = vsel %vm740_vm3, %v3092_v9, %v3094_v27  ;;  %v8609_v8 = vld [vmem:[#allocation208_spill] sm:$0xff]  ;;  %s3284_s0 = sshll.u32 %s3516_s1, 4  ;;  %s3285_s0 = int_to_ptr.vmem [resolvable:$true] %s3284_s0 }
 0x370   :  { %v771_v2 = vsel %vm740_vm3, %v8601_v13, %v8600_v40  ;;  %v2021_v60 = vadd.f32 %v1957_v19, %v1527_v39  ;;  %v2221_v49 = vadd.f32 %v2152_v55, %v2020_v28  ;;  %3271 = vst [vmem:[#allocation5 + $0xc0] sm:$0xff] %v3239_v21  ;;  %v3208_v53 = vadd.f32 %v3144_v1, %v2714_v50  ;;  %v8610_v28 = vld [vmem:[#allocation209_spill] sm:$0xff]  ;;  %v8613_v50 = vld [vmem:[#allocation214_spill] sm:$0xff]  ;;  %v8614_v21 = vld [vmem:[#allocation215_spill] sm:$0xff]  ;;  %s3487_s17 = scalar_lea.vmem %s3285_s0, 4096  ;;  %p3492_p6 = scmp.lt.s32.totalorder %s3285_s0, %s3285_s0 }
 0x371   :  { %v1958_v26 = vsel %vm740_vm3, %v8603_v22, %v8602_v54  ;;  %v2154_v15 = vsel %vm2096_vm1, %v2151_v41, %v2153_v7  ;;  %v2155_v51 = vrot.slane %v2058_v52, 2  ;;  %v2059_v35 = vmul.f32 %v3472_v24, %v7006_v4  ;;  %v8605_v41 = vld [vmem:[#allocation210_spill] sm:$0xff]  ;;  %v8615_v18 = vld [vmem:[#allocation212_spill] sm:$0xff]  ;;  %p3488_p5 = scmp.ne.s32.totalorder %s3285_s0, %s3487_s17  ;;  %p3493_p7 = scmp.lt.s32.totalorder %s3487_s17, %s3487_s17 }
 0x372   :  { %v1528_v44 = vadd.f32 %v1464_v30, %v1034_v46  ;;  %v972_v37 = vrot.slane %v7647_v42, 1  ;;  %v2715_v38 = vadd.f32 %v8604_v3, %v2221_v49  ;;  %v3240_v61 = vmul.f32 100.0, %v3208_v53  ;;  %v3098_v6 = vpop.permute.xlu1 %3097  ;;  %v3096_v36 = vpop.permute.xlu0 %3095  ;;  %v8616_v30 = vld [vmem:[#allocation213_spill] sm:$0xff]  ;;  %v8618_v22 = vld [vmem:[#allocation218_spill] sm:$0xff]  ;;  %v8620_v3 = vld [vmem:[#allocation216_spill] sm:$0xff] }
 0x373   :  { %v835_v63 = vadd.f32 %v771_v2, %v7606_v20  ;;  %v1035_v43 = vadd.f32 %v7564_v5, %v834_v45  ;;  %v1465_v0 = vsel %vm385_vm2, %v8606_v62, %v8605_v41  ;;  %v3145_v23 = vsel %vm740_vm3, %v3096_v36, %v3098_v6  ;;  %v8617_v2 = vld [vmem:[#allocation64_spill] sm:$0xff]  ;;  %p3494_p8 = por %p3493_p7, %p3492_p6 }
 0x374   :  { %v772_v25 = vsel %vm740_vm3, %v8608_v29, %v8607_v16  ;;  %v2022_v42 = vadd.f32 %v1958_v26, %v1528_v44  ;;  %v2222_v31 = vadd.f32 %v2154_v15, %v2021_v60  ;;  %3272 = vst [vmem:[#allocation5 + $0xc8] sm:$0xff] %v3240_v61  ;;  %v3209_v58 = vadd.f32 %v3145_v23, %v2715_v38  ;;  %v8619_v26 = vld [vmem:[#allocation219_spill] sm:$0xff]  ;;  %v8621_v38 = vld [vmem:[#allocation217_spill] sm:$0xff] }
 0x375   :  { %v1959_v20 = vsel %vm740_vm3, %v8610_v28, %v8609_v8  ;;  %v2156_v5 = vsel %vm2096_vm1, %v2153_v7, %v2155_v51  ;;  %v2157_v33 = vrot.slane %v2059_v35, 2  ;;  %v2060_v57 = vmul.f32 %v3473_v11, %v7006_v4  ;;  %p3495_p9 = pnand %p3494_p8, %p3488_p5 }
 0x376   :  { %v481_v19 = vadd.f32 %v417_v17, %v8611_v14  ;;  %v1529_v55 = vadd.f32 %v1465_v0, %v1035_v43  ;;  %v2716_v52 = vadd.f32 %v8612_v56, %v2222_v31  ;;  %v3241_v47 = vmul.f32 100.0, %v3209_v58  ;;  %v3102_v10 = vpop.permute.xlu1 %3101  ;;  %v3100_v39 = vpop.permute.xlu0 %3099  ;;  %v8623_v31 = vld [vmem:[#allocation293_spill] sm:$0xff] }
 0x377   :  { %v1036_v12 = vadd.f32 %v7672_v34, %v835_v63  ;;  %v1466_v7 = vsel %vm385_vm2, %v8614_v21, %v8613_v50  ;;  %v973_v27 = vsel %vm907_vm0, %v970_v59, %v972_v37  ;;  %v3146_v9 = vsel %vm740_vm3, %v3100_v39, %v3102_v10  ;;  %v8622_v63 = vld [vmem:[#allocation288_spill] sm:$0xff] }
 0x378   :  { %v836_v45 = vadd.f32 %v772_v25, %v481_v19  ;;  %v2023_v17 = vadd.f32 %v1959_v20, %v1529_v55  ;;  %v2223_v46 = vadd.f32 %v2156_v5, %v2022_v42  ;;  %3273 = vst [vmem:[#allocation5 + $0xd0] sm:$0xff] %v3241_v47  ;;  %v3210_v32 = vadd.f32 %v3146_v9, %v2716_v52 }
 0x379   :  { %v1960_v1 = vsel %vm740_vm3, %v8616_v30, %v8615_v18  ;;  %v2158_v34 = vsel %vm2096_vm1, %v2155_v51, %v2157_v33  ;;  %v2159_v40 = vrot.slane %v2060_v57, 2  ;;  %v2061_v59 = vmul.f32 %v3474_v48, %v7006_v4  ;;  %v8624_v57 = vld [vmem:[#allocation290_spill] sm:$0xff] }
 0x37a   :  { %v1530_v13 = vadd.f32 %v1466_v7, %v1036_v12  ;;  %v2717_v60 = vadd.f32 %v8617_v2, %v2223_v46  ;;  %v3242_v49 = vmul.f32 100.0, %v3210_v32  ;;  %v3106_v53 = vpop.permute.xlu1 %3105  ;;  %v3104_v54 = vpop.permute.xlu0 %3103  ;;  %v1467_v15 = vsel %vm385_vm2, %v8619_v26, %v8618_v22 }
 0x37b   :  { %v3147_v24 = vsel %vm740_vm3, %v3104_v54, %v3106_v53  ;;  %v1037_v51 = vadd.f32 %v973_v27, %v836_v45  ;;  %v2224_v44 = vadd.f32 %v2158_v34, %v2023_v17  ;;  %v1961_v4 = vsel %vm740_vm3, %v8621_v38, %v8620_v3 }
 0x37c   :  { %v2024_v35 = vadd.f32 %v1960_v1, %v1530_v13  ;;  %3274 = vst [vmem:[#allocation5 + $0xd8] sm:$0xff] %v3242_v49  ;;  %v3211_v37 = vadd.f32 %v3147_v24, %v2717_v60  ;;  %v2160_v61 = vsel %vm2096_vm1, %v2157_v33, %v2159_v40  ;;  %v2161_v6 = vrot.slane %v2061_v59, 2 }
 0x37d   :  { %v1531_v36 = vadd.f32 %v1467_v15, %v1037_v51  ;;  %v2718_v43 = vadd.f32 %v8622_v63, %v2224_v44 }
 0x37e   :  { %v3243_v41 = vmul.f32 100.0, %v3211_v37  ;;  %v3110_v62 = vpop.permute.xlu1 %3109  ;;  %v3108_v0 = vpop.permute.xlu0 %3107  ;;  %v2225_v29 = vadd.f32 %v2160_v61, %v2024_v35  ;;  %v2162_v42 = vsel %vm2096_vm1, %v2159_v40, %v2161_v6 }
 0x37f   :  { %v3148_v23 = vsel %vm740_vm3, %v3108_v0, %v3110_v62  ;;  %v2025_v16 = vadd.f32 %v1961_v4, %v1531_v36 }
 0x380   :  { %3275 = vst [vmem:[#allocation5 + $0xe0] sm:$0xff] %v3243_v41  ;;  %v3212_v25 = vadd.f32 %v3148_v23, %v2718_v43  ;;  %v2719_v58 = vadd.f32 %v8623_v31, %v2225_v29 }
 0x381   :  { %v2226_v33 = vadd.f32 %v2162_v42, %v2025_v16 }
 0x382   :  { %v3244_v8 = vmul.f32 100.0, %v3212_v25  ;;  %v3114_v28 = vpop.permute.xlu1 %3113  ;;  %v3112_v20 = vpop.permute.xlu0 %3111 }
 0x383   :  { %v3149_v5 = vsel %vm740_vm3, %v3112_v20, %v3114_v28  ;;  %v2720_v14 = vadd.f32 %v8624_v57, %v2226_v33 }
 0x384   :  { %3276 = vst [vmem:[#allocation5 + $0xe8] sm:$0xff] %v3244_v8  ;;  %v3213_v11 = vadd.f32 %v3149_v5, %v2719_v58 }
 0x386   :  { %v3245_v19 = vmul.f32 100.0, %v3213_v11  ;;  %v3118_v55 = vpop.permute.xlu1 %3117  ;;  %v3116_v56 = vpop.permute.xlu0 %3115 }
 0x387   :  { %v3150_v52 = vsel %vm740_vm3, %v3116_v56, %v3118_v55 }
 0x388   :  { %3277 = vst [vmem:[#allocation5 + $0xf0] sm:$0xff] %v3245_v19  ;;  %v3214_v47 = vadd.f32 %v3150_v52, %v2720_v14 }
 0x38a   :  { %v3246_v10 = vmul.f32 100.0, %v3214_v47 }
 0x38c   :  { %3278 = vst [vmem:[#allocation5 + $0xf8] sm:$0xff] %v3246_v10 }
 0x38d   :  { %3498 = shalt.err (!%p3495_p9)
}
 0x38e   :  { %s3499_s20 = scalar_lea.hbm %s7780_s2, 4096 }
 0x38f   :  { %p3500_p10 = scmp.ne.s32.totalorder %s7780_s2, %s3499_s20  ;;  %p3503_p11 = scmp.lt.u32.totalorder %s3499_s20, %s7780_s2 }
 0x391   :  { %p3505_p12 = pnand %p3503_p11, %p3500_p10 }
 0x393   :  { %3508 = shalt.err (!%p3505_p12)
}
 0x394   :  { %s3517_s25 = smov 128   ;;  %s3518_s26 = smov 8  }
 0x395   :  { %3290 = dma.vmem_to_hbm [thread:$0]  %s3285_s0, 4096, %s7780_s2, [#allocation3], %s3517_s25, %s3517_s25, %s3518_s26  }
 0x396   :  { %3511 = dma.done.wait [#allocation3], 4096  }
 0x397   :  { %3512 = vsyncadd [#allocation3], 4294963200 }
 0x398   :  { %3294 = vsyncpa [#allocation3], 1 }
 0x399   :  { %3295 = vsyncpa [#allocation4], 1 }

</bundles_post_ra>
